<compile_context>
chip_gen: v5e
topology: v5e:2x2
jax: 0.10.0
libtpu: 0.0.40
codegen_flags: <defaults>
</compile_context>

<pallas_src>
import jax
import jax.numpy as jnp
from jax import lax
from jax.experimental import pallas as pl
from jax.experimental.pallas import tpu as pltpu


def _round_up(x, m):
    return ((x + m - 1) // m) * m


def _vmem_limit(nbytes):
    # footprint + 50% headroom, clamped to [8 MiB, 48 MiB] (v7x-safe: leaves
    # headroom inside the 64 MiB physical VMEM per TensorCore).
    return int(min(48 * 1024 * 1024, max(8 * 1024 * 1024, int(nbytes * 1.5))))


# --------------------------------------------------------------------------
# Kernel 1: chunked LSTM recurrence (sequential over time).
# --------------------------------------------------------------------------
def lstm_chunk_kernel(x_ref, w_ih_ref, w_hh_ref, b_ref, h_out_ref,
                      h_scr, c_scr, gx_scr):
    """One grid step == TS LSTM time steps (rows are flattened time*batch).

    x_ref    : (TS*B, E)  bf16   input embeddings for this time chunk
    w_ih_ref : (E, 4H)    bf16   input->gates weights (pre-transposed)
    w_hh_ref : (H, 4H)    bf16   hidden->gates weights (pre-transposed)
    b_ref    : (1, 4H)    f32    b_ih + b_hh
    h_out_ref: (TS*B, H)  bf16   hidden states for this chunk
    h_scr/c_scr : (B, H)  f32 VMEM scratch, carried across the sequential grid
    gx_scr   : (TS*B, 4H) f32 VMEM scratch, hoisted input projection
    """
    t = pl.program_id(0)

    @pl.when(t == 0)
    def _():
        h_scr[...] = jnp.zeros_like(h_scr)
        c_scr[...] = jnp.zeros_like(c_scr)

    B, H = h_scr.shape
    rows = x_ref.shape[0]
    TS = rows // B

    # Hoisted input projection + bias (no recurrent dependence): one tall
    # matmul with M = TS*B rows instead of TS tiny B-row matmuls.  Bias is
    # folded in here once per chunk (no per-step broadcast/add).
    gx_scr[...] = (jnp.dot(x_ref[...], w_ih_ref[...],
                           preferred_element_type=jnp.float32)
                   + b_ref[...])

    w_hh = w_hh_ref[...]  # hoisted weight load

    def step(s, carry):
        h, c = carry                                   # f32 (B, H)
        start = pl.multiple_of(s * B, B)
        gates = gx_scr[pl.ds(start, B), :] + jnp.dot(
            h.astype(jnp.bfloat16), w_hh, preferred_element_type=jnp.float32)
        # PyTorch gate order: input, forget, cell(g), output.
        # H is a multiple of 128 -> every slice is lane-aligned.
        # sigmoid(x) == 0.5*(1+tanh(x/2)): one EUP pass instead of exp+recip.
        i = 0.5 + 0.5 * jnp.tanh(0.5 * gates[:, 0 * H:1 * H])
        f = 0.5 + 0.5 * jnp.tanh(0.5 * gates[:, 1 * H:2 * H])
        g = jnp.tanh(gates[:, 2 * H:3 * H])
        o = 0.5 + 0.5 * jnp.tanh(0.5 * gates[:, 3 * H:4 * H])
        c = f * c + i * g
        h = o * jnp.tanh(c)
        h_out_ref[pl.ds(start, B), :] = h.astype(h_out_ref.dtype)
        return (h, c)

    h, c = lax.fori_loop(0, TS, step, (h_scr[...], c_scr[...]), unroll=True)
    h_scr[...] = h
    c_scr[...] = c


# --------------------------------------------------------------------------
# Kernel 2: batched output projection (fully parallel).
# --------------------------------------------------------------------------
def proj_kernel(h_ref, w_ref, b_ref, o_ref):
    """h_ref: (TM, H) bf16, w_ref: (H, TV) bf16, b_ref: (1, TV) f32 -> o_ref: (TM, TV) f32."""
    o_ref[...] = (jnp.dot(h_ref[...], w_ref[...],
                          preferred_element_type=jnp.float32)
                  + b_ref[...]).astype(o_ref.dtype)


# --------------------------------------------------------------------------
# Forward pass
# --------------------------------------------------------------------------
def decoder_rnn_forward(features, captions, params, *, training=False,
                        time_chunk=16):
    """features: (B, E) f32, captions: (T, B) int32 -> (T+1, B, V) f32."""
    embed_tbl = params["embed"]          # (V, E)
    w_ih = params["w_ih"]                # (E, 4H)
    w_hh = params["w_hh"]                # (H, 4H)
    b = params["b"]                      # (1, 4H)
    w_lin = params["w_lin"]              # (H, V)
    b_lin = params["b_lin"]              # (1, V)

    E = w_ih.shape[0]
    H = w_hh.shape[0]
    V = w_lin.shape[1]
    T, B = captions.shape
    Tp1 = T + 1

    # ---- Glue (plain JAX): embedding lookup + dropout(eval) + concat -------
    emb = jnp.take(embed_tbl, captions, axis=0)                  # (T, B, E)
    # Dropout(p=0.5): identity in eval mode (deterministic).
    # TODO(synk): training-mode stochastic dropout (pltpu.prng_random_bits) not applied.
    del training
    x = jnp.concatenate([features[None, :, :], emb], axis=0)     # (T+1, B, E)

    # ---- Pad to TPU-friendly shapes -----------------------------------------
    TS = time_chunk
    B_p = _round_up(B, 16)        # 16 rows -> full bf16 sublane tile per store
    E_p = _round_up(E, 128)
    H_p = _round_up(H, 128)
    V_p = _round_up(V, 512)       # TV = 512 keeps projection stores lane-dense
    Tp1_p = _round_up(Tp1, TS)

    # Inputs to the kernels in bf16 (MXU operands); accumulation stays f32.
    x_p = jnp.zeros((Tp1_p, B_p, E_p), jnp.bfloat16)
    x_p = x_p.at[:Tp1, :B, :E].set(x.astype(jnp.bfloat16))
    x2d = x_p.reshape(Tp1_p * B_p, E_p)                          # time-major rows

    def pad_gates(w, rows, rows_p):
        # (rows, 4H) -> (rows_p, 4*H_p) with zero padding applied per gate so
        # gate slicing inside the kernel stays correct.  Padded hidden units
        # get zero weights/bias -> their h stays exactly 0 (no contamination).
        w4 = w.reshape(rows, 4, H)
        out = jnp.zeros((rows_p, 4, H_p), w.dtype)
        out = out.at[:rows, :, :H].set(w4)
        return out.reshape(rows_p, 4 * H_p)

    w_ih_p = pad_gates(w_ih, E, E_p).astype(jnp.bfloat16)
    w_hh_p = pad_gates(w_hh, H, H_p).astype(jnp.bfloat16)
    b_p = pad_gates(b, 1, 1).astype(jnp.float32)
    w_lin_p = jnp.zeros((H_p, V_p), jnp.bfloat16).at[:H, :V].set(
        w_lin.astype(jnp.bfloat16))
    b_lin_p = jnp.zeros((1, V_p), jnp.float32).at[:, :V].set(b_lin)

    # ---- Pallas call #1: sequential LSTM recurrence, TS steps per grid step -
    n_chunks = Tp1_p // TS
    rows_chunk = TS * B_p
    M = Tp1_p * B_p

    lstm_vmem = _vmem_limit(
        2 * rows_chunk * E_p * 2          # x chunk (bf16, double-buffered)
        + 2 * rows_chunk * H_p * 2        # h_out chunk (bf16, double-buffered)
        + E_p * 4 * H_p * 2               # w_ih (single-buffered)
        + H_p * 4 * H_p * 2               # w_hh (single-buffered)
        + 4 * H_p * 4                     # bias
        + 2 * B_p * H_p * 4               # h/c carry scratch
        + rows_chunk * 4 * H_p * 4)       # gx scratch

    # TODO(synk): on v7x with larger batches, add a leading batch-parallel
    # grid axis (split B_p across the two TensorCores) for the recurrence.
    h2d = pl.pallas_call(
        lstm_chunk_kernel,
        out_shape=jax.ShapeDtypeStruct((M, H_p), jnp.bfloat16),
        grid_spec=pltpu.PrefetchScalarGridSpec(
            num_scalar_prefetch=0,
            grid=(n_chunks,),
            in_specs=[
                pl.BlockSpec((rows_chunk, E_p), lambda t: (t, 0)),
                # Grid-invariant weights/bias: single-buffered (no point
                # double-buffering a block whose index never changes).
                pl.BlockSpec((E_p, 4 * H_p), lambda t: (0, 0),
                             pipeline_mode=pl.Buffered(1)),
                pl.BlockSpec((H_p, 4 * H_p), lambda t: (0, 0),
                             pipeline_mode=pl.Buffered(1)),
                pl.BlockSpec((1, 4 * H_p), lambda t: (0, 0),
                             pipeline_mode=pl.Buffered(1)),
            ],
            out_specs=pl.BlockSpec((rows_chunk, H_p), lambda t: (t, 0)),
            scratch_shapes=[
                pltpu.VMEM((B_p, H_p), jnp.float32),            # h carry
                pltpu.VMEM((B_p, H_p), jnp.float32),            # c carry
                pltpu.VMEM((rows_chunk, 4 * H_p), jnp.float32),  # hoisted gx
            ],
        ),
        compiler_params=pltpu.CompilerParams(
            dimension_semantics=("arbitrary",),        # true time recurrence
            vmem_limit_bytes=lstm_vmem,
        ),
    )(x2d, w_ih_p, w_hh_p, b_p)

    # ---- Pallas call #2: batched output projection ---------------------------
    TM = 256                      # fills the 256-row MXU on v6e/v7x
    TV = 512
    M_p = _round_up(M, TM)
    if M_p != M:
        h2d = jnp.zeros((M_p, H_p), h2d.dtype).at[:M].set(h2d)

    proj_vmem = _vmem_limit(
        2 * TM * H_p * 2          # hidden tile (bf16, double-buffered)
        + 2 * H_p * TV * 2        # weight tile
        + 2 * TV * 4              # bias tile
        + 2 * TM * TV * 4)        # output tile (f32)

    # TODO(synk): emit bf16 logits if the consumer tolerates it (halves the
    # dominant HBM writeback); kept f32 here to match the f32 reference.
    out2d = pl.pallas_call(
        proj_kernel,
        out_shape=jax.ShapeDtypeStruct((M_p, V_p), jnp.float32),
        grid_spec=pltpu.PrefetchScalarGridSpec(
            num_scalar_prefetch=0,
            # Row axis innermost: each w_lin tile is streamed from HBM exactly
            # once (it stays resident while all row tiles pass through).
            grid=(V_p // TV, M_p // TM),
            in_specs=[
                pl.BlockSpec((TM, H_p), lambda j, i: (i, 0)),
                pl.BlockSpec((H_p, TV), lambda j, i: (0, j)),
                pl.BlockSpec((1, TV), lambda j, i: (0, j)),
            ],
            out_specs=pl.BlockSpec((TM, TV), lambda j, i: (i, j)),
        ),
        compiler_params=pltpu.CompilerParams(
            dimension_semantics=("parallel", "parallel"),  # megacore on v7x
            vmem_limit_bytes=proj_vmem,
        ),
    )(h2d, w_lin_p, b_lin_p)

    out = out2d[:M].reshape(Tp1_p, B_p, V_p)[:Tp1, :B, :V]
    return out


# --------------------------------------------------------------------------
# Pure-JAX reference (f32, eval-mode dropout) matching PyTorch semantics.
# --------------------------------------------------------------------------
def reference_forward(features, captions, params):
    emb = jnp.take(params["embed"], captions, axis=0)
    x = jnp.concatenate([features[None, :, :], emb], axis=0)
    H = params["w_hh"].shape[0]
    B = x.shape[1]

    def step(carry, x_t):
        h, c = carry
        gates = x_t @ params["w_ih"] + h @ params["w_hh"] + params["b"]
        i = jax.nn.sigmoid(gates[:, 0:H])
        f = jax.nn.sigmoid(gates[:, H:2 * H])
        g = jnp.tanh(gates[:, 2 * H:3 * H])
        o = jax.nn.sigmoid(gates[:, 3 * H:4 * H])
        c = f * c + i * g
        h = o * jnp.tanh(c)
        return (h, c), h

    h0 = jnp.zeros((B, H), jnp.float32)
    (_, _), hiddens = jax.lax.scan(step, (h0, h0), x)
    return hiddens @ params["w_lin"] + params["b_lin"]


def init_params(key, *, vocab_size, embed_size, hidden_size):
    ks = jax.random.split(key, 6)
    s = 0.1
    return {
        "embed": s * jax.random.normal(ks[0], (vocab_size, embed_size), jnp.float32),
        # Stored pre-transposed relative to PyTorch (W_ih: (4H,E) -> (E,4H), etc.)
        "w_ih": s * jax.random.normal(ks[1], (embed_size, 4 * hidden_size), jnp.float32),
        "w_hh": s * jax.random.normal(ks[2], (hidden_size, 4 * hidden_size), jnp.float32),
        "b": s * jax.random.normal(ks[3], (1, 4 * hidden_size), jnp.float32),  # b_ih+b_hh
        "w_lin": s * jax.random.normal(ks[4], (hidden_size, vocab_size), jnp.float32),
        "b_lin": s * jax.random.normal(ks[5], (1, vocab_size), jnp.float32),
    }


if __name__ == "__main__":
    # Small synthetic shapes consistent with the module's forward.
    T, B = 8, 2            # seq len, batch
    E, H, V = 32, 32, 64   # embed, hidden, vocab

    key = jax.random.PRNGKey(0)
    kp, kf, kc = jax.random.split(key, 3)

    params = init_params(kp, vocab_size=V, embed_size=E, hidden_size=H)
    features = jax.random.normal(kf, (B, E), jnp.float32)
    captions = jax.random.randint(kc, (T, B), 0, V, dtype=jnp.int32)

    fwd = jax.jit(decoder_rnn_forward)
    out = jax.block_until_ready(fwd(features, captions, params))

    ref = jax.block_until_ready(reference_forward(features, captions, params))
    assert out.shape == (T + 1, B, V)
    # bf16 MXU operands (f32 accumulation) -> looser tolerance vs f32 reference.
    assert jnp.allclose(out, ref, atol=5e-2, rtol=5e-2), "mismatch vs reference"

    print("KERNEL_OK")
</pallas_src>

<mosaic_0001>
module attributes {stable_mosaic.version = 11 : i64} {
  func.func @proj_kernel(%arg0: i32, %arg1: i32, %arg2: memref<256x128xbf16, #tpu.memory_space<vmem>>, %arg3: memref<128x512xbf16, #tpu.memory_space<vmem>>, %arg4: memref<1x512xf32, #tpu.memory_space<vmem>>, %arg5: memref<256x512xf32, #tpu.memory_space<vmem>>) attributes {dimension_semantics = [#tpu.dimension_semantics<parallel>, #tpu.dimension_semantics<parallel>], iteration_bounds = array<i64: 1, 1>, scalar_prefetch = 0 : i64, scratch_operands = 0 : i64, tpu.core_type = #tpu.core_type<tc>, window_params = [{transform_indices = @transform_0, window_bounds = array<i64: 256, 128>}, {transform_indices = @transform_1, window_bounds = array<i64: 128, 512>}, {transform_indices = @transform_2, window_bounds = array<i64: 1, 512>}, {transform_indices = @transform_3, window_bounds = array<i64: 256, 512>}]} {
    %c0 = arith.constant 0 : index
    %c0_0 = arith.constant 0 : index
    %0 = vector.load %arg2[%c0, %c0_0] : memref<256x128xbf16, #tpu.memory_space<vmem>>, vector<256x128xbf16>
    %c0_1 = arith.constant 0 : index
    %c0_2 = arith.constant 0 : index
    %1 = vector.load %arg3[%c0_1, %c0_2] : memref<128x512xbf16, #tpu.memory_space<vmem>>, vector<128x512xbf16>
    %cst = arith.constant dense<0.000000e+00> : vector<256x512xf32>
    %2 = tpu.matmul %0, %1, %cst {dimension_numbers = #tpu.dot_dimension_numbers<[1], [0], [0], [1], [0, 0, 1, 1], [], []>} : vector<256x128xbf16>, vector<128x512xbf16>, vector<256x512xf32> -> vector<256x512xf32>
    %c0_3 = arith.constant 0 : index
    %c0_4 = arith.constant 0 : index
    %3 = vector.load %arg4[%c0_3, %c0_4] : memref<1x512xf32, #tpu.memory_space<vmem>>, vector<1x512xf32>
    %4 = vector.broadcast %3 : vector<1x512xf32> to vector<256x512xf32>
    %5 = arith.addf %2, %4 : vector<256x512xf32>
    %c0_5 = arith.constant 0 : index
    %c0_6 = arith.constant 0 : index
    %6 = vector.load %arg5[%c0_5, %c0_6] : memref<256x512xf32, #tpu.memory_space<vmem>>, vector<256x512xf32>
    tpu.vector_store %arg5[%c0_5, %c0_6], %5 {strides = array<i32>} : memref<256x512xf32, #tpu.memory_space<vmem>>, vector<256x512xf32>,
    return
  }
  func.func @transform_0(%arg0: i32, %arg1: i32) -> (i32, i32) {
    %c0_i32 = arith.constant 0 : i32
    %c0_i32_0 = arith.constant 0 : i32
    return %arg1, %c0_i32 : i32, i32
  }
  func.func @transform_1(%arg0: i32, %arg1: i32) -> (i32, i32) {
    %c0_i32 = arith.constant 0 : i32
    %c0_i32_0 = arith.constant 0 : i32
    return %c0_i32, %arg0 : i32, i32
  }
  func.func @transform_2(%arg0: i32, %arg1: i32) -> (i32, i32) {
    %c0_i32 = arith.constant 0 : i32
    %c0_i32_0 = arith.constant 0 : i32
    return %c0_i32, %arg0 : i32, i32
  }
  func.func @transform_3(%arg0: i32, %arg1: i32) -> (i32, i32) {
    %c0_i32 = arith.constant 0 : i32
    return %arg1, %arg0 : i32, i32
  }
}

module attributes {stable_mosaic.version = 11 : i64} {
  func.func @lstm_chunk_kernel(%arg0: i32, %arg1: memref<256x128xbf16, #tpu.memory_space<vmem>>, %arg2: memref<128x512xbf16, #tpu.memory_space<vmem>>, %arg3: memref<128x512xbf16, #tpu.memory_space<vmem>>, %arg4: memref<1x512xf32, #tpu.memory_space<vmem>>, %arg5: memref<256x128xbf16, #tpu.memory_space<vmem>>, %arg6: memref<16x128xf32, #tpu.memory_space<vmem>>, %arg7: memref<16x128xf32, #tpu.memory_space<vmem>>, %arg8: memref<256x512xf32, #tpu.memory_space<vmem>>) attributes {dimension_semantics = [#tpu.dimension_semantics<arbitrary>], iteration_bounds = array<i64: 1>, scalar_prefetch = 0 : i64, scratch_operands = 3 : i64, tpu.core_type = #tpu.core_type<tc>, window_params = [{transform_indices = @transform_0, window_bounds = array<i64: 256, 128>}, {pipeline_mode = #tpu.pipeline_mode<synchronous>, transform_indices = @transform_1, window_bounds = array<i64: 128, 512>}, {pipeline_mode = #tpu.pipeline_mode<synchronous>, transform_indices = @transform_2, window_bounds = array<i64: 128, 512>}, {pipeline_mode = #tpu.pipeline_mode<synchronous>, transform_indices = @transform_3, window_bounds = array<i64: 1, 512>}, {transform_indices = @transform_4, window_bounds = array<i64: 256, 128>}]} {
    %c0_i32 = arith.constant 0 : i32
    %0 = arith.cmpi eq, %arg0, %c0_i32 : i32
    %1 = arith.extui %0 : i1 to i32
    %c0_i32_0 = arith.constant 0 : i32
    %2 = arith.cmpi ne, %1, %c0_i32_0 : i32
    scf.if %2 {
      %cst_227 = arith.constant 0.000000e+00 : f32
      %671 = vector.broadcast %cst_227 : f32 to vector<16x128xf32>
      %c0_228 = arith.constant 0 : index
      %c0_229 = arith.constant 0 : index
      %672 = vector.load %arg6[%c0_228, %c0_229] : memref<16x128xf32, #tpu.memory_space<vmem>>, vector<16x128xf32>
      tpu.vector_store %arg6[%c0_228, %c0_229], %671 {strides = array<i32>} : memref<16x128xf32, #tpu.memory_space<vmem>>, vector<16x128xf32>,
      %cst_230 = arith.constant 0.000000e+00 : f32
      %673 = vector.broadcast %cst_230 : f32 to vector<16x128xf32>
      %c0_231 = arith.constant 0 : index
      %c0_232 = arith.constant 0 : index
      %674 = vector.load %arg7[%c0_231, %c0_232] : memref<16x128xf32, #tpu.memory_space<vmem>>, vector<16x128xf32>
      tpu.vector_store %arg7[%c0_231, %c0_232], %673 {strides = array<i32>} : memref<16x128xf32, #tpu.memory_space<vmem>>, vector<16x128xf32>,
    } else {
    }
    %c0 = arith.constant 0 : index
    %c0_1 = arith.constant 0 : index
    %3 = vector.load %arg1[%c0, %c0_1] : memref<256x128xbf16, #tpu.memory_space<vmem>>, vector<256x128xbf16>
    %c0_2 = arith.constant 0 : index
    %c0_3 = arith.constant 0 : index
    %4 = vector.load %arg2[%c0_2, %c0_3] : memref<128x512xbf16, #tpu.memory_space<vmem>>, vector<128x512xbf16>
    %cst = arith.constant dense<0.000000e+00> : vector<256x512xf32>
    %5 = tpu.matmul %3, %4, %cst {dimension_numbers = #tpu.dot_dimension_numbers<[1], [0], [0], [1], [0, 0, 1, 1], [], []>} : vector<256x128xbf16>, vector<128x512xbf16>, vector<256x512xf32> -> vector<256x512xf32>
    %c0_4 = arith.constant 0 : index
    %c0_5 = arith.constant 0 : index
    %6 = vector.load %arg4[%c0_4, %c0_5] : memref<1x512xf32, #tpu.memory_space<vmem>>, vector<1x512xf32>
    %7 = vector.broadcast %6 : vector<1x512xf32> to vector<256x512xf32>
    %8 = arith.addf %5, %7 : vector<256x512xf32>
    %c0_6 = arith.constant 0 : index
    %c0_7 = arith.constant 0 : index
    %9 = vector.load %arg8[%c0_6, %c0_7] : memref<256x512xf32, #tpu.memory_space<vmem>>, vector<256x512xf32>
    tpu.vector_store %arg8[%c0_6, %c0_7], %8 {strides = array<i32>} : memref<256x512xf32, #tpu.memory_space<vmem>>, vector<256x512xf32>,
    %c0_8 = arith.constant 0 : index
    %c0_9 = arith.constant 0 : index
    %10 = vector.load %arg3[%c0_8, %c0_9] : memref<128x512xbf16, #tpu.memory_space<vmem>>, vector<128x512xbf16>
    %c0_10 = arith.constant 0 : index
    %c0_11 = arith.constant 0 : index
    %11 = vector.load %arg6[%c0_10, %c0_11] : memref<16x128xf32, #tpu.memory_space<vmem>>, vector<16x128xf32>
    %c0_12 = arith.constant 0 : index
    %c0_13 = arith.constant 0 : index
    %12 = vector.load %arg7[%c0_12, %c0_13] : memref<16x128xf32, #tpu.memory_space<vmem>>, vector<16x128xf32>
    %c0_i32_14 = arith.constant 0 : i32
    %c16_i32 = arith.constant 16 : i32
    %13 = arith.muli %c0_i32_14, %c16_i32 : i32
    %14 = tpu.assume_multiple %13, 16 : i32
    %15 = arith.index_cast %14 : i32 to index
    %c0_15 = arith.constant 0 : index
    %16 = vector.load %arg8[%15, %c0_15] : memref<256x512xf32, #tpu.memory_space<vmem>>, vector<16x512xf32>
    %17 = arith.truncf %11 : vector<16x128xf32> to vector<16x128xbf16>
    %cst_16 = arith.constant dense<0.000000e+00> : vector<16x512xf32>
    %18 = tpu.matmul %17, %10, %cst_16 {dimension_numbers = #tpu.dot_dimension_numbers<[1], [0], [0], [1], [0, 0, 1, 1], [], []>} : vector<16x128xbf16>, vector<128x512xbf16>, vector<16x512xf32> -> vector<16x512xf32>
    %19 = arith.addf %16, %18 : vector<16x512xf32>
    %20 = vector.extract_strided_slice %19 {offsets = [0, 0], sizes = [16, 128], strides = [1, 1]} : vector<16x512xf32> to vector<16x128xf32>
    %cst_17 = arith.constant 5.000000e-01 : f32
    %21 = vector.broadcast %cst_17 : f32 to vector<16x128xf32>
    %22 = arith.mulf %21, %20 : vector<16x128xf32>
    %23 = math.tanh %22 : vector<16x128xf32>
    %cst_18 = arith.constant 5.000000e-01 : f32
    %24 = vector.broadcast %cst_18 : f32 to vector<16x128xf32>
    %25 = arith.mulf %24, %23 : vector<16x128xf32>
    %cst_19 = arith.constant 5.000000e-01 : f32
    %26 = vector.broadcast %cst_19 : f32 to vector<16x128xf32>
    %27 = arith.addf %26, %25 : vector<16x128xf32>
    %28 = vector.extract_strided_slice %19 {offsets = [0, 128], sizes = [16, 128], strides = [1, 1]} : vector<16x512xf32> to vector<16x128xf32>
    %cst_20 = arith.constant 5.000000e-01 : f32
    %29 = vector.broadcast %cst_20 : f32 to vector<16x128xf32>
    %30 = arith.mulf %29, %28 : vector<16x128xf32>
    %31 = math.tanh %30 : vector<16x128xf32>
    %cst_21 = arith.constant 5.000000e-01 : f32
    %32 = vector.broadcast %cst_21 : f32 to vector<16x128xf32>
    %33 = arith.mulf %32, %31 : vector<16x128xf32>
    %cst_22 = arith.constant 5.000000e-01 : f32
    %34 = vector.broadcast %cst_22 : f32 to vector<16x128xf32>
    %35 = arith.addf %34, %33 : vector<16x128xf32>
    %36 = vector.extract_strided_slice %19 {offsets = [0, 256], sizes = [16, 128], strides = [1, 1]} : vector<16x512xf32> to vector<16x128xf32>
    %37 = math.tanh %36 : vector<16x128xf32>
    %38 = vector.extract_strided_slice %19 {offsets = [0, 384], sizes = [16, 128], strides = [1, 1]} : vector<16x512xf32> to vector<16x128xf32>
    %cst_23 = arith.constant 5.000000e-01 : f32
    %39 = vector.broadcast %cst_23 : f32 to vector<16x128xf32>
    %40 = arith.mulf %39, %38 : vector<16x128xf32>
    %41 = math.tanh %40 : vector<16x128xf32>
    %cst_24 = arith.constant 5.000000e-01 : f32
    %42 = vector.broadcast %cst_24 : f32 to vector<16x128xf32>
    %43 = arith.mulf %42, %41 : vector<16x128xf32>
    %cst_25 = arith.constant 5.000000e-01 : f32
    %44 = vector.broadcast %cst_25 : f32 to vector<16x128xf32>
    %45 = arith.addf %44, %43 : vector<16x128xf32>
    %46 = arith.mulf %35, %12 : vector<16x128xf32>
    %47 = arith.mulf %27, %37 : vector<16x128xf32>
    %48 = arith.addf %46, %47 : vector<16x128xf32>
    %49 = math.tanh %48 : vector<16x128xf32>
    %50 = arith.mulf %45, %49 : vector<16x128xf32>
    %51 = arith.truncf %50 : vector<16x128xf32> to vector<16x128xbf16>
    %52 = arith.index_cast %14 : i32 to index
    %c0_26 = arith.constant 0 : index
    %53 = vector.load %arg5[%52, %c0_26] : memref<256x128xbf16, #tpu.memory_space<vmem>>, vector<16x128xbf16>
    tpu.vector_store %arg5[%52, %c0_26], %51 {strides = array<i32>} : memref<256x128xbf16, #tpu.memory_space<vmem>>, vector<16x128xbf16>,
    %c1_i32 = arith.constant 1 : i32
    %c16_i32_27 = arith.constant 16 : i32
    %54 = arith.muli %c1_i32, %c16_i32_27 : i32
    %55 = tpu.assume_multiple %54, 16 : i32
    %56 = arith.index_cast %55 : i32 to index
    %c0_28 = arith.constant 0 : index
    %57 = vector.load %arg8[%56, %c0_28] : memref<256x512xf32, #tpu.memory_space<vmem>>, vector<16x512xf32>
    %58 = arith.truncf %50 : vector<16x128xf32> to vector<16x128xbf16>
    %cst_29 = arith.constant dense<0.000000e+00> : vector<16x512xf32>
    %59 = tpu.matmul %58, %10, %cst_29 {dimension_numbers = #tpu.dot_dimension_numbers<[1], [0], [0], [1], [0, 0, 1, 1], [], []>} : vector<16x128xbf16>, vector<128x512xbf16>, vector<16x512xf32> -> vector<16x512xf32>
    %60 = arith.addf %57, %59 : vector<16x512xf32>
    %61 = vector.extract_strided_slice %60 {offsets = [0, 0], sizes = [16, 128], strides = [1, 1]} : vector<16x512xf32> to vector<16x128xf32>
    %cst_30 = arith.constant 5.000000e-01 : f32
    %62 = vector.broadcast %cst_30 : f32 to vector<16x128xf32>
    %63 = arith.mulf %62, %61 : vector<16x128xf32>
    %64 = math.tanh %63 : vector<16x128xf32>
    %cst_31 = arith.constant 5.000000e-01 : f32
    %65 = vector.broadcast %cst_31 : f32 to vector<16x128xf32>
    %66 = arith.mulf %65, %64 : vector<16x128xf32>
    %cst_32 = arith.constant 5.000000e-01 : f32
    %67 = vector.broadcast %cst_32 : f32 to vector<16x128xf32>
    %68 = arith.addf %67, %66 : vector<16x128xf32>
    %69 = vector.extract_strided_slice %60 {offsets = [0, 128], sizes = [16, 128], strides = [1, 1]} : vector<16x512xf32> to vector<16x128xf32>
    %cst_33 = arith.constant 5.000000e-01 : f32
    %70 = vector.broadcast %cst_33 : f32 to vector<16x128xf32>
    %71 = arith.mulf %70, %69 : vector<16x128xf32>
    %72 = math.tanh %71 : vector<16x128xf32>
    %cst_34 = arith.constant 5.000000e-01 : f32
    %73 = vector.broadcast %cst_34 : f32 to vector<16x128xf32>
    %74 = arith.mulf %73, %72 : vector<16x128xf32>
    %cst_35 = arith.constant 5.000000e-01 : f32
    %75 = vector.broadcast %cst_35 : f32 to vector<16x128xf32>
    %76 = arith.addf %75, %74 : vector<16x128xf32>
    %77 = vector.extract_strided_slice %60 {offsets = [0, 256], sizes = [16, 128], strides = [1, 1]} : vector<16x512xf32> to vector<16x128xf32>
    %78 = math.tanh %77 : vector<16x128xf32>
    %79 = vector.extract_strided_slice %60 {offsets = [0, 384], sizes = [16, 128], strides = [1, 1]} : vector<16x512xf32> to vector<16x128xf32>
    %cst_36 = arith.constant 5.000000e-01 : f32
    %80 = vector.broadcast %cst_36 : f32 to vector<16x128xf32>
    %81 = arith.mulf %80, %79 : vector<16x128xf32>
    %82 = math.tanh %81 : vector<16x128xf32>
    %cst_37 = arith.constant 5.000000e-01 : f32
    %83 = vector.broadcast %cst_37 : f32 to vector<16x128xf32>
    %84 = arith.mulf %83, %82 : vector<16x128xf32>
    %cst_38 = arith.constant 5.000000e-01 : f32
    %85 = vector.broadcast %cst_38 : f32 to vector<16x128xf32>
    %86 = arith.addf %85, %84 : vector<16x128xf32>
    %87 = arith.mulf %76, %48 : vector<16x128xf32>
    %88 = arith.mulf %68, %78 : vector<16x128xf32>
    %89 = arith.addf %87, %88 : vector<16x128xf32>
    %90 = math.tanh %89 : vector<16x128xf32>
    %91 = arith.mulf %86, %90 : vector<16x128xf32>
    %92 = arith.truncf %91 : vector<16x128xf32> to vector<16x128xbf16>
    %93 = arith.index_cast %55 : i32 to index
    %c0_39 = arith.constant 0 : index
    %94 = vector.load %arg5[%93, %c0_39] : memref<256x128xbf16, #tpu.memory_space<vmem>>, vector<16x128xbf16>
    tpu.vector_store %arg5[%93, %c0_39], %92 {strides = array<i32>} : memref<256x128xbf16, #tpu.memory_space<vmem>>, vector<16x128xbf16>,
    %c2_i32 = arith.constant 2 : i32
    %c16_i32_40 = arith.constant 16 : i32
    %95 = arith.muli %c2_i32, %c16_i32_40 : i32
    %96 = tpu.assume_multiple %95, 16 : i32
    %97 = arith.index_cast %96 : i32 to index
    %c0_41 = arith.constant 0 : index
    %98 = vector.load %arg8[%97, %c0_41] : memref<256x512xf32, #tpu.memory_space<vmem>>, vector<16x512xf32>
    %99 = arith.truncf %91 : vector<16x128xf32> to vector<16x128xbf16>
    %cst_42 = arith.constant dense<0.000000e+00> : vector<16x512xf32>
    %100 = tpu.matmul %99, %10, %cst_42 {dimension_numbers = #tpu.dot_dimension_numbers<[1], [0], [0], [1], [0, 0, 1, 1], [], []>} : vector<16x128xbf16>, vector<128x512xbf16>, vector<16x512xf32> -> vector<16x512xf32>
    %101 = arith.addf %98, %100 : vector<16x512xf32>
    %102 = vector.extract_strided_slice %101 {offsets = [0, 0], sizes = [16, 128], strides = [1, 1]} : vector<16x512xf32> to vector<16x128xf32>
    %cst_43 = arith.constant 5.000000e-01 : f32
    %103 = vector.broadcast %cst_43 : f32 to vector<16x128xf32>
    %104 = arith.mulf %103, %102 : vector<16x128xf32>
    %105 = math.tanh %104 : vector<16x128xf32>
    %cst_44 = arith.constant 5.000000e-01 : f32
    %106 = vector.broadcast %cst_44 : f32 to vector<16x128xf32>
    %107 = arith.mulf %106, %105 : vector<16x128xf32>
    %cst_45 = arith.constant 5.000000e-01 : f32
    %108 = vector.broadcast %cst_45 : f32 to vector<16x128xf32>
    %109 = arith.addf %108, %107 : vector<16x128xf32>
    %110 = vector.extract_strided_slice %101 {offsets = [0, 128], sizes = [16, 128], strides = [1, 1]} : vector<16x512xf32> to vector<16x128xf32>
    %cst_46 = arith.constant 5.000000e-01 : f32
    %111 = vector.broadcast %cst_46 : f32 to vector<16x128xf32>
    %112 = arith.mulf %111, %110 : vector<16x128xf32>
    %113 = math.tanh %112 : vector<16x128xf32>
    %cst_47 = arith.constant 5.000000e-01 : f32
    %114 = vector.broadcast %cst_47 : f32 to vector<16x128xf32>
    %115 = arith.mulf %114, %113 : vector<16x128xf32>
    %cst_48 = arith.constant 5.000000e-01 : f32
    %116 = vector.broadcast %cst_48 : f32 to vector<16x128xf32>
    %117 = arith.addf %116, %115 : vector<16x128xf32>
    %118 = vector.extract_strided_slice %101 {offsets = [0, 256], sizes = [16, 128], strides = [1, 1]} : vector<16x512xf32> to vector<16x128xf32>
    %119 = math.tanh %118 : vector<16x128xf32>
    %120 = vector.extract_strided_slice %101 {offsets = [0, 384], sizes = [16, 128], strides = [1, 1]} : vector<16x512xf32> to vector<16x128xf32>
    %cst_49 = arith.constant 5.000000e-01 : f32
    %121 = vector.broadcast %cst_49 : f32 to vector<16x128xf32>
    %122 = arith.mulf %121, %120 : vector<16x128xf32>
    %123 = math.tanh %122 : vector<16x128xf32>
    %cst_50 = arith.constant 5.000000e-01 : f32
    %124 = vector.broadcast %cst_50 : f32 to vector<16x128xf32>
    %125 = arith.mulf %124, %123 : vector<16x128xf32>
    %cst_51 = arith.constant 5.000000e-01 : f32
    %126 = vector.broadcast %cst_51 : f32 to vector<16x128xf32>
    %127 = arith.addf %126, %125 : vector<16x128xf32>
    %128 = arith.mulf %117, %89 : vector<16x128xf32>
    %129 = arith.mulf %109, %119 : vector<16x128xf32>
    %130 = arith.addf %128, %129 : vector<16x128xf32>
    %131 = math.tanh %130 : vector<16x128xf32>
    %132 = arith.mulf %127, %131 : vector<16x128xf32>
    %133 = arith.truncf %132 : vector<16x128xf32> to vector<16x128xbf16>
    %134 = arith.index_cast %96 : i32 to index
    %c0_52 = arith.constant 0 : index
    %135 = vector.load %arg5[%134, %c0_52] : memref<256x128xbf16, #tpu.memory_space<vmem>>, vector<16x128xbf16>
    tpu.vector_store %arg5[%134, %c0_52], %133 {strides = array<i32>} : memref<256x128xbf16, #tpu.memory_space<vmem>>, vector<16x128xbf16>,
    %c3_i32 = arith.constant 3 : i32
    %c16_i32_53 = arith.constant 16 : i32
    %136 = arith.muli %c3_i32, %c16_i32_53 : i32
    %137 = tpu.assume_multiple %136, 16 : i32
    %138 = arith.index_cast %137 : i32 to index
    %c0_54 = arith.constant 0 : index
    %139 = vector.load %arg8[%138, %c0_54] : memref<256x512xf32, #tpu.memory_space<vmem>>, vector<16x512xf32>
    %140 = arith.truncf %132 : vector<16x128xf32> to vector<16x128xbf16>
    %cst_55 = arith.constant dense<0.000000e+00> : vector<16x512xf32>
    %141 = tpu.matmul %140, %10, %cst_55 {dimension_numbers = #tpu.dot_dimension_numbers<[1], [0], [0], [1], [0, 0, 1, 1], [], []>} : vector<16x128xbf16>, vector<128x512xbf16>, vector<16x512xf32> -> vector<16x512xf32>
    %142 = arith.addf %139, %141 : vector<16x512xf32>
    %143 = vector.extract_strided_slice %142 {offsets = [0, 0], sizes = [16, 128], strides = [1, 1]} : vector<16x512xf32> to vector<16x128xf32>
    %cst_56 = arith.constant 5.000000e-01 : f32
    %144 = vector.broadcast %cst_56 : f32 to vector<16x128xf32>
    %145 = arith.mulf %144, %143 : vector<16x128xf32>
    %146 = math.tanh %145 : vector<16x128xf32>
    %cst_57 = arith.constant 5.000000e-01 : f32
    %147 = vector.broadcast %cst_57 : f32 to vector<16x128xf32>
    %148 = arith.mulf %147, %146 : vector<16x128xf32>
    %cst_58 = arith.constant 5.000000e-01 : f32
    %149 = vector.broadcast %cst_58 : f32 to vector<16x128xf32>
    %150 = arith.addf %149, %148 : vector<16x128xf32>
    %151 = vector.extract_strided_slice %142 {offsets = [0, 128], sizes = [16, 128], strides = [1, 1]} : vector<16x512xf32> to vector<16x128xf32>
    %cst_59 = arith.constant 5.000000e-01 : f32
    %152 = vector.broadcast %cst_59 : f32 to vector<16x128xf32>
    %153 = arith.mulf %152, %151 : vector<16x128xf32>
    %154 = math.tanh %153 : vector<16x128xf32>
    %cst_60 = arith.constant 5.000000e-01 : f32
    %155 = vector.broadcast %cst_60 : f32 to vector<16x128xf32>
    %156 = arith.mulf %155, %154 : vector<16x128xf32>
    %cst_61 = arith.constant 5.000000e-01 : f32
    %157 = vector.broadcast %cst_61 : f32 to vector<16x128xf32>
    %158 = arith.addf %157, %156 : vector<16x128xf32>
    %159 = vector.extract_strided_slice %142 {offsets = [0, 256], sizes = [16, 128], strides = [1, 1]} : vector<16x512xf32> to vector<16x128xf32>
    %160 = math.tanh %159 : vector<16x128xf32>
    %161 = vector.extract_strided_slice %142 {offsets = [0, 384], sizes = [16, 128], strides = [1, 1]} : vector<16x512xf32> to vector<16x128xf32>
    %cst_62 = arith.constant 5.000000e-01 : f32
    %162 = vector.broadcast %cst_62 : f32 to vector<16x128xf32>
    %163 = arith.mulf %162, %161 : vector<16x128xf32>
    %164 = math.tanh %163 : vector<16x128xf32>
    %cst_63 = arith.constant 5.000000e-01 : f32
    %165 = vector.broadcast %cst_63 : f32 to vector<16x128xf32>
    %166 = arith.mulf %165, %164 : vector<16x128xf32>
    %cst_64 = arith.constant 5.000000e-01 : f32
    %167 = vector.broadcast %cst_64 : f32 to vector<16x128xf32>
    %168 = arith.addf %167, %166 : vector<16x128xf32>
    %169 = arith.mulf %158, %130 : vector<16x128xf32>
    %170 = arith.mulf %150, %160 : vector<16x128xf32>
    %171 = arith.addf %169, %170 : vector<16x128xf32>
    %172 = math.tanh %171 : vector<16x128xf32>
    %173 = arith.mulf %168, %172 : vector<16x128xf32>
    %174 = arith.truncf %173 : vector<16x128xf32> to vector<16x128xbf16>
    %175 = arith.index_cast %137 : i32 to index
    %c0_65 = arith.constant 0 : index
    %176 = vector.load %arg5[%175, %c0_65] : memref<256x128xbf16, #tpu.memory_space<vmem>>, vector<16x128xbf16>
    tpu.vector_store %arg5[%175, %c0_65], %174 {strides = array<i32>} : memref<256x128xbf16, #tpu.memory_space<vmem>>, vector<16x128xbf16>,
    %c4_i32 = arith.constant 4 : i32
    %c16_i32_66 = arith.constant 16 : i32
    %177 = arith.muli %c4_i32, %c16_i32_66 : i32
    %178 = tpu.assume_multiple %177, 16 : i32
    %179 = arith.index_cast %178 : i32 to index
    %c0_67 = arith.constant 0 : index
    %180 = vector.load %arg8[%179, %c0_67] : memref<256x512xf32, #tpu.memory_space<vmem>>, vector<16x512xf32>
    %181 = arith.truncf %173 : vector<16x128xf32> to vector<16x128xbf16>
    %cst_68 = arith.constant dense<0.000000e+00> : vector<16x512xf32>
    %182 = tpu.matmul %181, %10, %cst_68 {dimension_numbers = #tpu.dot_dimension_numbers<[1], [0], [0], [1], [0, 0, 1, 1], [], []>} : vector<16x128xbf16>, vector<128x512xbf16>, vector<16x512xf32> -> vector<16x512xf32>
    %183 = arith.addf %180, %182 : vector<16x512xf32>
    %184 = vector.extract_strided_slice %183 {offsets = [0, 0], sizes = [16, 128], strides = [1, 1]} : vector<16x512xf32> to vector<16x128xf32>
    %cst_69 = arith.constant 5.000000e-01 : f32
    %185 = vector.broadcast %cst_69 : f32 to vector<16x128xf32>
    %186 = arith.mulf %185, %184 : vector<16x128xf32>
    %187 = math.tanh %186 : vector<16x128xf32>
    %cst_70 = arith.constant 5.000000e-01 : f32
    %188 = vector.broadcast %cst_70 : f32 to vector<16x128xf32>
    %189 = arith.mulf %188, %187 : vector<16x128xf32>
    %cst_71 = arith.constant 5.000000e-01 : f32
    %190 = vector.broadcast %cst_71 : f32 to vector<16x128xf32>
    %191 = arith.addf %190, %189 : vector<16x128xf32>
    %192 = vector.extract_strided_slice %183 {offsets = [0, 128], sizes = [16, 128], strides = [1, 1]} : vector<16x512xf32> to vector<16x128xf32>
    %cst_72 = arith.constant 5.000000e-01 : f32
    %193 = vector.broadcast %cst_72 : f32 to vector<16x128xf32>
    %194 = arith.mulf %193, %192 : vector<16x128xf32>
    %195 = math.tanh %194 : vector<16x128xf32>
    %cst_73 = arith.constant 5.000000e-01 : f32
    %196 = vector.broadcast %cst_73 : f32 to vector<16x128xf32>
    %197 = arith.mulf %196, %195 : vector<16x128xf32>
    %cst_74 = arith.constant 5.000000e-01 : f32
    %198 = vector.broadcast %cst_74 : f32 to vector<16x128xf32>
    %199 = arith.addf %198, %197 : vector<16x128xf32>
    %200 = vector.extract_strided_slice %183 {offsets = [0, 256], sizes = [16, 128], strides = [1, 1]} : vector<16x512xf32> to vector<16x128xf32>
    %201 = math.tanh %200 : vector<16x128xf32>
    %202 = vector.extract_strided_slice %183 {offsets = [0, 384], sizes = [16, 128], strides = [1, 1]} : vector<16x512xf32> to vector<16x128xf32>
    %cst_75 = arith.constant 5.000000e-01 : f32
    %203 = vector.broadcast %cst_75 : f32 to vector<16x128xf32>
    %204 = arith.mulf %203, %202 : vector<16x128xf32>
    %205 = math.tanh %204 : vector<16x128xf32>
    %cst_76 = arith.constant 5.000000e-01 : f32
    %206 = vector.broadcast %cst_76 : f32 to vector<16x128xf32>
    %207 = arith.mulf %206, %205 : vector<16x128xf32>
    %cst_77 = arith.constant 5.000000e-01 : f32
    %208 = vector.broadcast %cst_77 : f32 to vector<16x128xf32>
    %209 = arith.addf %208, %207 : vector<16x128xf32>
    %210 = arith.mulf %199, %171 : vector<16x128xf32>
    %211 = arith.mulf %191, %201 : vector<16x128xf32>
    %212 = arith.addf %210, %211 : vector<16x128xf32>
    %213 = math.tanh %212 : vector<16x128xf32>
    %214 = arith.mulf %209, %213 : vector<16x128xf32>
    %215 = arith.truncf %214 : vector<16x128xf32> to vector<16x128xbf16>
    %216 = arith.index_cast %178 : i32 to index
    %c0_78 = arith.constant 0 : index
    %217 = vector.load %arg5[%216, %c0_78] : memref<256x128xbf16, #tpu.memory_space<vmem>>, vector<16x128xbf16>
    tpu.vector_store %arg5[%216, %c0_78], %215 {strides = array<i32>} : memref<256x128xbf16, #tpu.memory_space<vmem>>, vector<16x128xbf16>,
    %c5_i32 = arith.constant 5 : i32
    %c16_i32_79 = arith.constant 16 : i32
    %218 = arith.muli %c5_i32, %c16_i32_79 : i32
    %219 = tpu.assume_multiple %218, 16 : i32
    %220 = arith.index_cast %219 : i32 to index
    %c0_80 = arith.constant 0 : index
    %221 = vector.load %arg8[%220, %c0_80] : memref<256x512xf32, #tpu.memory_space<vmem>>, vector<16x512xf32>
    %222 = arith.truncf %214 : vector<16x128xf32> to vector<16x128xbf16>
    %cst_81 = arith.constant dense<0.000000e+00> : vector<16x512xf32>
    %223 = tpu.matmul %222, %10, %cst_81 {dimension_numbers = #tpu.dot_dimension_numbers<[1], [0], [0], [1], [0, 0, 1, 1], [], []>} : vector<16x128xbf16>, vector<128x512xbf16>, vector<16x512xf32> -> vector<16x512xf32>
    %224 = arith.addf %221, %223 : vector<16x512xf32>
    %225 = vector.extract_strided_slice %224 {offsets = [0, 0], sizes = [16, 128], strides = [1, 1]} : vector<16x512xf32> to vector<16x128xf32>
    %cst_82 = arith.constant 5.000000e-01 : f32
    %226 = vector.broadcast %cst_82 : f32 to vector<16x128xf32>
    %227 = arith.mulf %226, %225 : vector<16x128xf32>
    %228 = math.tanh %227 : vector<16x128xf32>
    %cst_83 = arith.constant 5.000000e-01 : f32
    %229 = vector.broadcast %cst_83 : f32 to vector<16x128xf32>
    %230 = arith.mulf %229, %228 : vector<16x128xf32>
    %cst_84 = arith.constant 5.000000e-01 : f32
    %231 = vector.broadcast %cst_84 : f32 to vector<16x128xf32>
    %232 = arith.addf %231, %230 : vector<16x128xf32>
    %233 = vector.extract_strided_slice %224 {offsets = [0, 128], sizes = [16, 128], strides = [1, 1]} : vector<16x512xf32> to vector<16x128xf32>
    %cst_85 = arith.constant 5.000000e-01 : f32
    %234 = vector.broadcast %cst_85 : f32 to vector<16x128xf32>
    %235 = arith.mulf %234, %233 : vector<16x128xf32>
    %236 = math.tanh %235 : vector<16x128xf32>
    %cst_86 = arith.constant 5.000000e-01 : f32
    %237 = vector.broadcast %cst_86 : f32 to vector<16x128xf32>
    %238 = arith.mulf %237, %236 : vector<16x128xf32>
    %cst_87 = arith.constant 5.000000e-01 : f32
    %239 = vector.broadcast %cst_87 : f32 to vector<16x128xf32>
    %240 = arith.addf %239, %238 : vector<16x128xf32>
    %241 = vector.extract_strided_slice %224 {offsets = [0, 256], sizes = [16, 128], strides = [1, 1]} : vector<16x512xf32> to vector<16x128xf32>
    %242 = math.tanh %241 : vector<16x128xf32>
    %243 = vector.extract_strided_slice %224 {offsets = [0, 384], sizes = [16, 128], strides = [1, 1]} : vector<16x512xf32> to vector<16x128xf32>
    %cst_88 = arith.constant 5.000000e-01 : f32
    %244 = vector.broadcast %cst_88 : f32 to vector<16x128xf32>
    %245 = arith.mulf %244, %243 : vector<16x128xf32>
    %246 = math.tanh %245 : vector<16x128xf32>
    %cst_89 = arith.constant 5.000000e-01 : f32
    %247 = vector.broadcast %cst_89 : f32 to vector<16x128xf32>
    %248 = arith.mulf %247, %246 : vector<16x128xf32>
    %cst_90 = arith.constant 5.000000e-01 : f32
    %249 = vector.broadcast %cst_90 : f32 to vector<16x128xf32>
    %250 = arith.addf %249, %248 : vector<16x128xf32>
    %251 = arith.mulf %240, %212 : vector<16x128xf32>
    %252 = arith.mulf %232, %242 : vector<16x128xf32>
    %253 = arith.addf %251, %252 : vector<16x128xf32>
    %254 = math.tanh %253 : vector<16x128xf32>
    %255 = arith.mulf %250, %254 : vector<16x128xf32>
    %256 = arith.truncf %255 : vector<16x128xf32> to vector<16x128xbf16>
    %257 = arith.index_cast %219 : i32 to index
    %c0_91 = arith.constant 0 : index
    %258 = vector.load %arg5[%257, %c0_91] : memref<256x128xbf16, #tpu.memory_space<vmem>>, vector<16x128xbf16>
    tpu.vector_store %arg5[%257, %c0_91], %256 {strides = array<i32>} : memref<256x128xbf16, #tpu.memory_space<vmem>>, vector<16x128xbf16>,
    %c6_i32 = arith.constant 6 : i32
    %c16_i32_92 = arith.constant 16 : i32
    %259 = arith.muli %c6_i32, %c16_i32_92 : i32
    %260 = tpu.assume_multiple %259, 16 : i32
    %261 = arith.index_cast %260 : i32 to index
    %c0_93 = arith.constant 0 : index
    %262 = vector.load %arg8[%261, %c0_93] : memref<256x512xf32, #tpu.memory_space<vmem>>, vector<16x512xf32>
    %263 = arith.truncf %255 : vector<16x128xf32> to vector<16x128xbf16>
    %cst_94 = arith.constant dense<0.000000e+00> : vector<16x512xf32>
    %264 = tpu.matmul %263, %10, %cst_94 {dimension_numbers = #tpu.dot_dimension_numbers<[1], [0], [0], [1], [0, 0, 1, 1], [], []>} : vector<16x128xbf16>, vector<128x512xbf16>, vector<16x512xf32> -> vector<16x512xf32>
    %265 = arith.addf %262, %264 : vector<16x512xf32>
    %266 = vector.extract_strided_slice %265 {offsets = [0, 0], sizes = [16, 128], strides = [1, 1]} : vector<16x512xf32> to vector<16x128xf32>
    %cst_95 = arith.constant 5.000000e-01 : f32
    %267 = vector.broadcast %cst_95 : f32 to vector<16x128xf32>
    %268 = arith.mulf %267, %266 : vector<16x128xf32>
    %269 = math.tanh %268 : vector<16x128xf32>
    %cst_96 = arith.constant 5.000000e-01 : f32
    %270 = vector.broadcast %cst_96 : f32 to vector<16x128xf32>
    %271 = arith.mulf %270, %269 : vector<16x128xf32>
    %cst_97 = arith.constant 5.000000e-01 : f32
    %272 = vector.broadcast %cst_97 : f32 to vector<16x128xf32>
    %273 = arith.addf %272, %271 : vector<16x128xf32>
    %274 = vector.extract_strided_slice %265 {offsets = [0, 128], sizes = [16, 128], strides = [1, 1]} : vector<16x512xf32> to vector<16x128xf32>
    %cst_98 = arith.constant 5.000000e-01 : f32
    %275 = vector.broadcast %cst_98 : f32 to vector<16x128xf32>
    %276 = arith.mulf %275, %274 : vector<16x128xf32>
    %277 = math.tanh %276 : vector<16x128xf32>
    %cst_99 = arith.constant 5.000000e-01 : f32
    %278 = vector.broadcast %cst_99 : f32 to vector<16x128xf32>
    %279 = arith.mulf %278, %277 : vector<16x128xf32>
    %cst_100 = arith.constant 5.000000e-01 : f32
    %280 = vector.broadcast %cst_100 : f32 to vector<16x128xf32>
    %281 = arith.addf %280, %279 : vector<16x128xf32>
    %282 = vector.extract_strided_slice %265 {offsets = [0, 256], sizes = [16, 128], strides = [1, 1]} : vector<16x512xf32> to vector<16x128xf32>
    %283 = math.tanh %282 : vector<16x128xf32>
    %284 = vector.extract_strided_slice %265 {offsets = [0, 384], sizes = [16, 128], strides = [1, 1]} : vector<16x512xf32> to vector<16x128xf32>
    %cst_101 = arith.constant 5.000000e-01 : f32
    %285 = vector.broadcast %cst_101 : f32 to vector<16x128xf32>
    %286 = arith.mulf %285, %284 : vector<16x128xf32>
    %287 = math.tanh %286 : vector<16x128xf32>
    %cst_102 = arith.constant 5.000000e-01 : f32
    %288 = vector.broadcast %cst_102 : f32 to vector<16x128xf32>
    %289 = arith.mulf %288, %287 : vector<16x128xf32>
    %cst_103 = arith.constant 5.000000e-01 : f32
    %290 = vector.broadcast %cst_103 : f32 to vector<16x128xf32>
    %291 = arith.addf %290, %289 : vector<16x128xf32>
    %292 = arith.mulf %281, %253 : vector<16x128xf32>
    %293 = arith.mulf %273, %283 : vector<16x128xf32>
    %294 = arith.addf %292, %293 : vector<16x128xf32>
    %295 = math.tanh %294 : vector<16x128xf32>
    %296 = arith.mulf %291, %295 : vector<16x128xf32>
    %297 = arith.truncf %296 : vector<16x128xf32> to vector<16x128xbf16>
    %298 = arith.index_cast %260 : i32 to index
    %c0_104 = arith.constant 0 : index
    %299 = vector.load %arg5[%298, %c0_104] : memref<256x128xbf16, #tpu.memory_space<vmem>>, vector<16x128xbf16>
    tpu.vector_store %arg5[%298, %c0_104], %297 {strides = array<i32>} : memref<256x128xbf16, #tpu.memory_space<vmem>>, vector<16x128xbf16>,
    %c7_i32 = arith.constant 7 : i32
    %c16_i32_105 = arith.constant 16 : i32
    %300 = arith.muli %c7_i32, %c16_i32_105 : i32
    %301 = tpu.assume_multiple %300, 16 : i32
    %302 = arith.index_cast %301 : i32 to index
    %c0_106 = arith.constant 0 : index
    %303 = vector.load %arg8[%302, %c0_106] : memref<256x512xf32, #tpu.memory_space<vmem>>, vector<16x512xf32>
    %304 = arith.truncf %296 : vector<16x128xf32> to vector<16x128xbf16>
    %cst_107 = arith.constant dense<0.000000e+00> : vector<16x512xf32>
    %305 = tpu.matmul %304, %10, %cst_107 {dimension_numbers = #tpu.dot_dimension_numbers<[1], [0], [0], [1], [0, 0, 1, 1], [], []>} : vector<16x128xbf16>, vector<128x512xbf16>, vector<16x512xf32> -> vector<16x512xf32>
    %306 = arith.addf %303, %305 : vector<16x512xf32>
    %307 = vector.extract_strided_slice %306 {offsets = [0, 0], sizes = [16, 128], strides = [1, 1]} : vector<16x512xf32> to vector<16x128xf32>
    %cst_108 = arith.constant 5.000000e-01 : f32
    %308 = vector.broadcast %cst_108 : f32 to vector<16x128xf32>
    %309 = arith.mulf %308, %307 : vector<16x128xf32>
    %310 = math.tanh %309 : vector<16x128xf32>
    %cst_109 = arith.constant 5.000000e-01 : f32
    %311 = vector.broadcast %cst_109 : f32 to vector<16x128xf32>
    %312 = arith.mulf %311, %310 : vector<16x128xf32>
    %cst_110 = arith.constant 5.000000e-01 : f32
    %313 = vector.broadcast %cst_110 : f32 to vector<16x128xf32>
    %314 = arith.addf %313, %312 : vector<16x128xf32>
    %315 = vector.extract_strided_slice %306 {offsets = [0, 128], sizes = [16, 128], strides = [1, 1]} : vector<16x512xf32> to vector<16x128xf32>
    %cst_111 = arith.constant 5.000000e-01 : f32
    %316 = vector.broadcast %cst_111 : f32 to vector<16x128xf32>
    %317 = arith.mulf %316, %315 : vector<16x128xf32>
    %318 = math.tanh %317 : vector<16x128xf32>
    %cst_112 = arith.constant 5.000000e-01 : f32
    %319 = vector.broadcast %cst_112 : f32 to vector<16x128xf32>
    %320 = arith.mulf %319, %318 : vector<16x128xf32>
    %cst_113 = arith.constant 5.000000e-01 : f32
    %321 = vector.broadcast %cst_113 : f32 to vector<16x128xf32>
    %322 = arith.addf %321, %320 : vector<16x128xf32>
    %323 = vector.extract_strided_slice %306 {offsets = [0, 256], sizes = [16, 128], strides = [1, 1]} : vector<16x512xf32> to vector<16x128xf32>
    %324 = math.tanh %323 : vector<16x128xf32>
    %325 = vector.extract_strided_slice %306 {offsets = [0, 384], sizes = [16, 128], strides = [1, 1]} : vector<16x512xf32> to vector<16x128xf32>
    %cst_114 = arith.constant 5.000000e-01 : f32
    %326 = vector.broadcast %cst_114 : f32 to vector<16x128xf32>
    %327 = arith.mulf %326, %325 : vector<16x128xf32>
    %328 = math.tanh %327 : vector<16x128xf32>
    %cst_115 = arith.constant 5.000000e-01 : f32
    %329 = vector.broadcast %cst_115 : f32 to vector<16x128xf32>
    %330 = arith.mulf %329, %328 : vector<16x128xf32>
    %cst_116 = arith.constant 5.000000e-01 : f32
    %331 = vector.broadcast %cst_116 : f32 to vector<16x128xf32>
    %332 = arith.addf %331, %330 : vector<16x128xf32>
    %333 = arith.mulf %322, %294 : vector<16x128xf32>
    %334 = arith.mulf %314, %324 : vector<16x128xf32>
    %335 = arith.addf %333, %334 : vector<16x128xf32>
    %336 = math.tanh %335 : vector<16x128xf32>
    %337 = arith.mulf %332, %336 : vector<16x128xf32>
    %338 = arith.truncf %337 : vector<16x128xf32> to vector<16x128xbf16>
    %339 = arith.index_cast %301 : i32 to index
    %c0_117 = arith.constant 0 : index
    %340 = vector.load %arg5[%339, %c0_117] : memref<256x128xbf16, #tpu.memory_space<vmem>>, vector<16x128xbf16>
    tpu.vector_store %arg5[%339, %c0_117], %338 {strides = array<i32>} : memref<256x128xbf16, #tpu.memory_space<vmem>>, vector<16x128xbf16>,
    %c8_i32 = arith.constant 8 : i32
    %c16_i32_118 = arith.constant 16 : i32
    %341 = arith.muli %c8_i32, %c16_i32_118 : i32
    %342 = tpu.assume_multiple %341, 16 : i32
    %343 = arith.index_cast %342 : i32 to index
    %c0_119 = arith.constant 0 : index
    %344 = vector.load %arg8[%343, %c0_119] : memref<256x512xf32, #tpu.memory_space<vmem>>, vector<16x512xf32>
    %345 = arith.truncf %337 : vector<16x128xf32> to vector<16x128xbf16>
    %cst_120 = arith.constant dense<0.000000e+00> : vector<16x512xf32>
    %346 = tpu.matmul %345, %10, %cst_120 {dimension_numbers = #tpu.dot_dimension_numbers<[1], [0], [0], [1], [0, 0, 1, 1], [], []>} : vector<16x128xbf16>, vector<128x512xbf16>, vector<16x512xf32> -> vector<16x512xf32>
    %347 = arith.addf %344, %346 : vector<16x512xf32>
    %348 = vector.extract_strided_slice %347 {offsets = [0, 0], sizes = [16, 128], strides = [1, 1]} : vector<16x512xf32> to vector<16x128xf32>
    %cst_121 = arith.constant 5.000000e-01 : f32
    %349 = vector.broadcast %cst_121 : f32 to vector<16x128xf32>
    %350 = arith.mulf %349, %348 : vector<16x128xf32>
    %351 = math.tanh %350 : vector<16x128xf32>
    %cst_122 = arith.constant 5.000000e-01 : f32
    %352 = vector.broadcast %cst_122 : f32 to vector<16x128xf32>
    %353 = arith.mulf %352, %351 : vector<16x128xf32>
    %cst_123 = arith.constant 5.000000e-01 : f32
    %354 = vector.broadcast %cst_123 : f32 to vector<16x128xf32>
    %355 = arith.addf %354, %353 : vector<16x128xf32>
    %356 = vector.extract_strided_slice %347 {offsets = [0, 128], sizes = [16, 128], strides = [1, 1]} : vector<16x512xf32> to vector<16x128xf32>
    %cst_124 = arith.constant 5.000000e-01 : f32
    %357 = vector.broadcast %cst_124 : f32 to vector<16x128xf32>
    %358 = arith.mulf %357, %356 : vector<16x128xf32>
    %359 = math.tanh %358 : vector<16x128xf32>
    %cst_125 = arith.constant 5.000000e-01 : f32
    %360 = vector.broadcast %cst_125 : f32 to vector<16x128xf32>
    %361 = arith.mulf %360, %359 : vector<16x128xf32>
    %cst_126 = arith.constant 5.000000e-01 : f32
    %362 = vector.broadcast %cst_126 : f32 to vector<16x128xf32>
    %363 = arith.addf %362, %361 : vector<16x128xf32>
    %364 = vector.extract_strided_slice %347 {offsets = [0, 256], sizes = [16, 128], strides = [1, 1]} : vector<16x512xf32> to vector<16x128xf32>
    %365 = math.tanh %364 : vector<16x128xf32>
    %366 = vector.extract_strided_slice %347 {offsets = [0, 384], sizes = [16, 128], strides = [1, 1]} : vector<16x512xf32> to vector<16x128xf32>
    %cst_127 = arith.constant 5.000000e-01 : f32
    %367 = vector.broadcast %cst_127 : f32 to vector<16x128xf32>
    %368 = arith.mulf %367, %366 : vector<16x128xf32>
    %369 = math.tanh %368 : vector<16x128xf32>
    %cst_128 = arith.constant 5.000000e-01 : f32
    %370 = vector.broadcast %cst_128 : f32 to vector<16x128xf32>
    %371 = arith.mulf %370, %369 : vector<16x128xf32>
    %cst_129 = arith.constant 5.000000e-01 : f32
    %372 = vector.broadcast %cst_129 : f32 to vector<16x128xf32>
    %373 = arith.addf %372, %371 : vector<16x128xf32>
    %374 = arith.mulf %363, %335 : vector<16x128xf32>
    %375 = arith.mulf %355, %365 : vector<16x128xf32>
    %376 = arith.addf %374, %375 : vector<16x128xf32>
    %377 = math.tanh %376 : vector<16x128xf32>
    %378 = arith.mulf %373, %377 : vector<16x128xf32>
    %379 = arith.truncf %378 : vector<16x128xf32> to vector<16x128xbf16>
    %380 = arith.index_cast %342 : i32 to index
    %c0_130 = arith.constant 0 : index
    %381 = vector.load %arg5[%380, %c0_130] : memref<256x128xbf16, #tpu.memory_space<vmem>>, vector<16x128xbf16>
    tpu.vector_store %arg5[%380, %c0_130], %379 {strides = array<i32>} : memref<256x128xbf16, #tpu.memory_space<vmem>>, vector<16x128xbf16>,
    %c9_i32 = arith.constant 9 : i32
    %c16_i32_131 = arith.constant 16 : i32
    %382 = arith.muli %c9_i32, %c16_i32_131 : i32
    %383 = tpu.assume_multiple %382, 16 : i32
    %384 = arith.index_cast %383 : i32 to index
    %c0_132 = arith.constant 0 : index
    %385 = vector.load %arg8[%384, %c0_132] : memref<256x512xf32, #tpu.memory_space<vmem>>, vector<16x512xf32>
    %386 = arith.truncf %378 : vector<16x128xf32> to vector<16x128xbf16>
    %cst_133 = arith.constant dense<0.000000e+00> : vector<16x512xf32>
    %387 = tpu.matmul %386, %10, %cst_133 {dimension_numbers = #tpu.dot_dimension_numbers<[1], [0], [0], [1], [0, 0, 1, 1], [], []>} : vector<16x128xbf16>, vector<128x512xbf16>, vector<16x512xf32> -> vector<16x512xf32>
    %388 = arith.addf %385, %387 : vector<16x512xf32>
    %389 = vector.extract_strided_slice %388 {offsets = [0, 0], sizes = [16, 128], strides = [1, 1]} : vector<16x512xf32> to vector<16x128xf32>
    %cst_134 = arith.constant 5.000000e-01 : f32
    %390 = vector.broadcast %cst_134 : f32 to vector<16x128xf32>
    %391 = arith.mulf %390, %389 : vector<16x128xf32>
    %392 = math.tanh %391 : vector<16x128xf32>
    %cst_135 = arith.constant 5.000000e-01 : f32
    %393 = vector.broadcast %cst_135 : f32 to vector<16x128xf32>
    %394 = arith.mulf %393, %392 : vector<16x128xf32>
    %cst_136 = arith.constant 5.000000e-01 : f32
    %395 = vector.broadcast %cst_136 : f32 to vector<16x128xf32>
    %396 = arith.addf %395, %394 : vector<16x128xf32>
    %397 = vector.extract_strided_slice %388 {offsets = [0, 128], sizes = [16, 128], strides = [1, 1]} : vector<16x512xf32> to vector<16x128xf32>
    %cst_137 = arith.constant 5.000000e-01 : f32
    %398 = vector.broadcast %cst_137 : f32 to vector<16x128xf32>
    %399 = arith.mulf %398, %397 : vector<16x128xf32>
    %400 = math.tanh %399 : vector<16x128xf32>
    %cst_138 = arith.constant 5.000000e-01 : f32
    %401 = vector.broadcast %cst_138 : f32 to vector<16x128xf32>
    %402 = arith.mulf %401, %400 : vector<16x128xf32>
    %cst_139 = arith.constant 5.000000e-01 : f32
    %403 = vector.broadcast %cst_139 : f32 to vector<16x128xf32>
    %404 = arith.addf %403, %402 : vector<16x128xf32>
    %405 = vector.extract_strided_slice %388 {offsets = [0, 256], sizes = [16, 128], strides = [1, 1]} : vector<16x512xf32> to vector<16x128xf32>
    %406 = math.tanh %405 : vector<16x128xf32>
    %407 = vector.extract_strided_slice %388 {offsets = [0, 384], sizes = [16, 128], strides = [1, 1]} : vector<16x512xf32> to vector<16x128xf32>
    %cst_140 = arith.constant 5.000000e-01 : f32
    %408 = vector.broadcast %cst_140 : f32 to vector<16x128xf32>
    %409 = arith.mulf %408, %407 : vector<16x128xf32>
    %410 = math.tanh %409 : vector<16x128xf32>
    %cst_141 = arith.constant 5.000000e-01 : f32
    %411 = vector.broadcast %cst_141 : f32 to vector<16x128xf32>
    %412 = arith.mulf %411, %410 : vector<16x128xf32>
    %cst_142 = arith.constant 5.000000e-01 : f32
    %413 = vector.broadcast %cst_142 : f32 to vector<16x128xf32>
    %414 = arith.addf %413, %412 : vector<16x128xf32>
    %415 = arith.mulf %404, %376 : vector<16x128xf32>
    %416 = arith.mulf %396, %406 : vector<16x128xf32>
    %417 = arith.addf %415, %416 : vector<16x128xf32>
    %418 = math.tanh %417 : vector<16x128xf32>
    %419 = arith.mulf %414, %418 : vector<16x128xf32>
    %420 = arith.truncf %419 : vector<16x128xf32> to vector<16x128xbf16>
    %421 = arith.index_cast %383 : i32 to index
    %c0_143 = arith.constant 0 : index
    %422 = vector.load %arg5[%421, %c0_143] : memref<256x128xbf16, #tpu.memory_space<vmem>>, vector<16x128xbf16>
    tpu.vector_store %arg5[%421, %c0_143], %420 {strides = array<i32>} : memref<256x128xbf16, #tpu.memory_space<vmem>>, vector<16x128xbf16>,
    %c10_i32 = arith.constant 10 : i32
    %c16_i32_144 = arith.constant 16 : i32
    %423 = arith.muli %c10_i32, %c16_i32_144 : i32
    %424 = tpu.assume_multiple %423, 16 : i32
    %425 = arith.index_cast %424 : i32 to index
    %c0_145 = arith.constant 0 : index
    %426 = vector.load %arg8[%425, %c0_145] : memref<256x512xf32, #tpu.memory_space<vmem>>, vector<16x512xf32>
    %427 = arith.truncf %419 : vector<16x128xf32> to vector<16x128xbf16>
    %cst_146 = arith.constant dense<0.000000e+00> : vector<16x512xf32>
    %428 = tpu.matmul %427, %10, %cst_146 {dimension_numbers = #tpu.dot_dimension_numbers<[1], [0], [0], [1], [0, 0, 1, 1], [], []>} : vector<16x128xbf16>, vector<128x512xbf16>, vector<16x512xf32> -> vector<16x512xf32>
    %429 = arith.addf %426, %428 : vector<16x512xf32>
    %430 = vector.extract_strided_slice %429 {offsets = [0, 0], sizes = [16, 128], strides = [1, 1]} : vector<16x512xf32> to vector<16x128xf32>
    %cst_147 = arith.constant 5.000000e-01 : f32
    %431 = vector.broadcast %cst_147 : f32 to vector<16x128xf32>
    %432 = arith.mulf %431, %430 : vector<16x128xf32>
    %433 = math.tanh %432 : vector<16x128xf32>
    %cst_148 = arith.constant 5.000000e-01 : f32
    %434 = vector.broadcast %cst_148 : f32 to vector<16x128xf32>
    %435 = arith.mulf %434, %433 : vector<16x128xf32>
    %cst_149 = arith.constant 5.000000e-01 : f32
    %436 = vector.broadcast %cst_149 : f32 to vector<16x128xf32>
    %437 = arith.addf %436, %435 : vector<16x128xf32>
    %438 = vector.extract_strided_slice %429 {offsets = [0, 128], sizes = [16, 128], strides = [1, 1]} : vector<16x512xf32> to vector<16x128xf32>
    %cst_150 = arith.constant 5.000000e-01 : f32
    %439 = vector.broadcast %cst_150 : f32 to vector<16x128xf32>
    %440 = arith.mulf %439, %438 : vector<16x128xf32>
    %441 = math.tanh %440 : vector<16x128xf32>
    %cst_151 = arith.constant 5.000000e-01 : f32
    %442 = vector.broadcast %cst_151 : f32 to vector<16x128xf32>
    %443 = arith.mulf %442, %441 : vector<16x128xf32>
    %cst_152 = arith.constant 5.000000e-01 : f32
    %444 = vector.broadcast %cst_152 : f32 to vector<16x128xf32>
    %445 = arith.addf %444, %443 : vector<16x128xf32>
    %446 = vector.extract_strided_slice %429 {offsets = [0, 256], sizes = [16, 128], strides = [1, 1]} : vector<16x512xf32> to vector<16x128xf32>
    %447 = math.tanh %446 : vector<16x128xf32>
    %448 = vector.extract_strided_slice %429 {offsets = [0, 384], sizes = [16, 128], strides = [1, 1]} : vector<16x512xf32> to vector<16x128xf32>
    %cst_153 = arith.constant 5.000000e-01 : f32
    %449 = vector.broadcast %cst_153 : f32 to vector<16x128xf32>
    %450 = arith.mulf %449, %448 : vector<16x128xf32>
    %451 = math.tanh %450 : vector<16x128xf32>
    %cst_154 = arith.constant 5.000000e-01 : f32
    %452 = vector.broadcast %cst_154 : f32 to vector<16x128xf32>
    %453 = arith.mulf %452, %451 : vector<16x128xf32>
    %cst_155 = arith.constant 5.000000e-01 : f32
    %454 = vector.broadcast %cst_155 : f32 to vector<16x128xf32>
    %455 = arith.addf %454, %453 : vector<16x128xf32>
    %456 = arith.mulf %445, %417 : vector<16x128xf32>
    %457 = arith.mulf %437, %447 : vector<16x128xf32>
    %458 = arith.addf %456, %457 : vector<16x128xf32>
    %459 = math.tanh %458 : vector<16x128xf32>
    %460 = arith.mulf %455, %459 : vector<16x128xf32>
    %461 = arith.truncf %460 : vector<16x128xf32> to vector<16x128xbf16>
    %462 = arith.index_cast %424 : i32 to index
    %c0_156 = arith.constant 0 : index
    %463 = vector.load %arg5[%462, %c0_156] : memref<256x128xbf16, #tpu.memory_space<vmem>>, vector<16x128xbf16>
    tpu.vector_store %arg5[%462, %c0_156], %461 {strides = array<i32>} : memref<256x128xbf16, #tpu.memory_space<vmem>>, vector<16x128xbf16>,
    %c11_i32 = arith.constant 11 : i32
    %c16_i32_157 = arith.constant 16 : i32
    %464 = arith.muli %c11_i32, %c16_i32_157 : i32
    %465 = tpu.assume_multiple %464, 16 : i32
    %466 = arith.index_cast %465 : i32 to index
    %c0_158 = arith.constant 0 : index
    %467 = vector.load %arg8[%466, %c0_158] : memref<256x512xf32, #tpu.memory_space<vmem>>, vector<16x512xf32>
    %468 = arith.truncf %460 : vector<16x128xf32> to vector<16x128xbf16>
    %cst_159 = arith.constant dense<0.000000e+00> : vector<16x512xf32>
    %469 = tpu.matmul %468, %10, %cst_159 {dimension_numbers = #tpu.dot_dimension_numbers<[1], [0], [0], [1], [0, 0, 1, 1], [], []>} : vector<16x128xbf16>, vector<128x512xbf16>, vector<16x512xf32> -> vector<16x512xf32>
    %470 = arith.addf %467, %469 : vector<16x512xf32>
    %471 = vector.extract_strided_slice %470 {offsets = [0, 0], sizes = [16, 128], strides = [1, 1]} : vector<16x512xf32> to vector<16x128xf32>
    %cst_160 = arith.constant 5.000000e-01 : f32
    %472 = vector.broadcast %cst_160 : f32 to vector<16x128xf32>
    %473 = arith.mulf %472, %471 : vector<16x128xf32>
    %474 = math.tanh %473 : vector<16x128xf32>
    %cst_161 = arith.constant 5.000000e-01 : f32
    %475 = vector.broadcast %cst_161 : f32 to vector<16x128xf32>
    %476 = arith.mulf %475, %474 : vector<16x128xf32>
    %cst_162 = arith.constant 5.000000e-01 : f32
    %477 = vector.broadcast %cst_162 : f32 to vector<16x128xf32>
    %478 = arith.addf %477, %476 : vector<16x128xf32>
    %479 = vector.extract_strided_slice %470 {offsets = [0, 128], sizes = [16, 128], strides = [1, 1]} : vector<16x512xf32> to vector<16x128xf32>
    %cst_163 = arith.constant 5.000000e-01 : f32
    %480 = vector.broadcast %cst_163 : f32 to vector<16x128xf32>
    %481 = arith.mulf %480, %479 : vector<16x128xf32>
    %482 = math.tanh %481 : vector<16x128xf32>
    %cst_164 = arith.constant 5.000000e-01 : f32
    %483 = vector.broadcast %cst_164 : f32 to vector<16x128xf32>
    %484 = arith.mulf %483, %482 : vector<16x128xf32>
    %cst_165 = arith.constant 5.000000e-01 : f32
    %485 = vector.broadcast %cst_165 : f32 to vector<16x128xf32>
    %486 = arith.addf %485, %484 : vector<16x128xf32>
    %487 = vector.extract_strided_slice %470 {offsets = [0, 256], sizes = [16, 128], strides = [1, 1]} : vector<16x512xf32> to vector<16x128xf32>
    %488 = math.tanh %487 : vector<16x128xf32>
    %489 = vector.extract_strided_slice %470 {offsets = [0, 384], sizes = [16, 128], strides = [1, 1]} : vector<16x512xf32> to vector<16x128xf32>
    %cst_166 = arith.constant 5.000000e-01 : f32
    %490 = vector.broadcast %cst_166 : f32 to vector<16x128xf32>
    %491 = arith.mulf %490, %489 : vector<16x128xf32>
    %492 = math.tanh %491 : vector<16x128xf32>
    %cst_167 = arith.constant 5.000000e-01 : f32
    %493 = vector.broadcast %cst_167 : f32 to vector<16x128xf32>
    %494 = arith.mulf %493, %492 : vector<16x128xf32>
    %cst_168 = arith.constant 5.000000e-01 : f32
    %495 = vector.broadcast %cst_168 : f32 to vector<16x128xf32>
    %496 = arith.addf %495, %494 : vector<16x128xf32>
    %497 = arith.mulf %486, %458 : vector<16x128xf32>
    %498 = arith.mulf %478, %488 : vector<16x128xf32>
    %499 = arith.addf %497, %498 : vector<16x128xf32>
    %500 = math.tanh %499 : vector<16x128xf32>
    %501 = arith.mulf %496, %500 : vector<16x128xf32>
    %502 = arith.truncf %501 : vector<16x128xf32> to vector<16x128xbf16>
    %503 = arith.index_cast %465 : i32 to index
    %c0_169 = arith.constant 0 : index
    %504 = vector.load %arg5[%503, %c0_169] : memref<256x128xbf16, #tpu.memory_space<vmem>>, vector<16x128xbf16>
    tpu.vector_store %arg5[%503, %c0_169], %502 {strides = array<i32>} : memref<256x128xbf16, #tpu.memory_space<vmem>>, vector<16x128xbf16>,
    %c12_i32 = arith.constant 12 : i32
    %c16_i32_170 = arith.constant 16 : i32
    %505 = arith.muli %c12_i32, %c16_i32_170 : i32
    %506 = tpu.assume_multiple %505, 16 : i32
    %507 = arith.index_cast %506 : i32 to index
    %c0_171 = arith.constant 0 : index
    %508 = vector.load %arg8[%507, %c0_171] : memref<256x512xf32, #tpu.memory_space<vmem>>, vector<16x512xf32>
    %509 = arith.truncf %501 : vector<16x128xf32> to vector<16x128xbf16>
    %cst_172 = arith.constant dense<0.000000e+00> : vector<16x512xf32>
    %510 = tpu.matmul %509, %10, %cst_172 {dimension_numbers = #tpu.dot_dimension_numbers<[1], [0], [0], [1], [0, 0, 1, 1], [], []>} : vector<16x128xbf16>, vector<128x512xbf16>, vector<16x512xf32> -> vector<16x512xf32>
    %511 = arith.addf %508, %510 : vector<16x512xf32>
    %512 = vector.extract_strided_slice %511 {offsets = [0, 0], sizes = [16, 128], strides = [1, 1]} : vector<16x512xf32> to vector<16x128xf32>
    %cst_173 = arith.constant 5.000000e-01 : f32
    %513 = vector.broadcast %cst_173 : f32 to vector<16x128xf32>
    %514 = arith.mulf %513, %512 : vector<16x128xf32>
    %515 = math.tanh %514 : vector<16x128xf32>
    %cst_174 = arith.constant 5.000000e-01 : f32
    %516 = vector.broadcast %cst_174 : f32 to vector<16x128xf32>
    %517 = arith.mulf %516, %515 : vector<16x128xf32>
    %cst_175 = arith.constant 5.000000e-01 : f32
    %518 = vector.broadcast %cst_175 : f32 to vector<16x128xf32>
    %519 = arith.addf %518, %517 : vector<16x128xf32>
    %520 = vector.extract_strided_slice %511 {offsets = [0, 128], sizes = [16, 128], strides = [1, 1]} : vector<16x512xf32> to vector<16x128xf32>
    %cst_176 = arith.constant 5.000000e-01 : f32
    %521 = vector.broadcast %cst_176 : f32 to vector<16x128xf32>
    %522 = arith.mulf %521, %520 : vector<16x128xf32>
    %523 = math.tanh %522 : vector<16x128xf32>
    %cst_177 = arith.constant 5.000000e-01 : f32
    %524 = vector.broadcast %cst_177 : f32 to vector<16x128xf32>
    %525 = arith.mulf %524, %523 : vector<16x128xf32>
    %cst_178 = arith.constant 5.000000e-01 : f32
    %526 = vector.broadcast %cst_178 : f32 to vector<16x128xf32>
    %527 = arith.addf %526, %525 : vector<16x128xf32>
    %528 = vector.extract_strided_slice %511 {offsets = [0, 256], sizes = [16, 128], strides = [1, 1]} : vector<16x512xf32> to vector<16x128xf32>
    %529 = math.tanh %528 : vector<16x128xf32>
    %530 = vector.extract_strided_slice %511 {offsets = [0, 384], sizes = [16, 128], strides = [1, 1]} : vector<16x512xf32> to vector<16x128xf32>
    %cst_179 = arith.constant 5.000000e-01 : f32
    %531 = vector.broadcast %cst_179 : f32 to vector<16x128xf32>
    %532 = arith.mulf %531, %530 : vector<16x128xf32>
    %533 = math.tanh %532 : vector<16x128xf32>
    %cst_180 = arith.constant 5.000000e-01 : f32
    %534 = vector.broadcast %cst_180 : f32 to vector<16x128xf32>
    %535 = arith.mulf %534, %533 : vector<16x128xf32>
    %cst_181 = arith.constant 5.000000e-01 : f32
    %536 = vector.broadcast %cst_181 : f32 to vector<16x128xf32>
    %537 = arith.addf %536, %535 : vector<16x128xf32>
    %538 = arith.mulf %527, %499 : vector<16x128xf32>
    %539 = arith.mulf %519, %529 : vector<16x128xf32>
    %540 = arith.addf %538, %539 : vector<16x128xf32>
    %541 = math.tanh %540 : vector<16x128xf32>
    %542 = arith.mulf %537, %541 : vector<16x128xf32>
    %543 = arith.truncf %542 : vector<16x128xf32> to vector<16x128xbf16>
    %544 = arith.index_cast %506 : i32 to index
    %c0_182 = arith.constant 0 : index
    %545 = vector.load %arg5[%544, %c0_182] : memref<256x128xbf16, #tpu.memory_space<vmem>>, vector<16x128xbf16>
    tpu.vector_store %arg5[%544, %c0_182], %543 {strides = array<i32>} : memref<256x128xbf16, #tpu.memory_space<vmem>>, vector<16x128xbf16>,
    %c13_i32 = arith.constant 13 : i32
    %c16_i32_183 = arith.constant 16 : i32
    %546 = arith.muli %c13_i32, %c16_i32_183 : i32
    %547 = tpu.assume_multiple %546, 16 : i32
    %548 = arith.index_cast %547 : i32 to index
    %c0_184 = arith.constant 0 : index
    %549 = vector.load %arg8[%548, %c0_184] : memref<256x512xf32, #tpu.memory_space<vmem>>, vector<16x512xf32>
    %550 = arith.truncf %542 : vector<16x128xf32> to vector<16x128xbf16>
    %cst_185 = arith.constant dense<0.000000e+00> : vector<16x512xf32>
    %551 = tpu.matmul %550, %10, %cst_185 {dimension_numbers = #tpu.dot_dimension_numbers<[1], [0], [0], [1], [0, 0, 1, 1], [], []>} : vector<16x128xbf16>, vector<128x512xbf16>, vector<16x512xf32> -> vector<16x512xf32>
    %552 = arith.addf %549, %551 : vector<16x512xf32>
    %553 = vector.extract_strided_slice %552 {offsets = [0, 0], sizes = [16, 128], strides = [1, 1]} : vector<16x512xf32> to vector<16x128xf32>
    %cst_186 = arith.constant 5.000000e-01 : f32
    %554 = vector.broadcast %cst_186 : f32 to vector<16x128xf32>
    %555 = arith.mulf %554, %553 : vector<16x128xf32>
    %556 = math.tanh %555 : vector<16x128xf32>
    %cst_187 = arith.constant 5.000000e-01 : f32
    %557 = vector.broadcast %cst_187 : f32 to vector<16x128xf32>
    %558 = arith.mulf %557, %556 : vector<16x128xf32>
    %cst_188 = arith.constant 5.000000e-01 : f32
    %559 = vector.broadcast %cst_188 : f32 to vector<16x128xf32>
    %560 = arith.addf %559, %558 : vector<16x128xf32>
    %561 = vector.extract_strided_slice %552 {offsets = [0, 128], sizes = [16, 128], strides = [1, 1]} : vector<16x512xf32> to vector<16x128xf32>
    %cst_189 = arith.constant 5.000000e-01 : f32
    %562 = vector.broadcast %cst_189 : f32 to vector<16x128xf32>
    %563 = arith.mulf %562, %561 : vector<16x128xf32>
    %564 = math.tanh %563 : vector<16x128xf32>
    %cst_190 = arith.constant 5.000000e-01 : f32
    %565 = vector.broadcast %cst_190 : f32 to vector<16x128xf32>
    %566 = arith.mulf %565, %564 : vector<16x128xf32>
    %cst_191 = arith.constant 5.000000e-01 : f32
    %567 = vector.broadcast %cst_191 : f32 to vector<16x128xf32>
    %568 = arith.addf %567, %566 : vector<16x128xf32>
    %569 = vector.extract_strided_slice %552 {offsets = [0, 256], sizes = [16, 128], strides = [1, 1]} : vector<16x512xf32> to vector<16x128xf32>
    %570 = math.tanh %569 : vector<16x128xf32>
    %571 = vector.extract_strided_slice %552 {offsets = [0, 384], sizes = [16, 128], strides = [1, 1]} : vector<16x512xf32> to vector<16x128xf32>
    %cst_192 = arith.constant 5.000000e-01 : f32
    %572 = vector.broadcast %cst_192 : f32 to vector<16x128xf32>
    %573 = arith.mulf %572, %571 : vector<16x128xf32>
    %574 = math.tanh %573 : vector<16x128xf32>
    %cst_193 = arith.constant 5.000000e-01 : f32
    %575 = vector.broadcast %cst_193 : f32 to vector<16x128xf32>
    %576 = arith.mulf %575, %574 : vector<16x128xf32>
    %cst_194 = arith.constant 5.000000e-01 : f32
    %577 = vector.broadcast %cst_194 : f32 to vector<16x128xf32>
    %578 = arith.addf %577, %576 : vector<16x128xf32>
    %579 = arith.mulf %568, %540 : vector<16x128xf32>
    %580 = arith.mulf %560, %570 : vector<16x128xf32>
    %581 = arith.addf %579, %580 : vector<16x128xf32>
    %582 = math.tanh %581 : vector<16x128xf32>
    %583 = arith.mulf %578, %582 : vector<16x128xf32>
    %584 = arith.truncf %583 : vector<16x128xf32> to vector<16x128xbf16>
    %585 = arith.index_cast %547 : i32 to index
    %c0_195 = arith.constant 0 : index
    %586 = vector.load %arg5[%585, %c0_195] : memref<256x128xbf16, #tpu.memory_space<vmem>>, vector<16x128xbf16>
    tpu.vector_store %arg5[%585, %c0_195], %584 {strides = array<i32>} : memref<256x128xbf16, #tpu.memory_space<vmem>>, vector<16x128xbf16>,
    %c14_i32 = arith.constant 14 : i32
    %c16_i32_196 = arith.constant 16 : i32
    %587 = arith.muli %c14_i32, %c16_i32_196 : i32
    %588 = tpu.assume_multiple %587, 16 : i32
    %589 = arith.index_cast %588 : i32 to index
    %c0_197 = arith.constant 0 : index
    %590 = vector.load %arg8[%589, %c0_197] : memref<256x512xf32, #tpu.memory_space<vmem>>, vector<16x512xf32>
    %591 = arith.truncf %583 : vector<16x128xf32> to vector<16x128xbf16>
    %cst_198 = arith.constant dense<0.000000e+00> : vector<16x512xf32>
    %592 = tpu.matmul %591, %10, %cst_198 {dimension_numbers = #tpu.dot_dimension_numbers<[1], [0], [0], [1], [0, 0, 1, 1], [], []>} : vector<16x128xbf16>, vector<128x512xbf16>, vector<16x512xf32> -> vector<16x512xf32>
    %593 = arith.addf %590, %592 : vector<16x512xf32>
    %594 = vector.extract_strided_slice %593 {offsets = [0, 0], sizes = [16, 128], strides = [1, 1]} : vector<16x512xf32> to vector<16x128xf32>
    %cst_199 = arith.constant 5.000000e-01 : f32
    %595 = vector.broadcast %cst_199 : f32 to vector<16x128xf32>
    %596 = arith.mulf %595, %594 : vector<16x128xf32>
    %597 = math.tanh %596 : vector<16x128xf32>
    %cst_200 = arith.constant 5.000000e-01 : f32
    %598 = vector.broadcast %cst_200 : f32 to vector<16x128xf32>
    %599 = arith.mulf %598, %597 : vector<16x128xf32>
    %cst_201 = arith.constant 5.000000e-01 : f32
    %600 = vector.broadcast %cst_201 : f32 to vector<16x128xf32>
    %601 = arith.addf %600, %599 : vector<16x128xf32>
    %602 = vector.extract_strided_slice %593 {offsets = [0, 128], sizes = [16, 128], strides = [1, 1]} : vector<16x512xf32> to vector<16x128xf32>
    %cst_202 = arith.constant 5.000000e-01 : f32
    %603 = vector.broadcast %cst_202 : f32 to vector<16x128xf32>
    %604 = arith.mulf %603, %602 : vector<16x128xf32>
    %605 = math.tanh %604 : vector<16x128xf32>
    %cst_203 = arith.constant 5.000000e-01 : f32
    %606 = vector.broadcast %cst_203 : f32 to vector<16x128xf32>
    %607 = arith.mulf %606, %605 : vector<16x128xf32>
    %cst_204 = arith.constant 5.000000e-01 : f32
    %608 = vector.broadcast %cst_204 : f32 to vector<16x128xf32>
    %609 = arith.addf %608, %607 : vector<16x128xf32>
    %610 = vector.extract_strided_slice %593 {offsets = [0, 256], sizes = [16, 128], strides = [1, 1]} : vector<16x512xf32> to vector<16x128xf32>
    %611 = math.tanh %610 : vector<16x128xf32>
    %612 = vector.extract_strided_slice %593 {offsets = [0, 384], sizes = [16, 128], strides = [1, 1]} : vector<16x512xf32> to vector<16x128xf32>
    %cst_205 = arith.constant 5.000000e-01 : f32
    %613 = vector.broadcast %cst_205 : f32 to vector<16x128xf32>
    %614 = arith.mulf %613, %612 : vector<16x128xf32>
    %615 = math.tanh %614 : vector<16x128xf32>
    %cst_206 = arith.constant 5.000000e-01 : f32
    %616 = vector.broadcast %cst_206 : f32 to vector<16x128xf32>
    %617 = arith.mulf %616, %615 : vector<16x128xf32>
    %cst_207 = arith.constant 5.000000e-01 : f32
    %618 = vector.broadcast %cst_207 : f32 to vector<16x128xf32>
    %619 = arith.addf %618, %617 : vector<16x128xf32>
    %620 = arith.mulf %609, %581 : vector<16x128xf32>
    %621 = arith.mulf %601, %611 : vector<16x128xf32>
    %622 = arith.addf %620, %621 : vector<16x128xf32>
    %623 = math.tanh %622 : vector<16x128xf32>
    %624 = arith.mulf %619, %623 : vector<16x128xf32>
    %625 = arith.truncf %624 : vector<16x128xf32> to vector<16x128xbf16>
    %626 = arith.index_cast %588 : i32 to index
    %c0_208 = arith.constant 0 : index
    %627 = vector.load %arg5[%626, %c0_208] : memref<256x128xbf16, #tpu.memory_space<vmem>>, vector<16x128xbf16>
    tpu.vector_store %arg5[%626, %c0_208], %625 {strides = array<i32>} : memref<256x128xbf16, #tpu.memory_space<vmem>>, vector<16x128xbf16>,
    %c15_i32 = arith.constant 15 : i32
    %c16_i32_209 = arith.constant 16 : i32
    %628 = arith.muli %c15_i32, %c16_i32_209 : i32
    %629 = tpu.assume_multiple %628, 16 : i32
    %630 = arith.index_cast %629 : i32 to index
    %c0_210 = arith.constant 0 : index
    %631 = vector.load %arg8[%630, %c0_210] : memref<256x512xf32, #tpu.memory_space<vmem>>, vector<16x512xf32>
    %632 = arith.truncf %624 : vector<16x128xf32> to vector<16x128xbf16>
    %cst_211 = arith.constant dense<0.000000e+00> : vector<16x512xf32>
    %633 = tpu.matmul %632, %10, %cst_211 {dimension_numbers = #tpu.dot_dimension_numbers<[1], [0], [0], [1], [0, 0, 1, 1], [], []>} : vector<16x128xbf16>, vector<128x512xbf16>, vector<16x512xf32> -> vector<16x512xf32>
    %634 = arith.addf %631, %633 : vector<16x512xf32>
    %635 = vector.extract_strided_slice %634 {offsets = [0, 0], sizes = [16, 128], strides = [1, 1]} : vector<16x512xf32> to vector<16x128xf32>
    %cst_212 = arith.constant 5.000000e-01 : f32
    %636 = vector.broadcast %cst_212 : f32 to vector<16x128xf32>
    %637 = arith.mulf %636, %635 : vector<16x128xf32>
    %638 = math.tanh %637 : vector<16x128xf32>
    %cst_213 = arith.constant 5.000000e-01 : f32
    %639 = vector.broadcast %cst_213 : f32 to vector<16x128xf32>
    %640 = arith.mulf %639, %638 : vector<16x128xf32>
    %cst_214 = arith.constant 5.000000e-01 : f32
    %641 = vector.broadcast %cst_214 : f32 to vector<16x128xf32>
    %642 = arith.addf %641, %640 : vector<16x128xf32>
    %643 = vector.extract_strided_slice %634 {offsets = [0, 128], sizes = [16, 128], strides = [1, 1]} : vector<16x512xf32> to vector<16x128xf32>
    %cst_215 = arith.constant 5.000000e-01 : f32
    %644 = vector.broadcast %cst_215 : f32 to vector<16x128xf32>
    %645 = arith.mulf %644, %643 : vector<16x128xf32>
    %646 = math.tanh %645 : vector<16x128xf32>
    %cst_216 = arith.constant 5.000000e-01 : f32
    %647 = vector.broadcast %cst_216 : f32 to vector<16x128xf32>
    %648 = arith.mulf %647, %646 : vector<16x128xf32>
    %cst_217 = arith.constant 5.000000e-01 : f32
    %649 = vector.broadcast %cst_217 : f32 to vector<16x128xf32>
    %650 = arith.addf %649, %648 : vector<16x128xf32>
    %651 = vector.extract_strided_slice %634 {offsets = [0, 256], sizes = [16, 128], strides = [1, 1]} : vector<16x512xf32> to vector<16x128xf32>
    %652 = math.tanh %651 : vector<16x128xf32>
    %653 = vector.extract_strided_slice %634 {offsets = [0, 384], sizes = [16, 128], strides = [1, 1]} : vector<16x512xf32> to vector<16x128xf32>
    %cst_218 = arith.constant 5.000000e-01 : f32
    %654 = vector.broadcast %cst_218 : f32 to vector<16x128xf32>
    %655 = arith.mulf %654, %653 : vector<16x128xf32>
    %656 = math.tanh %655 : vector<16x128xf32>
    %cst_219 = arith.constant 5.000000e-01 : f32
    %657 = vector.broadcast %cst_219 : f32 to vector<16x128xf32>
    %658 = arith.mulf %657, %656 : vector<16x128xf32>
    %cst_220 = arith.constant 5.000000e-01 : f32
    %659 = vector.broadcast %cst_220 : f32 to vector<16x128xf32>
    %660 = arith.addf %659, %658 : vector<16x128xf32>
    %661 = arith.mulf %650, %622 : vector<16x128xf32>
    %662 = arith.mulf %642, %652 : vector<16x128xf32>
    %663 = arith.addf %661, %662 : vector<16x128xf32>
    %664 = math.tanh %663 : vector<16x128xf32>
    %665 = arith.mulf %660, %664 : vector<16x128xf32>
    %666 = arith.truncf %665 : vector<16x128xf32> to vector<16x128xbf16>
    %667 = arith.index_cast %629 : i32 to index
    %c0_221 = arith.constant 0 : index
    %668 = vector.load %arg5[%667, %c0_221] : memref<256x128xbf16, #tpu.memory_space<vmem>>, vector<16x128xbf16>
    tpu.vector_store %arg5[%667, %c0_221], %666 {strides = array<i32>} : memref<256x128xbf16, #tpu.memory_space<vmem>>, vector<16x128xbf16>,
    %c16_i32_222 = arith.constant 16 : i32
    %c0_223 = arith.constant 0 : index
    %c0_224 = arith.constant 0 : index
    %669 = vector.load %arg6[%c0_223, %c0_224] : memref<16x128xf32, #tpu.memory_space<vmem>>, vector<16x128xf32>
    tpu.vector_store %arg6[%c0_223, %c0_224], %665 {strides = array<i32>} : memref<16x128xf32, #tpu.memory_space<vmem>>, vector<16x128xf32>,
    %c0_225 = arith.constant 0 : index
    %c0_226 = arith.constant 0 : index
    %670 = vector.load %arg7[%c0_225, %c0_226] : memref<16x128xf32, #tpu.memory_space<vmem>>, vector<16x128xf32>
    tpu.vector_store %arg7[%c0_225, %c0_226], %663 {strides = array<i32>} : memref<16x128xf32, #tpu.memory_space<vmem>>, vector<16x128xf32>,
    return
  }
  func.func @transform_0(%arg0: i32) -> (i32, i32) {
    %c0_i32 = arith.constant 0 : i32
    %c0_i32_0 = arith.constant 0 : i32
    return %arg0, %c0_i32 : i32, i32
  }
  func.func @transform_1(%arg0: i32) -> (i32, i32) {
    %c0_i32 = arith.constant 0 : i32
    %c0_i32_0 = arith.constant 0 : i32
    %c0_i32_1 = arith.constant 0 : i32
    return %c0_i32, %c0_i32_0 : i32, i32
  }
  func.func @transform_2(%arg0: i32) -> (i32, i32) {
    %c0_i32 = arith.constant 0 : i32
    %c0_i32_0 = arith.constant 0 : i32
    %c0_i32_1 = arith.constant 0 : i32
    return %c0_i32, %c0_i32_0 : i32, i32
  }
  func.func @transform_3(%arg0: i32) -> (i32, i32) {
    %c0_i32 = arith.constant 0 : i32
    %c0_i32_0 = arith.constant 0 : i32
    %c0_i32_1 = arith.constant 0 : i32
    return %c0_i32, %c0_i32_0 : i32, i32
  }
  func.func @transform_4(%arg0: i32) -> (i32, i32) {
    %c0_i32 = arith.constant 0 : i32
    %c0_i32_0 = arith.constant 0 : i32
    return %arg0, %c0_i32 : i32, i32
  }
}

</mosaic_0001>

<bundles_post_ra>
// kernel: decoder_rnn_forward.3
= control target key start
LH: loop header
LB: loop body
LE: loop exit
PB: predicated region body
PF: predicated region fallthrough
CT: control target
= control target key end

     0   :  { %s1855_s1 = inlined_call_operand.vmem [shape: bf16[128,512], index: 1, kind: input, shape index: {}]   ;;  %s1856_s0 = inlined_call_operand.vmem [shape: bf16[256,128], index: 0, kind: input, shape index: {}]   ;;  %s1857_s2 = inlined_call_operand.vmem [shape: f32[1,512], index: 2, kind: input, shape index: {}]   ;;  %s1858_s3 = inlined_call_operand.vmem [shape: f32[256,512], index: 3, kind: output, shape index: {}]  }
   0x1   :  { %v1010_v0 = vld [vmem:[%s1855_s1 + $0xe0] sm:$0xf]  ;;  %v1070_v1 = vld [vmem:[%s1855_s1 + $0xec] sm:$0xf0]  ;;  %v1068_v2 = vld [vmem:[%s1855_s1 + $0xe4] sm:$0xf] }
   0x2   :  { %v1011_v3 = vor.u32 %v1070_v1, %v1010_v0  ;;  %v1012_v4 = vld [vmem:[%s1855_s1 + $0xf0] sm:$0xf0]  ;;  %v1018_v5 = vld [vmem:[%s1855_s1 + $0xe8] sm:$0xf]  ;;  %v1071_v6 = vld [vmem:[%s1855_s1 + $0xf4] sm:$0xf0] }
   0x3   :  { %v1015_v7 = vor.u32 %v1068_v2, %v1012_v4  ;;  %v1019_v8 = vor.u32 %v1071_v6, %v1018_v5  ;;  %v1069_v9 = vld [vmem:[%s1855_s1 + $0xec] sm:$0xf]  ;;  %v1020_v10 = vld [vmem:[%s1855_s1 + $0xf8] sm:$0xf0]  ;;  %v994_v11 = vld [vmem:[%s1855_s1 + $0xc0] sm:$0xf] }
   0x4   :  { %344 = vmatpush.bf16.msra.mxu0 %v1011_v3  ;;  %v1023_v12 = vor.u32 %v1069_v9, %v1020_v10  ;;  %v1066_v13 = vld [vmem:[%s1855_s1 + $0xcc] sm:$0xf0]  ;;  %v1064_v14 = vld [vmem:[%s1855_s1 + $0xc4] sm:$0xf]  ;;  %v996_v15 = vld [vmem:[%s1855_s1 + $0xd0] sm:$0xf0] }
   0x5   :  { %433 = vmatpush.bf16.msra.mxu1 %v1015_v7  ;;  %522 = vmatpush.bf16.msra.mxu2 %v1019_v8  ;;  %v995_v16 = vor.u32 %v1066_v13, %v994_v11  ;;  %v999_v17 = vor.u32 %v1064_v14, %v996_v15  ;;  %v1002_v18 = vld [vmem:[%s1855_s1 + $0xc8] sm:$0xf]  ;;  %v1067_v19 = vld [vmem:[%s1855_s1 + $0xd4] sm:$0xf0]  ;;  %v1065_v20 = vld [vmem:[%s1855_s1 + $0xcc] sm:$0xf] }
   0x6   :  { %611 = vmatpush.bf16.msra.mxu3 %v1023_v12  ;;  %v1003_v21 = vor.u32 %v1067_v19, %v1002_v18  ;;  %v1004_v22 = vld [vmem:[%s1855_s1 + $0xd8] sm:$0xf0]  ;;  %v978_v23 = vld [vmem:[%s1855_s1 + $0xa0] sm:$0xf]  ;;  %v1062_v24 = vld [vmem:[%s1855_s1 + $0xac] sm:$0xf0] }
   0x7   :  { %v1007_v25 = vor.u32 %v1065_v20, %v1004_v22  ;;  %v1060_v26 = vld [vmem:[%s1855_s1 + $0xa4] sm:$0xf]  ;;  %v980_v27 = vld [vmem:[%s1855_s1 + $0xb0] sm:$0xf0]  ;;  %v986_v28 = vld [vmem:[%s1855_s1 + $0xa8] sm:$0xf]  ;;  %v979_v29 = vor.u32 %v1062_v24, %v978_v23 }
   0x8   :  { %345 = vmatpush.bf16.msra.mxu0 %v995_v16  ;;  %v1063_v30 = vld [vmem:[%s1855_s1 + $0xb4] sm:$0xf0]  ;;  %v1061_v31 = vld [vmem:[%s1855_s1 + $0xac] sm:$0xf]  ;;  %v988_v32 = vld [vmem:[%s1855_s1 + $0xb8] sm:$0xf0]  ;;  %v983_v33 = vor.u32 %v1060_v26, %v980_v27 }
   0x9   :  { %434 = vmatpush.bf16.msra.mxu1 %v999_v17  ;;  %523 = vmatpush.bf16.msra.mxu2 %v1003_v21  ;;  %v987_v34 = vor.u32 %v1063_v30, %v986_v28  ;;  %v962_v35 = vld [vmem:[%s1855_s1 + $0x80] sm:$0xf]  ;;  %v1058_v36 = vld [vmem:[%s1855_s1 + $0x8c] sm:$0xf0]  ;;  %v1056_v37 = vld [vmem:[%s1855_s1 + $0x84] sm:$0xf]  ;;  %v991_v38 = vor.u32 %v1061_v31, %v988_v32 }
   0xa   :  { %612 = vmatpush.bf16.msra.mxu3 %v1007_v25  ;;  %v964_v39 = vld [vmem:[%s1855_s1 + $0x90] sm:$0xf0]  ;;  %v970_v40 = vld [vmem:[%s1855_s1 + $0x88] sm:$0xf]  ;;  %v1059_v41 = vld [vmem:[%s1855_s1 + $0x94] sm:$0xf0]  ;;  %v963_v44 = vor.u32 %v1058_v36, %v962_v35 }
   0xb   :  { %v1057_v42 = vld [vmem:[%s1855_s1 + $0x8c] sm:$0xf]  ;;  %v972_v43 = vld [vmem:[%s1855_s1 + $0x98] sm:$0xf0]  ;;  %v967_v45 = vor.u32 %v1056_v37, %v964_v39  ;;  %v971_v46 = vor.u32 %v1059_v41, %v970_v40  ;;  %v946_v47 = vld [vmem:[%s1855_s1 + $0x60] sm:$0xf] }
   0xc   :  { %346 = vmatpush.bf16.msra.mxu0 %v979_v29  ;;  %v1054_v48 = vld [vmem:[%s1855_s1 + $0x6c] sm:$0xf0]  ;;  %v1052_v49 = vld [vmem:[%s1855_s1 + $0x64] sm:$0xf]  ;;  %v975_v50 = vor.u32 %v1057_v42, %v972_v43  ;;  %v948_v51 = vld [vmem:[%s1855_s1 + $0x70] sm:$0xf0] }
   0xd   :  { %435 = vmatpush.bf16.msra.mxu1 %v983_v33  ;;  %524 = vmatpush.bf16.msra.mxu2 %v987_v34  ;;  %v954_v52 = vld [vmem:[%s1855_s1 + $0x68] sm:$0xf]  ;;  %v1055_v53 = vld [vmem:[%s1855_s1 + $0x74] sm:$0xf0]  ;;  %v1053_v54 = vld [vmem:[%s1855_s1 + $0x6c] sm:$0xf]  ;;  %v947_v56 = vor.u32 %v1054_v48, %v946_v47  ;;  %v951_v57 = vor.u32 %v1052_v49, %v948_v51 }
   0xe   :  { %613 = vmatpush.bf16.msra.mxu3 %v991_v38  ;;  %v956_v55 = vld [vmem:[%s1855_s1 + $0x78] sm:$0xf0]  ;;  %v955_v58 = vor.u32 %v1055_v53, %v954_v52  ;;  %v930_v59 = vld [vmem:[%s1855_s1 + $0x40] sm:$0xf]  ;;  %v1050_v60 = vld [vmem:[%s1855_s1 + $0x4c] sm:$0xf0] }
   0xf   :  { %v1048_v61 = vld [vmem:[%s1855_s1 + $0x44] sm:$0xf]  ;;  %v959_v62 = vor.u32 %v1053_v54, %v956_v55  ;;  %v932_v63 = vld [vmem:[%s1855_s1 + $0x50] sm:$0xf0]  ;;  %v938_v0 = vld [vmem:[%s1855_s1 + $0x48] sm:$0xf]  ;;  %v931_v4 = vor.u32 %v1050_v60, %v930_v59 }
  0x10   :  { %347 = vmatpush.bf16.msra.mxu0 %v963_v44  ;;  %v1051_v1 = vld [vmem:[%s1855_s1 + $0x54] sm:$0xf0]  ;;  %v1049_v2 = vld [vmem:[%s1855_s1 + $0x4c] sm:$0xf]  ;;  %v940_v3 = vld [vmem:[%s1855_s1 + $0x58] sm:$0xf0]  ;;  %v935_v5 = vor.u32 %v1048_v61, %v932_v63 }
  0x11   :  { %436 = vmatpush.bf16.msra.mxu1 %v967_v45  ;;  %525 = vmatpush.bf16.msra.mxu2 %v971_v46  ;;  %v939_v6 = vor.u32 %v1051_v1, %v938_v0  ;;  %v914_v7 = vld [vmem:[%s1855_s1 + $0x20] sm:$0xf]  ;;  %v1046_v8 = vld [vmem:[%s1855_s1 + $0x2c] sm:$0xf0]  ;;  %v1044_v9 = vld [vmem:[%s1855_s1 + $0x24] sm:$0xf]  ;;  %v943_v10 = vor.u32 %v1049_v2, %v940_v3 }
  0x12   :  { %614 = vmatpush.bf16.msra.mxu3 %v975_v50  ;;  %v916_v11 = vld [vmem:[%s1855_s1 + $0x30] sm:$0xf0]  ;;  %v922_v12 = vld [vmem:[%s1855_s1 + $0x28] sm:$0xf]  ;;  %v1047_v13 = vld [vmem:[%s1855_s1 + $0x34] sm:$0xf0]  ;;  %v915_v16 = vor.u32 %v1046_v8, %v914_v7 }
  0x13   :  { %v1045_v14 = vld [vmem:[%s1855_s1 + $0x2c] sm:$0xf]  ;;  %v924_v15 = vld [vmem:[%s1855_s1 + $0x38] sm:$0xf0]  ;;  %v919_v17 = vor.u32 %v1044_v9, %v916_v11  ;;  %v923_v18 = vor.u32 %v1047_v13, %v922_v12  ;;  %v898_v19 = vld [vmem:[%s1855_s1] sm:$0xf] }
  0x14   :  { %348 = vmatpush.bf16.msra.mxu0 %v947_v56  ;;  %v1042_v20 = vld [vmem:[%s1855_s1 + $0xc] sm:$0xf0]  ;;  %v1040_v21 = vld [vmem:[%s1855_s1 + $0x4] sm:$0xf]  ;;  %v927_v22 = vor.u32 %v1045_v14, %v924_v15  ;;  %v900_v23 = vld [vmem:[%s1855_s1 + $0x10] sm:$0xf0] }
  0x15   :  { %437 = vmatpush.bf16.msra.mxu1 %v951_v57  ;;  %526 = vmatpush.bf16.msra.mxu2 %v955_v58  ;;  %v906_v24 = vld [vmem:[%s1855_s1 + $0x8] sm:$0xf]  ;;  %v1043_v25 = vld [vmem:[%s1855_s1 + $0x14] sm:$0xf0]  ;;  %v1041_v26 = vld [vmem:[%s1855_s1 + $0xc] sm:$0xf]  ;;  %v899_v28 = vor.u32 %v1042_v20, %v898_v19  ;;  %v903_v29 = vor.u32 %v1040_v21, %v900_v23 }
  0x16   :  { %615 = vmatpush.bf16.msra.mxu3 %v959_v62  ;;  %v908_v27 = vld [vmem:[%s1855_s1 + $0x18] sm:$0xf0]  ;;  %v907_v30 = vor.u32 %v1043_v25, %v906_v24  ;;  %v1024_v32 = vld [vmem:[%s1856_s0] sm:$0xff]  ;;  %v1025_v33 = vld [vmem:[%s1856_s0 + $0x8] sm:$0xff] }
  0x17   :  { %v911_v31 = vor.u32 %v1041_v26, %v908_v27  ;;  %v1026_v34 = vld [vmem:[%s1856_s0 + $0x10] sm:$0xff]  ;;  %v1027_v35 = vld [vmem:[%s1856_s0 + $0x18] sm:$0xff]  ;;  %v1028_v36 = vld [vmem:[%s1856_s0 + $0x20] sm:$0xff] }
  0x18   :  { %349 = vmatpush.bf16.msra.mxu0 %v931_v4  ;;  %v1029_v37 = vld [vmem:[%s1856_s0 + $0x28] sm:$0xff]  ;;  %v1030_v38 = vld [vmem:[%s1856_s0 + $0x30] sm:$0xff]  ;;  %v1031_v39 = vld [vmem:[%s1856_s0 + $0x38] sm:$0xff] }
  0x19   :  { %438 = vmatpush.bf16.msra.mxu1 %v935_v5  ;;  %527 = vmatpush.bf16.msra.mxu2 %v939_v6  ;;  %v78_v40 = vld [vmem:[%s1857_s2] sm:$0xf]  ;;  %v1033_v59 = vld [vmem:[%s1856_s0 + $0x48] sm:$0xff]  ;;  %v1034_v12 = vld [vmem:[%s1856_s0 + $0x50] sm:$0xff] }
  0x1a   :  { %616 = vmatpush.bf16.msra.mxu3 %v943_v10  ;;  %v1311_v41 = vperm.slane %v78_v40, 0  ;;  %v1313_v42 = vperm.slane %v78_v40, 1  ;;  %v1032_v43 = vld [vmem:[%s1856_s0 + $0x40] sm:$0xff]  ;;  %v1326_v48 = vperm.slane %v78_v40, 2  ;;  %v1328_v49 = vperm.slane %v78_v40, 3 }
  0x1c   :  { %350 = vmatpush.bf16.msra.mxu0 %v915_v16 }
  0x1d   :  { %439 = vmatpush.bf16.msra.mxu1 %v919_v17  ;;  %528 = vmatpush.bf16.msra.mxu2 %v923_v18 }
  0x1e   :  { %617 = vmatpush.bf16.msra.mxu3 %v927_v22 }
  0x20   :  { %351 = vmatpush.bf16.msra.mxu0 %v899_v28 }
  0x21   :  { %440 = vmatpush.bf16.msra.mxu1 %v903_v29  ;;  %529 = vmatpush.bf16.msra.mxu2 %v907_v30  ;;  %v1035_v29 = vld [vmem:[%s1856_s0 + $0x58] sm:$0xff] }
  0x22   :  { %618 = vmatpush.bf16.msra.mxu3 %v911_v31 }
  0x23   :  { %352 = vmatmul.bf16.vlgmr.msra.gmra.mxu0 %v1024_v32 }
  0x24   :  { %441 = vmatmul.bf16.vlgmr.msra.gmra.mxu1 %v1024_v32  ;;  %530 = vmatmul.bf16.vlgmr.msra.gmra.mxu2 %v1024_v32 }
  0x25   :  { %619 = vmatmul.bf16.vlgmr.msra.gmra.mxu3 %v1024_v32 }
  0x33   :  { %357 = vmatmul.bf16.gmra.mxu0 %v1025_v33 }
  0x34   :  { %446 = vmatmul.bf16.gmra.mxu1 %v1025_v33  ;;  %535 = vmatmul.bf16.gmra.mxu2 %v1025_v33 }
  0x35   :  { %624 = vmatmul.bf16.gmra.mxu3 %v1025_v33 }
  0x43   :  { %362 = vmatmul.bf16.gmra.mxu0 %v1026_v34 }
  0x44   :  { %451 = vmatmul.bf16.gmra.mxu1 %v1026_v34  ;;  %540 = vmatmul.bf16.gmra.mxu2 %v1026_v34 }
  0x45   :  { %629 = vmatmul.bf16.gmra.mxu3 %v1026_v34 }
  0x53   :  { %367 = vmatmul.bf16.gmra.mxu0 %v1027_v35 }
  0x54   :  { %456 = vmatmul.bf16.gmra.mxu1 %v1027_v35  ;;  %545 = vmatmul.bf16.gmra.mxu2 %v1027_v35 }
  0x55   :  { %634 = vmatmul.bf16.gmra.mxu3 %v1027_v35 }
  0x63   :  { %372 = vmatmul.bf16.gmra.mxu0 %v1028_v36 }
  0x64   :  { %461 = vmatmul.bf16.gmra.mxu1 %v1028_v36  ;;  %550 = vmatmul.bf16.gmra.mxu2 %v1028_v36 }
  0x65   :  { %639 = vmatmul.bf16.gmra.mxu3 %v1028_v36 }
  0x73   :  { %377 = vmatmul.bf16.gmra.mxu0 %v1029_v37 }
  0x74   :  { %466 = vmatmul.bf16.gmra.mxu1 %v1029_v37  ;;  %555 = vmatmul.bf16.gmra.mxu2 %v1029_v37 }
  0x75   :  { %644 = vmatmul.bf16.gmra.mxu3 %v1029_v37 }
  0x83   :  { %382 = vmatmul.bf16.gmra.mxu0 %v1030_v38 }
  0x84   :  { %471 = vmatmul.bf16.gmra.mxu1 %v1030_v38  ;;  %560 = vmatmul.bf16.gmra.mxu2 %v1030_v38 }
  0x85   :  { %649 = vmatmul.bf16.gmra.mxu3 %v1030_v38 }
  0x93   :  { %387 = vmatmul.bf16.gmra.mxu0 %v1031_v39 }
  0x94   :  { %476 = vmatmul.bf16.gmra.mxu1 %v1031_v39  ;;  %565 = vmatmul.bf16.gmra.mxu2 %v1031_v39 }
  0x95   :  { %654 = vmatmul.bf16.gmra.mxu3 %v1031_v39 }
  0xa0   :  { %v353_v44 = vpop.f32.mrf.mxu0 }
  0xa1   :  { %v354_v45 = vadd.f32 %v353_v44, %v1311_v41  ;;  %v442_v46 = vpop.f32.mrf.mxu1 }
  0xa2   :  { %v443_v47 = vadd.f32 %v442_v46, %v1313_v42 }
  0xa3   :  { %700 = vst [vmem:[%s1858_s3] sm:$0xff] %v354_v45  ;;  %392 = vmatmul.bf16.gmra.mxu0 %v1032_v43 }
  0xa4   :  { %701 = vst [vmem:[%s1858_s3 + $0x8] sm:$0xff] %v443_v47  ;;  %481 = vmatmul.bf16.gmra.mxu1 %v1032_v43  ;;  %570 = vmatmul.bf16.gmra.mxu2 %v1032_v43 }
  0xa5   :  { %659 = vmatmul.bf16.gmra.mxu3 %v1032_v43 }
  0xa7   :  { %v531_v50 = vpop.f32.mrf.mxu2 }
  0xa8   :  { %v532_v51 = vadd.f32 %v531_v50, %v1326_v48  ;;  %v620_v52 = vpop.f32.mrf.mxu3  ;;  %v355_v53 = vpop.f32.mrf.mxu0  ;;  %v1036_v50 = vld [vmem:[%s1856_s0 + $0x60] sm:$0xff] }
  0xa9   :  { %v621_v54 = vadd.f32 %v620_v52, %v1328_v49  ;;  %v356_v55 = vadd.f32 %v355_v53, %v1311_v41  ;;  %v444_v56 = vpop.f32.mrf.mxu1 }
  0xaa   :  { %702 = vst [vmem:[%s1858_s3 + $0x10] sm:$0xff] %v532_v51  ;;  %v445_v57 = vadd.f32 %v444_v56, %v1313_v42 }
  0xab   :  { %703 = vst [vmem:[%s1858_s3 + $0x18] sm:$0xff] %v621_v54 }
  0xac   :  { %704 = vst [vmem:[%s1858_s3 + $0x20] sm:$0xff] %v356_v55 }
  0xad   :  { %705 = vst [vmem:[%s1858_s3 + $0x28] sm:$0xff] %v445_v57 }
  0xaf   :  { %v533_v58 = vpop.f32.mrf.mxu2 }
  0xb0   :  { %v534_v60 = vadd.f32 %v533_v58, %v1326_v48  ;;  %v622_v61 = vpop.f32.mrf.mxu3  ;;  %v358_v62 = vpop.f32.mrf.mxu0 }
  0xb1   :  { %v623_v63 = vadd.f32 %v622_v61, %v1328_v49  ;;  %v359_v0 = vadd.f32 %v358_v62, %v1311_v41  ;;  %v447_v1 = vpop.f32.mrf.mxu1 }
  0xb2   :  { %706 = vst [vmem:[%s1858_s3 + $0x30] sm:$0xff] %v534_v60  ;;  %v448_v2 = vadd.f32 %v447_v1, %v1313_v42 }
  0xb3   :  { %707 = vst [vmem:[%s1858_s3 + $0x38] sm:$0xff] %v623_v63  ;;  %397 = vmatmul.bf16.gmra.mxu0 %v1033_v59 }
  0xb4   :  { %708 = vst [vmem:[%s1858_s3 + $0x40] sm:$0xff] %v359_v0  ;;  %486 = vmatmul.bf16.gmra.mxu1 %v1033_v59  ;;  %575 = vmatmul.bf16.gmra.mxu2 %v1033_v59 }
  0xb5   :  { %709 = vst [vmem:[%s1858_s3 + $0x48] sm:$0xff] %v448_v2  ;;  %664 = vmatmul.bf16.gmra.mxu3 %v1033_v59 }
  0xb7   :  { %v536_v3 = vpop.f32.mrf.mxu2 }
  0xb8   :  { %v537_v4 = vadd.f32 %v536_v3, %v1326_v48  ;;  %v625_v5 = vpop.f32.mrf.mxu3  ;;  %v360_v6 = vpop.f32.mrf.mxu0  ;;  %v1037_v3 = vld [vmem:[%s1856_s0 + $0x68] sm:$0xff] }
  0xb9   :  { %v626_v7 = vadd.f32 %v625_v5, %v1328_v49  ;;  %v361_v8 = vadd.f32 %v360_v6, %v1311_v41  ;;  %v449_v9 = vpop.f32.mrf.mxu1 }
  0xba   :  { %710 = vst [vmem:[%s1858_s3 + $0x50] sm:$0xff] %v537_v4  ;;  %v450_v10 = vadd.f32 %v449_v9, %v1313_v42 }
  0xbb   :  { %711 = vst [vmem:[%s1858_s3 + $0x58] sm:$0xff] %v626_v7 }
  0xbc   :  { %712 = vst [vmem:[%s1858_s3 + $0x60] sm:$0xff] %v361_v8 }
  0xbd   :  { %713 = vst [vmem:[%s1858_s3 + $0x68] sm:$0xff] %v450_v10 }
  0xbf   :  { %v538_v11 = vpop.f32.mrf.mxu2 }
  0xc0   :  { %v539_v13 = vadd.f32 %v538_v11, %v1326_v48  ;;  %v627_v14 = vpop.f32.mrf.mxu3  ;;  %v363_v15 = vpop.f32.mrf.mxu0 }
  0xc1   :  { %v628_v16 = vadd.f32 %v627_v14, %v1328_v49  ;;  %v364_v17 = vadd.f32 %v363_v15, %v1311_v41  ;;  %v452_v18 = vpop.f32.mrf.mxu1 }
  0xc2   :  { %714 = vst [vmem:[%s1858_s3 + $0x70] sm:$0xff] %v539_v13  ;;  %v453_v19 = vadd.f32 %v452_v18, %v1313_v42 }
  0xc3   :  { %715 = vst [vmem:[%s1858_s3 + $0x78] sm:$0xff] %v628_v16  ;;  %402 = vmatmul.bf16.gmra.mxu0 %v1034_v12 }
  0xc4   :  { %716 = vst [vmem:[%s1858_s3 + $0x80] sm:$0xff] %v364_v17  ;;  %491 = vmatmul.bf16.gmra.mxu1 %v1034_v12  ;;  %580 = vmatmul.bf16.gmra.mxu2 %v1034_v12 }
  0xc5   :  { %717 = vst [vmem:[%s1858_s3 + $0x88] sm:$0xff] %v453_v19  ;;  %669 = vmatmul.bf16.gmra.mxu3 %v1034_v12 }
  0xc7   :  { %v541_v20 = vpop.f32.mrf.mxu2 }
  0xc8   :  { %v542_v21 = vadd.f32 %v541_v20, %v1326_v48  ;;  %v630_v22 = vpop.f32.mrf.mxu3  ;;  %v365_v23 = vpop.f32.mrf.mxu0  ;;  %v1038_v20 = vld [vmem:[%s1856_s0 + $0x70] sm:$0xff] }
  0xc9   :  { %v631_v24 = vadd.f32 %v630_v22, %v1328_v49  ;;  %v366_v25 = vadd.f32 %v365_v23, %v1311_v41  ;;  %v454_v26 = vpop.f32.mrf.mxu1 }
  0xca   :  { %718 = vst [vmem:[%s1858_s3 + $0x90] sm:$0xff] %v542_v21  ;;  %v455_v27 = vadd.f32 %v454_v26, %v1313_v42 }
  0xcb   :  { %719 = vst [vmem:[%s1858_s3 + $0x98] sm:$0xff] %v631_v24 }
  0xcc   :  { %720 = vst [vmem:[%s1858_s3 + $0xa0] sm:$0xff] %v366_v25 }
  0xcd   :  { %721 = vst [vmem:[%s1858_s3 + $0xa8] sm:$0xff] %v455_v27 }
  0xcf   :  { %v543_v28 = vpop.f32.mrf.mxu2 }
  0xd0   :  { %v544_v30 = vadd.f32 %v543_v28, %v1326_v48  ;;  %v632_v31 = vpop.f32.mrf.mxu3  ;;  %v368_v32 = vpop.f32.mrf.mxu0 }
  0xd1   :  { %v633_v33 = vadd.f32 %v632_v31, %v1328_v49  ;;  %v369_v34 = vadd.f32 %v368_v32, %v1311_v41  ;;  %v457_v35 = vpop.f32.mrf.mxu1 }
  0xd2   :  { %722 = vst [vmem:[%s1858_s3 + $0xb0] sm:$0xff] %v544_v30  ;;  %v458_v36 = vadd.f32 %v457_v35, %v1313_v42 }
  0xd3   :  { %723 = vst [vmem:[%s1858_s3 + $0xb8] sm:$0xff] %v633_v33  ;;  %407 = vmatmul.bf16.gmra.mxu0 %v1035_v29 }
  0xd4   :  { %724 = vst [vmem:[%s1858_s3 + $0xc0] sm:$0xff] %v369_v34  ;;  %496 = vmatmul.bf16.gmra.mxu1 %v1035_v29  ;;  %585 = vmatmul.bf16.gmra.mxu2 %v1035_v29 }
  0xd5   :  { %725 = vst [vmem:[%s1858_s3 + $0xc8] sm:$0xff] %v458_v36  ;;  %674 = vmatmul.bf16.gmra.mxu3 %v1035_v29 }
  0xd7   :  { %v546_v37 = vpop.f32.mrf.mxu2 }
  0xd8   :  { %v547_v38 = vadd.f32 %v546_v37, %v1326_v48  ;;  %v635_v39 = vpop.f32.mrf.mxu3  ;;  %v370_v40 = vpop.f32.mrf.mxu0  ;;  %v1039_v37 = vld [vmem:[%s1856_s0 + $0x78] sm:$0xff] }
  0xd9   :  { %v636_v43 = vadd.f32 %v635_v39, %v1328_v49  ;;  %v371_v44 = vadd.f32 %v370_v40, %v1311_v41  ;;  %v459_v45 = vpop.f32.mrf.mxu1 }
  0xda   :  { %726 = vst [vmem:[%s1858_s3 + $0xd0] sm:$0xff] %v547_v38  ;;  %v460_v46 = vadd.f32 %v459_v45, %v1313_v42 }
  0xdb   :  { %727 = vst [vmem:[%s1858_s3 + $0xd8] sm:$0xff] %v636_v43 }
  0xdc   :  { %728 = vst [vmem:[%s1858_s3 + $0xe0] sm:$0xff] %v371_v44 }
  0xdd   :  { %729 = vst [vmem:[%s1858_s3 + $0xe8] sm:$0xff] %v460_v46 }
  0xdf   :  { %v548_v47 = vpop.f32.mrf.mxu2 }
  0xe0   :  { %v549_v51 = vadd.f32 %v548_v47, %v1326_v48  ;;  %v637_v52 = vpop.f32.mrf.mxu3  ;;  %v373_v53 = vpop.f32.mrf.mxu0 }
  0xe1   :  { %v638_v54 = vadd.f32 %v637_v52, %v1328_v49  ;;  %v374_v55 = vadd.f32 %v373_v53, %v1311_v41  ;;  %v462_v56 = vpop.f32.mrf.mxu1 }
  0xe2   :  { %730 = vst [vmem:[%s1858_s3 + $0xf0] sm:$0xff] %v549_v51  ;;  %v463_v57 = vadd.f32 %v462_v56, %v1313_v42 }
  0xe3   :  { %731 = vst [vmem:[%s1858_s3 + $0xf8] sm:$0xff] %v638_v54  ;;  %412 = vmatmul.bf16.gmra.mxu0 %v1036_v50 }
  0xe4   :  { %732 = vst [vmem:[%s1858_s3 + $0x100] sm:$0xff] %v374_v55  ;;  %501 = vmatmul.bf16.gmra.mxu1 %v1036_v50  ;;  %590 = vmatmul.bf16.gmra.mxu2 %v1036_v50 }
  0xe5   :  { %733 = vst [vmem:[%s1858_s3 + $0x108] sm:$0xff] %v463_v57  ;;  %679 = vmatmul.bf16.gmra.mxu3 %v1036_v50 }
  0xe7   :  { %v551_v58 = vpop.f32.mrf.mxu2 }
  0xe8   :  { %v552_v59 = vadd.f32 %v551_v58, %v1326_v48  ;;  %v640_v60 = vpop.f32.mrf.mxu3  ;;  %v375_v61 = vpop.f32.mrf.mxu0 }
  0xe9   :  { %v641_v62 = vadd.f32 %v640_v60, %v1328_v49  ;;  %v376_v63 = vadd.f32 %v375_v61, %v1311_v41  ;;  %v464_v0 = vpop.f32.mrf.mxu1 }
  0xea   :  { %734 = vst [vmem:[%s1858_s3 + $0x110] sm:$0xff] %v552_v59  ;;  %v465_v1 = vadd.f32 %v464_v0, %v1313_v42 }
  0xeb   :  { %735 = vst [vmem:[%s1858_s3 + $0x118] sm:$0xff] %v641_v62 }
  0xec   :  { %736 = vst [vmem:[%s1858_s3 + $0x120] sm:$0xff] %v376_v63 }
  0xed   :  { %737 = vst [vmem:[%s1858_s3 + $0x128] sm:$0xff] %v465_v1 }
  0xef   :  { %v553_v2 = vpop.f32.mrf.mxu2 }
  0xf0   :  { %v554_v4 = vadd.f32 %v553_v2, %v1326_v48  ;;  %v642_v5 = vpop.f32.mrf.mxu3  ;;  %v378_v6 = vpop.f32.mrf.mxu0 }
  0xf1   :  { %v643_v7 = vadd.f32 %v642_v5, %v1328_v49  ;;  %v379_v8 = vadd.f32 %v378_v6, %v1311_v41  ;;  %v467_v9 = vpop.f32.mrf.mxu1 }
  0xf2   :  { %738 = vst [vmem:[%s1858_s3 + $0x130] sm:$0xff] %v554_v4  ;;  %v468_v10 = vadd.f32 %v467_v9, %v1313_v42 }
  0xf3   :  { %739 = vst [vmem:[%s1858_s3 + $0x138] sm:$0xff] %v643_v7  ;;  %417 = vmatmul.bf16.gmra.mxu0 %v1037_v3 }
  0xf4   :  { %740 = vst [vmem:[%s1858_s3 + $0x140] sm:$0xff] %v379_v8  ;;  %506 = vmatmul.bf16.gmra.mxu1 %v1037_v3  ;;  %595 = vmatmul.bf16.gmra.mxu2 %v1037_v3 }
  0xf5   :  { %741 = vst [vmem:[%s1858_s3 + $0x148] sm:$0xff] %v468_v10  ;;  %684 = vmatmul.bf16.gmra.mxu3 %v1037_v3 }
  0xf7   :  { %v556_v11 = vpop.f32.mrf.mxu2 }
  0xf8   :  { %v557_v12 = vadd.f32 %v556_v11, %v1326_v48  ;;  %v645_v13 = vpop.f32.mrf.mxu3  ;;  %v380_v14 = vpop.f32.mrf.mxu0 }
  0xf9   :  { %v646_v15 = vadd.f32 %v645_v13, %v1328_v49  ;;  %v381_v16 = vadd.f32 %v380_v14, %v1311_v41  ;;  %v469_v17 = vpop.f32.mrf.mxu1 }
  0xfa   :  { %742 = vst [vmem:[%s1858_s3 + $0x150] sm:$0xff] %v557_v12  ;;  %v470_v18 = vadd.f32 %v469_v17, %v1313_v42 }
  0xfb   :  { %743 = vst [vmem:[%s1858_s3 + $0x158] sm:$0xff] %v646_v15 }
  0xfc   :  { %744 = vst [vmem:[%s1858_s3 + $0x160] sm:$0xff] %v381_v16 }
  0xfd   :  { %745 = vst [vmem:[%s1858_s3 + $0x168] sm:$0xff] %v470_v18 }
  0xff   :  { %v558_v19 = vpop.f32.mrf.mxu2 }
 0x100   :  { %v559_v21 = vadd.f32 %v558_v19, %v1326_v48  ;;  %v647_v22 = vpop.f32.mrf.mxu3  ;;  %v383_v23 = vpop.f32.mrf.mxu0 }
 0x101   :  { %v648_v24 = vadd.f32 %v647_v22, %v1328_v49  ;;  %v384_v25 = vadd.f32 %v383_v23, %v1311_v41  ;;  %v472_v26 = vpop.f32.mrf.mxu1 }
 0x102   :  { %746 = vst [vmem:[%s1858_s3 + $0x170] sm:$0xff] %v559_v21  ;;  %v473_v27 = vadd.f32 %v472_v26, %v1313_v42 }
 0x103   :  { %747 = vst [vmem:[%s1858_s3 + $0x178] sm:$0xff] %v648_v24  ;;  %422 = vmatmul.bf16.gmra.mxu0 %v1038_v20 }
 0x104   :  { %748 = vst [vmem:[%s1858_s3 + $0x180] sm:$0xff] %v384_v25  ;;  %511 = vmatmul.bf16.gmra.mxu1 %v1038_v20  ;;  %600 = vmatmul.bf16.gmra.mxu2 %v1038_v20 }
 0x105   :  { %749 = vst [vmem:[%s1858_s3 + $0x188] sm:$0xff] %v473_v27  ;;  %689 = vmatmul.bf16.gmra.mxu3 %v1038_v20 }
 0x107   :  { %v561_v28 = vpop.f32.mrf.mxu2 }
 0x108   :  { %v562_v29 = vadd.f32 %v561_v28, %v1326_v48  ;;  %v650_v30 = vpop.f32.mrf.mxu3  ;;  %v385_v31 = vpop.f32.mrf.mxu0 }
 0x109   :  { %v651_v32 = vadd.f32 %v650_v30, %v1328_v49  ;;  %v386_v33 = vadd.f32 %v385_v31, %v1311_v41  ;;  %v474_v34 = vpop.f32.mrf.mxu1 }
 0x10a   :  { %750 = vst [vmem:[%s1858_s3 + $0x190] sm:$0xff] %v562_v29  ;;  %v475_v35 = vadd.f32 %v474_v34, %v1313_v42 }
 0x10b   :  { %751 = vst [vmem:[%s1858_s3 + $0x198] sm:$0xff] %v651_v32 }
 0x10c   :  { %752 = vst [vmem:[%s1858_s3 + $0x1a0] sm:$0xff] %v386_v33 }
 0x10d   :  { %753 = vst [vmem:[%s1858_s3 + $0x1a8] sm:$0xff] %v475_v35 }
 0x10f   :  { %v563_v36 = vpop.f32.mrf.mxu2 }
 0x110   :  { %v564_v38 = vadd.f32 %v563_v36, %v1326_v48  ;;  %v652_v39 = vpop.f32.mrf.mxu3  ;;  %v388_v40 = vpop.f32.mrf.mxu0 }
 0x111   :  { %v653_v43 = vadd.f32 %v652_v39, %v1328_v49  ;;  %v389_v44 = vadd.f32 %v388_v40, %v1311_v41  ;;  %v477_v45 = vpop.f32.mrf.mxu1 }
 0x112   :  { %754 = vst [vmem:[%s1858_s3 + $0x1b0] sm:$0xff] %v564_v38  ;;  %v478_v46 = vadd.f32 %v477_v45, %v1313_v42 }
 0x113   :  { %755 = vst [vmem:[%s1858_s3 + $0x1b8] sm:$0xff] %v653_v43  ;;  %427 = vmatmul.bf16.gmra.mxu0 %v1039_v37 }
 0x114   :  { %756 = vst [vmem:[%s1858_s3 + $0x1c0] sm:$0xff] %v389_v44  ;;  %516 = vmatmul.bf16.gmra.mxu1 %v1039_v37  ;;  %605 = vmatmul.bf16.gmra.mxu2 %v1039_v37 }
 0x115   :  { %757 = vst [vmem:[%s1858_s3 + $0x1c8] sm:$0xff] %v478_v46  ;;  %694 = vmatmul.bf16.gmra.mxu3 %v1039_v37 }
 0x117   :  { %v566_v47 = vpop.f32.mrf.mxu2 }
 0x118   :  { %v567_v50 = vadd.f32 %v566_v47, %v1326_v48  ;;  %v655_v51 = vpop.f32.mrf.mxu3  ;;  %v390_v52 = vpop.f32.mrf.mxu0 }
 0x119   :  { %v656_v53 = vadd.f32 %v655_v51, %v1328_v49  ;;  %v391_v54 = vadd.f32 %v390_v52, %v1311_v41  ;;  %v479_v55 = vpop.f32.mrf.mxu1 }
 0x11a   :  { %758 = vst [vmem:[%s1858_s3 + $0x1d0] sm:$0xff] %v567_v50  ;;  %v480_v56 = vadd.f32 %v479_v55, %v1313_v42 }
 0x11b   :  { %759 = vst [vmem:[%s1858_s3 + $0x1d8] sm:$0xff] %v656_v53 }
 0x11c   :  { %760 = vst [vmem:[%s1858_s3 + $0x1e0] sm:$0xff] %v391_v54 }
 0x11d   :  { %761 = vst [vmem:[%s1858_s3 + $0x1e8] sm:$0xff] %v480_v56 }
 0x11f   :  { %v568_v57 = vpop.f32.mrf.mxu2 }
 0x120   :  { %v569_v58 = vadd.f32 %v568_v57, %v1326_v48  ;;  %v657_v59 = vpop.f32.mrf.mxu3  ;;  %v393_v60 = vpop.f32.mrf.mxu0 }
 0x121   :  { %v658_v61 = vadd.f32 %v657_v59, %v1328_v49  ;;  %v394_v62 = vadd.f32 %v393_v60, %v1311_v41  ;;  %v482_v63 = vpop.f32.mrf.mxu1 }
 0x122   :  { %762 = vst [vmem:[%s1858_s3 + $0x1f0] sm:$0xff] %v569_v58  ;;  %v483_v0 = vadd.f32 %v482_v63, %v1313_v42 }
 0x123   :  { %763 = vst [vmem:[%s1858_s3 + $0x1f8] sm:$0xff] %v658_v61 }
 0x124   :  { %764 = vst [vmem:[%s1858_s3 + $0x200] sm:$0xff] %v394_v62 }
 0x125   :  { %765 = vst [vmem:[%s1858_s3 + $0x208] sm:$0xff] %v483_v0 }
 0x127   :  { %v571_v1 = vpop.f32.mrf.mxu2 }
 0x128   :  { %v572_v2 = vadd.f32 %v571_v1, %v1326_v48  ;;  %v660_v3 = vpop.f32.mrf.mxu3  ;;  %v395_v4 = vpop.f32.mrf.mxu0 }
 0x129   :  { %v661_v5 = vadd.f32 %v660_v3, %v1328_v49  ;;  %v396_v6 = vadd.f32 %v395_v4, %v1311_v41  ;;  %v484_v7 = vpop.f32.mrf.mxu1 }
 0x12a   :  { %766 = vst [vmem:[%s1858_s3 + $0x210] sm:$0xff] %v572_v2  ;;  %v485_v8 = vadd.f32 %v484_v7, %v1313_v42 }
 0x12b   :  { %767 = vst [vmem:[%s1858_s3 + $0x218] sm:$0xff] %v661_v5 }
 0x12c   :  { %768 = vst [vmem:[%s1858_s3 + $0x220] sm:$0xff] %v396_v6 }
 0x12d   :  { %769 = vst [vmem:[%s1858_s3 + $0x228] sm:$0xff] %v485_v8 }
 0x12f   :  { %v573_v9 = vpop.f32.mrf.mxu2 }
 0x130   :  { %v574_v10 = vadd.f32 %v573_v9, %v1326_v48  ;;  %v662_v11 = vpop.f32.mrf.mxu3  ;;  %v398_v12 = vpop.f32.mrf.mxu0 }
 0x131   :  { %v663_v13 = vadd.f32 %v662_v11, %v1328_v49  ;;  %v399_v14 = vadd.f32 %v398_v12, %v1311_v41  ;;  %v487_v15 = vpop.f32.mrf.mxu1 }
 0x132   :  { %770 = vst [vmem:[%s1858_s3 + $0x230] sm:$0xff] %v574_v10  ;;  %v488_v16 = vadd.f32 %v487_v15, %v1313_v42 }
 0x133   :  { %771 = vst [vmem:[%s1858_s3 + $0x238] sm:$0xff] %v663_v13 }
 0x134   :  { %772 = vst [vmem:[%s1858_s3 + $0x240] sm:$0xff] %v399_v14 }
 0x135   :  { %773 = vst [vmem:[%s1858_s3 + $0x248] sm:$0xff] %v488_v16 }
 0x137   :  { %v576_v17 = vpop.f32.mrf.mxu2 }
 0x138   :  { %v577_v18 = vadd.f32 %v576_v17, %v1326_v48  ;;  %v665_v19 = vpop.f32.mrf.mxu3  ;;  %v400_v20 = vpop.f32.mrf.mxu0 }
 0x139   :  { %v666_v21 = vadd.f32 %v665_v19, %v1328_v49  ;;  %v401_v22 = vadd.f32 %v400_v20, %v1311_v41  ;;  %v489_v23 = vpop.f32.mrf.mxu1 }
 0x13a   :  { %774 = vst [vmem:[%s1858_s3 + $0x250] sm:$0xff] %v577_v18  ;;  %v490_v24 = vadd.f32 %v489_v23, %v1313_v42 }
 0x13b   :  { %775 = vst [vmem:[%s1858_s3 + $0x258] sm:$0xff] %v666_v21 }
 0x13c   :  { %776 = vst [vmem:[%s1858_s3 + $0x260] sm:$0xff] %v401_v22 }
 0x13d   :  { %777 = vst [vmem:[%s1858_s3 + $0x268] sm:$0xff] %v490_v24 }
 0x13f   :  { %v578_v25 = vpop.f32.mrf.mxu2 }
 0x140   :  { %v579_v26 = vadd.f32 %v578_v25, %v1326_v48  ;;  %v667_v27 = vpop.f32.mrf.mxu3  ;;  %v403_v28 = vpop.f32.mrf.mxu0 }
 0x141   :  { %v668_v29 = vadd.f32 %v667_v27, %v1328_v49  ;;  %v404_v30 = vadd.f32 %v403_v28, %v1311_v41  ;;  %v492_v31 = vpop.f32.mrf.mxu1 }
 0x142   :  { %778 = vst [vmem:[%s1858_s3 + $0x270] sm:$0xff] %v579_v26  ;;  %v493_v32 = vadd.f32 %v492_v31, %v1313_v42 }
 0x143   :  { %779 = vst [vmem:[%s1858_s3 + $0x278] sm:$0xff] %v668_v29 }
 0x144   :  { %780 = vst [vmem:[%s1858_s3 + $0x280] sm:$0xff] %v404_v30 }
 0x145   :  { %781 = vst [vmem:[%s1858_s3 + $0x288] sm:$0xff] %v493_v32 }
 0x147   :  { %v581_v33 = vpop.f32.mrf.mxu2 }
 0x148   :  { %v582_v34 = vadd.f32 %v581_v33, %v1326_v48  ;;  %v670_v35 = vpop.f32.mrf.mxu3  ;;  %v405_v36 = vpop.f32.mrf.mxu0 }
 0x149   :  { %v671_v37 = vadd.f32 %v670_v35, %v1328_v49  ;;  %v406_v38 = vadd.f32 %v405_v36, %v1311_v41  ;;  %v494_v39 = vpop.f32.mrf.mxu1 }
 0x14a   :  { %782 = vst [vmem:[%s1858_s3 + $0x290] sm:$0xff] %v582_v34  ;;  %v495_v40 = vadd.f32 %v494_v39, %v1313_v42 }
 0x14b   :  { %783 = vst [vmem:[%s1858_s3 + $0x298] sm:$0xff] %v671_v37 }
 0x14c   :  { %784 = vst [vmem:[%s1858_s3 + $0x2a0] sm:$0xff] %v406_v38 }
 0x14d   :  { %785 = vst [vmem:[%s1858_s3 + $0x2a8] sm:$0xff] %v495_v40 }
 0x14f   :  { %v583_v43 = vpop.f32.mrf.mxu2 }
 0x150   :  { %v584_v44 = vadd.f32 %v583_v43, %v1326_v48  ;;  %v672_v45 = vpop.f32.mrf.mxu3  ;;  %v408_v46 = vpop.f32.mrf.mxu0 }
 0x151   :  { %v673_v47 = vadd.f32 %v672_v45, %v1328_v49  ;;  %v409_v50 = vadd.f32 %v408_v46, %v1311_v41  ;;  %v497_v51 = vpop.f32.mrf.mxu1 }
 0x152   :  { %786 = vst [vmem:[%s1858_s3 + $0x2b0] sm:$0xff] %v584_v44  ;;  %v498_v52 = vadd.f32 %v497_v51, %v1313_v42 }
 0x153   :  { %787 = vst [vmem:[%s1858_s3 + $0x2b8] sm:$0xff] %v673_v47 }
 0x154   :  { %788 = vst [vmem:[%s1858_s3 + $0x2c0] sm:$0xff] %v409_v50 }
 0x155   :  { %789 = vst [vmem:[%s1858_s3 + $0x2c8] sm:$0xff] %v498_v52 }
 0x157   :  { %v586_v53 = vpop.f32.mrf.mxu2 }
 0x158   :  { %v587_v54 = vadd.f32 %v586_v53, %v1326_v48  ;;  %v675_v55 = vpop.f32.mrf.mxu3  ;;  %v410_v56 = vpop.f32.mrf.mxu0 }
 0x159   :  { %v676_v57 = vadd.f32 %v675_v55, %v1328_v49  ;;  %v411_v58 = vadd.f32 %v410_v56, %v1311_v41  ;;  %v499_v59 = vpop.f32.mrf.mxu1 }
 0x15a   :  { %790 = vst [vmem:[%s1858_s3 + $0x2d0] sm:$0xff] %v587_v54  ;;  %v500_v60 = vadd.f32 %v499_v59, %v1313_v42 }
 0x15b   :  { %791 = vst [vmem:[%s1858_s3 + $0x2d8] sm:$0xff] %v676_v57 }
 0x15c   :  { %792 = vst [vmem:[%s1858_s3 + $0x2e0] sm:$0xff] %v411_v58 }
 0x15d   :  { %793 = vst [vmem:[%s1858_s3 + $0x2e8] sm:$0xff] %v500_v60 }
 0x15f   :  { %v588_v61 = vpop.f32.mrf.mxu2 }
 0x160   :  { %v589_v62 = vadd.f32 %v588_v61, %v1326_v48  ;;  %v677_v63 = vpop.f32.mrf.mxu3  ;;  %v413_v0 = vpop.f32.mrf.mxu0 }
 0x161   :  { %v678_v1 = vadd.f32 %v677_v63, %v1328_v49  ;;  %v414_v2 = vadd.f32 %v413_v0, %v1311_v41  ;;  %v502_v3 = vpop.f32.mrf.mxu1 }
 0x162   :  { %794 = vst [vmem:[%s1858_s3 + $0x2f0] sm:$0xff] %v589_v62  ;;  %v503_v4 = vadd.f32 %v502_v3, %v1313_v42 }
 0x163   :  { %795 = vst [vmem:[%s1858_s3 + $0x2f8] sm:$0xff] %v678_v1 }
 0x164   :  { %796 = vst [vmem:[%s1858_s3 + $0x300] sm:$0xff] %v414_v2 }
 0x165   :  { %797 = vst [vmem:[%s1858_s3 + $0x308] sm:$0xff] %v503_v4 }
 0x167   :  { %v591_v5 = vpop.f32.mrf.mxu2 }
 0x168   :  { %v592_v6 = vadd.f32 %v591_v5, %v1326_v48  ;;  %v680_v7 = vpop.f32.mrf.mxu3  ;;  %v415_v8 = vpop.f32.mrf.mxu0 }
 0x169   :  { %v681_v9 = vadd.f32 %v680_v7, %v1328_v49  ;;  %v416_v10 = vadd.f32 %v415_v8, %v1311_v41  ;;  %v504_v11 = vpop.f32.mrf.mxu1 }
 0x16a   :  { %798 = vst [vmem:[%s1858_s3 + $0x310] sm:$0xff] %v592_v6  ;;  %v505_v12 = vadd.f32 %v504_v11, %v1313_v42 }
 0x16b   :  { %799 = vst [vmem:[%s1858_s3 + $0x318] sm:$0xff] %v681_v9 }
 0x16c   :  { %800 = vst [vmem:[%s1858_s3 + $0x320] sm:$0xff] %v416_v10 }
 0x16d   :  { %801 = vst [vmem:[%s1858_s3 + $0x328] sm:$0xff] %v505_v12 }
 0x16f   :  { %v593_v13 = vpop.f32.mrf.mxu2 }
 0x170   :  { %v594_v14 = vadd.f32 %v593_v13, %v1326_v48  ;;  %v682_v15 = vpop.f32.mrf.mxu3  ;;  %v418_v16 = vpop.f32.mrf.mxu0 }
 0x171   :  { %v683_v17 = vadd.f32 %v682_v15, %v1328_v49  ;;  %v419_v18 = vadd.f32 %v418_v16, %v1311_v41  ;;  %v507_v19 = vpop.f32.mrf.mxu1 }
 0x172   :  { %802 = vst [vmem:[%s1858_s3 + $0x330] sm:$0xff] %v594_v14  ;;  %v508_v20 = vadd.f32 %v507_v19, %v1313_v42 }
 0x173   :  { %803 = vst [vmem:[%s1858_s3 + $0x338] sm:$0xff] %v683_v17 }
 0x174   :  { %804 = vst [vmem:[%s1858_s3 + $0x340] sm:$0xff] %v419_v18 }
 0x175   :  { %805 = vst [vmem:[%s1858_s3 + $0x348] sm:$0xff] %v508_v20 }
 0x177   :  { %v596_v21 = vpop.f32.mrf.mxu2 }
 0x178   :  { %v597_v22 = vadd.f32 %v596_v21, %v1326_v48  ;;  %v685_v23 = vpop.f32.mrf.mxu3  ;;  %v420_v24 = vpop.f32.mrf.mxu0 }
 0x179   :  { %v686_v25 = vadd.f32 %v685_v23, %v1328_v49  ;;  %v421_v26 = vadd.f32 %v420_v24, %v1311_v41  ;;  %v509_v27 = vpop.f32.mrf.mxu1 }
 0x17a   :  { %806 = vst [vmem:[%s1858_s3 + $0x350] sm:$0xff] %v597_v22  ;;  %v510_v28 = vadd.f32 %v509_v27, %v1313_v42 }
 0x17b   :  { %807 = vst [vmem:[%s1858_s3 + $0x358] sm:$0xff] %v686_v25 }
 0x17c   :  { %808 = vst [vmem:[%s1858_s3 + $0x360] sm:$0xff] %v421_v26 }
 0x17d   :  { %809 = vst [vmem:[%s1858_s3 + $0x368] sm:$0xff] %v510_v28 }
 0x17f   :  { %v598_v29 = vpop.f32.mrf.mxu2 }
 0x180   :  { %v599_v30 = vadd.f32 %v598_v29, %v1326_v48  ;;  %v687_v31 = vpop.f32.mrf.mxu3  ;;  %v423_v32 = vpop.f32.mrf.mxu0 }
 0x181   :  { %v688_v33 = vadd.f32 %v687_v31, %v1328_v49  ;;  %v424_v34 = vadd.f32 %v423_v32, %v1311_v41  ;;  %v512_v35 = vpop.f32.mrf.mxu1 }
 0x182   :  { %810 = vst [vmem:[%s1858_s3 + $0x370] sm:$0xff] %v599_v30  ;;  %v513_v36 = vadd.f32 %v512_v35, %v1313_v42 }
 0x183   :  { %811 = vst [vmem:[%s1858_s3 + $0x378] sm:$0xff] %v688_v33 }
 0x184   :  { %812 = vst [vmem:[%s1858_s3 + $0x380] sm:$0xff] %v424_v34 }
 0x185   :  { %813 = vst [vmem:[%s1858_s3 + $0x388] sm:$0xff] %v513_v36 }
 0x187   :  { %v601_v37 = vpop.f32.mrf.mxu2 }
 0x188   :  { %v602_v38 = vadd.f32 %v601_v37, %v1326_v48  ;;  %v690_v39 = vpop.f32.mrf.mxu3  ;;  %v425_v40 = vpop.f32.mrf.mxu0 }
 0x189   :  { %v691_v43 = vadd.f32 %v690_v39, %v1328_v49  ;;  %v426_v44 = vadd.f32 %v425_v40, %v1311_v41  ;;  %v514_v45 = vpop.f32.mrf.mxu1 }
 0x18a   :  { %814 = vst [vmem:[%s1858_s3 + $0x390] sm:$0xff] %v602_v38  ;;  %v515_v46 = vadd.f32 %v514_v45, %v1313_v42 }
 0x18b   :  { %815 = vst [vmem:[%s1858_s3 + $0x398] sm:$0xff] %v691_v43 }
 0x18c   :  { %816 = vst [vmem:[%s1858_s3 + $0x3a0] sm:$0xff] %v426_v44 }
 0x18d   :  { %817 = vst [vmem:[%s1858_s3 + $0x3a8] sm:$0xff] %v515_v46 }
 0x18f   :  { %v603_v47 = vpop.f32.mrf.mxu2 }
 0x190   :  { %v604_v50 = vadd.f32 %v603_v47, %v1326_v48  ;;  %v692_v51 = vpop.f32.mrf.mxu3  ;;  %v428_v52 = vpop.f32.mrf.mxu0 }
 0x191   :  { %v693_v53 = vadd.f32 %v692_v51, %v1328_v49  ;;  %v429_v54 = vadd.f32 %v428_v52, %v1311_v41  ;;  %v517_v55 = vpop.f32.mrf.mxu1 }
 0x192   :  { %818 = vst [vmem:[%s1858_s3 + $0x3b0] sm:$0xff] %v604_v50  ;;  %v518_v56 = vadd.f32 %v517_v55, %v1313_v42 }
 0x193   :  { %819 = vst [vmem:[%s1858_s3 + $0x3b8] sm:$0xff] %v693_v53 }
 0x194   :  { %820 = vst [vmem:[%s1858_s3 + $0x3c0] sm:$0xff] %v429_v54 }
 0x195   :  { %821 = vst [vmem:[%s1858_s3 + $0x3c8] sm:$0xff] %v518_v56 }
 0x197   :  { %v606_v57 = vpop.f32.mrf.mxu2 }
 0x198   :  { %v607_v58 = vadd.f32 %v606_v57, %v1326_v48  ;;  %v695_v59 = vpop.f32.mrf.mxu3  ;;  %v430_v60 = vpop.f32.mrf.mxu0 }
 0x199   :  { %v696_v61 = vadd.f32 %v695_v59, %v1328_v49  ;;  %v431_v62 = vadd.f32 %v430_v60, %v1311_v41  ;;  %v519_v63 = vpop.f32.mrf.mxu1 }
 0x19a   :  { %822 = vst [vmem:[%s1858_s3 + $0x3d0] sm:$0xff] %v607_v58  ;;  %v520_v0 = vadd.f32 %v519_v63, %v1313_v42 }
 0x19b   :  { %823 = vst [vmem:[%s1858_s3 + $0x3d8] sm:$0xff] %v696_v61 }
 0x19c   :  { %824 = vst [vmem:[%s1858_s3 + $0x3e0] sm:$0xff] %v431_v62 }
 0x19d   :  { %825 = vst [vmem:[%s1858_s3 + $0x3e8] sm:$0xff] %v520_v0 }
 0x19f   :  { %v608_v41 = vpop.f32.mrf.mxu2 }
 0x1a0   :  { %v609_v1 = vadd.f32 %v608_v41, %v1326_v48  ;;  %v697_v2 = vpop.f32.mrf.mxu3 }
 0x1a1   :  { %v698_v3 = vadd.f32 %v697_v2, %v1328_v49 }
 0x1a2   :  { %826 = vst [vmem:[%s1858_s3 + $0x3f0] sm:$0xff] %v609_v1 }
 0x1a3   :  { %827 = vst [vmem:[%s1858_s3 + $0x3f8] sm:$0xff] %v698_v3 }

// kernel: decoder_rnn_forward.2
= control target key start
LH: loop header
LB: loop body
LE: loop exit
PB: predicated region body
PF: predicated region fallthrough
CT: control target
= control target key end

     0   :  { %s5575_s1 = inlined_call_operand.vmem [shape: bf16[128,512], index: 1, kind: input, shape index: {}]   ;;  %s5576_s2 = inlined_call_operand.vmem [shape: bf16[128,512], index: 2, kind: input, shape index: {}]   ;;  %s5577_s0 = inlined_call_operand.vmem [shape: bf16[256,128], index: 0, kind: input, shape index: {}]   ;;  %s5578_s3 = inlined_call_operand.vmem [shape: f32[1,512], index: 3, kind: input, shape index: {}]   ;;  %s5579_s4 = inlined_call_operand.vmem [shape: bf16[256,128], index: 4, kind: output, shape index: {}]  }
   0x1   :  { %v3182_v0 = vld [vmem:[%s5575_s1 + $0xe0] sm:$0xf]  ;;  %v3400_v1 = vld [vmem:[%s5575_s1 + $0xec] sm:$0xf0]  ;;  %v3398_v2 = vld [vmem:[%s5575_s1 + $0xe4] sm:$0xf] }
   0x2   :  { %v3183_v3 = vor.u32 %v3400_v1, %v3182_v0  ;;  %v3184_v4 = vld [vmem:[%s5575_s1 + $0xf0] sm:$0xf0]  ;;  %v3190_v5 = vld [vmem:[%s5575_s1 + $0xe8] sm:$0xf]  ;;  %v3401_v6 = vld [vmem:[%s5575_s1 + $0xf4] sm:$0xf0] }
   0x3   :  { %v3187_v7 = vor.u32 %v3398_v2, %v3184_v4  ;;  %v3191_v8 = vor.u32 %v3401_v6, %v3190_v5  ;;  %v3399_v9 = vld [vmem:[%s5575_s1 + $0xec] sm:$0xf]  ;;  %v3192_v10 = vld [vmem:[%s5575_s1 + $0xf8] sm:$0xf0]  ;;  %v3166_v11 = vld [vmem:[%s5575_s1 + $0xc0] sm:$0xf] }
   0x4   :  { %355 = vmatpush.bf16.msra.mxu0 %v3183_v3  ;;  %v3195_v12 = vor.u32 %v3399_v9, %v3192_v10  ;;  %v3396_v13 = vld [vmem:[%s5575_s1 + $0xcc] sm:$0xf0]  ;;  %v3394_v14 = vld [vmem:[%s5575_s1 + $0xc4] sm:$0xf]  ;;  %v3168_v15 = vld [vmem:[%s5575_s1 + $0xd0] sm:$0xf0] }
   0x5   :  { %444 = vmatpush.bf16.msra.mxu1 %v3187_v7  ;;  %533 = vmatpush.bf16.msra.mxu2 %v3191_v8  ;;  %v3167_v16 = vor.u32 %v3396_v13, %v3166_v11  ;;  %v3171_v17 = vor.u32 %v3394_v14, %v3168_v15  ;;  %v3174_v18 = vld [vmem:[%s5575_s1 + $0xc8] sm:$0xf]  ;;  %v3397_v19 = vld [vmem:[%s5575_s1 + $0xd4] sm:$0xf0]  ;;  %v3395_v20 = vld [vmem:[%s5575_s1 + $0xcc] sm:$0xf] }
   0x6   :  { %622 = vmatpush.bf16.msra.mxu3 %v3195_v12  ;;  %v3175_v21 = vor.u32 %v3397_v19, %v3174_v18  ;;  %v3176_v22 = vld [vmem:[%s5575_s1 + $0xd8] sm:$0xf0]  ;;  %v3150_v23 = vld [vmem:[%s5575_s1 + $0xa0] sm:$0xf]  ;;  %v3392_v24 = vld [vmem:[%s5575_s1 + $0xac] sm:$0xf0] }
   0x7   :  { %v3179_v25 = vor.u32 %v3395_v20, %v3176_v22  ;;  %v3390_v26 = vld [vmem:[%s5575_s1 + $0xa4] sm:$0xf]  ;;  %v3152_v27 = vld [vmem:[%s5575_s1 + $0xb0] sm:$0xf0]  ;;  %v3158_v28 = vld [vmem:[%s5575_s1 + $0xa8] sm:$0xf]  ;;  %v3151_v29 = vor.u32 %v3392_v24, %v3150_v23 }
   0x8   :  { %356 = vmatpush.bf16.msra.mxu0 %v3167_v16  ;;  %v3393_v30 = vld [vmem:[%s5575_s1 + $0xb4] sm:$0xf0]  ;;  %v3391_v31 = vld [vmem:[%s5575_s1 + $0xac] sm:$0xf]  ;;  %v3160_v32 = vld [vmem:[%s5575_s1 + $0xb8] sm:$0xf0]  ;;  %v3155_v33 = vor.u32 %v3390_v26, %v3152_v27 }
   0x9   :  { %445 = vmatpush.bf16.msra.mxu1 %v3171_v17  ;;  %534 = vmatpush.bf16.msra.mxu2 %v3175_v21  ;;  %v3159_v34 = vor.u32 %v3393_v30, %v3158_v28  ;;  %v3134_v35 = vld [vmem:[%s5575_s1 + $0x80] sm:$0xf]  ;;  %v3388_v36 = vld [vmem:[%s5575_s1 + $0x8c] sm:$0xf0]  ;;  %v3386_v37 = vld [vmem:[%s5575_s1 + $0x84] sm:$0xf]  ;;  %v3163_v38 = vor.u32 %v3391_v31, %v3160_v32 }
   0xa   :  { %623 = vmatpush.bf16.msra.mxu3 %v3179_v25  ;;  %v3136_v39 = vld [vmem:[%s5575_s1 + $0x90] sm:$0xf0]  ;;  %v3142_v40 = vld [vmem:[%s5575_s1 + $0x88] sm:$0xf]  ;;  %v3389_v41 = vld [vmem:[%s5575_s1 + $0x94] sm:$0xf0]  ;;  %v3135_v44 = vor.u32 %v3388_v36, %v3134_v35 }
   0xb   :  { %v3387_v42 = vld [vmem:[%s5575_s1 + $0x8c] sm:$0xf]  ;;  %v3144_v43 = vld [vmem:[%s5575_s1 + $0x98] sm:$0xf0]  ;;  %v3139_v45 = vor.u32 %v3386_v37, %v3136_v39  ;;  %v3143_v46 = vor.u32 %v3389_v41, %v3142_v40  ;;  %v3118_v47 = vld [vmem:[%s5575_s1 + $0x60] sm:$0xf] }
   0xc   :  { %357 = vmatpush.bf16.msra.mxu0 %v3151_v29  ;;  %v3384_v48 = vld [vmem:[%s5575_s1 + $0x6c] sm:$0xf0]  ;;  %v3382_v49 = vld [vmem:[%s5575_s1 + $0x64] sm:$0xf]  ;;  %v3147_v50 = vor.u32 %v3387_v42, %v3144_v43  ;;  %v3120_v51 = vld [vmem:[%s5575_s1 + $0x70] sm:$0xf0] }
   0xd   :  { %446 = vmatpush.bf16.msra.mxu1 %v3155_v33  ;;  %535 = vmatpush.bf16.msra.mxu2 %v3159_v34  ;;  %v3126_v52 = vld [vmem:[%s5575_s1 + $0x68] sm:$0xf]  ;;  %v3385_v53 = vld [vmem:[%s5575_s1 + $0x74] sm:$0xf0]  ;;  %v3383_v54 = vld [vmem:[%s5575_s1 + $0x6c] sm:$0xf]  ;;  %v3119_v56 = vor.u32 %v3384_v48, %v3118_v47  ;;  %v3123_v57 = vor.u32 %v3382_v49, %v3120_v51 }
   0xe   :  { %624 = vmatpush.bf16.msra.mxu3 %v3163_v38  ;;  %v3128_v55 = vld [vmem:[%s5575_s1 + $0x78] sm:$0xf0]  ;;  %v3127_v58 = vor.u32 %v3385_v53, %v3126_v52  ;;  %v3102_v59 = vld [vmem:[%s5575_s1 + $0x40] sm:$0xf]  ;;  %v3380_v60 = vld [vmem:[%s5575_s1 + $0x4c] sm:$0xf0] }
   0xf   :  { %v3378_v61 = vld [vmem:[%s5575_s1 + $0x44] sm:$0xf]  ;;  %v3131_v62 = vor.u32 %v3383_v54, %v3128_v55  ;;  %v3104_v63 = vld [vmem:[%s5575_s1 + $0x50] sm:$0xf0]  ;;  %v3110_v0 = vld [vmem:[%s5575_s1 + $0x48] sm:$0xf]  ;;  %v3103_v4 = vor.u32 %v3380_v60, %v3102_v59 }
  0x10   :  { %358 = vmatpush.bf16.msra.mxu0 %v3135_v44  ;;  %v3381_v1 = vld [vmem:[%s5575_s1 + $0x54] sm:$0xf0]  ;;  %v3379_v2 = vld [vmem:[%s5575_s1 + $0x4c] sm:$0xf]  ;;  %v3112_v3 = vld [vmem:[%s5575_s1 + $0x58] sm:$0xf0]  ;;  %v3107_v5 = vor.u32 %v3378_v61, %v3104_v63 }
  0x11   :  { %447 = vmatpush.bf16.msra.mxu1 %v3139_v45  ;;  %536 = vmatpush.bf16.msra.mxu2 %v3143_v46  ;;  %v3111_v6 = vor.u32 %v3381_v1, %v3110_v0  ;;  %v3086_v7 = vld [vmem:[%s5575_s1 + $0x20] sm:$0xf]  ;;  %v3376_v8 = vld [vmem:[%s5575_s1 + $0x2c] sm:$0xf0]  ;;  %v3374_v9 = vld [vmem:[%s5575_s1 + $0x24] sm:$0xf]  ;;  %v3115_v10 = vor.u32 %v3379_v2, %v3112_v3 }
  0x12   :  { %625 = vmatpush.bf16.msra.mxu3 %v3147_v50  ;;  %v3088_v11 = vld [vmem:[%s5575_s1 + $0x30] sm:$0xf0]  ;;  %v3094_v12 = vld [vmem:[%s5575_s1 + $0x28] sm:$0xf]  ;;  %v3377_v13 = vld [vmem:[%s5575_s1 + $0x34] sm:$0xf0]  ;;  %v3087_v16 = vor.u32 %v3376_v8, %v3086_v7 }
  0x13   :  { %v3375_v14 = vld [vmem:[%s5575_s1 + $0x2c] sm:$0xf]  ;;  %v3096_v15 = vld [vmem:[%s5575_s1 + $0x38] sm:$0xf0]  ;;  %v3070_v17 = vld [vmem:[%s5575_s1] sm:$0xf]  ;;  %v3091_v18 = vor.u32 %v3374_v9, %v3088_v11  ;;  %v3095_v19 = vor.u32 %v3377_v13, %v3094_v12 }
  0x14   :  { %359 = vmatpush.bf16.msra.mxu0 %v3119_v56  ;;  %v3372_v20 = vld [vmem:[%s5575_s1 + $0xc] sm:$0xf0]  ;;  %v3370_v21 = vld [vmem:[%s5575_s1 + $0x4] sm:$0xf]  ;;  %v3072_v22 = vld [vmem:[%s5575_s1 + $0x10] sm:$0xf0]  ;;  %v3099_v23 = vor.u32 %v3375_v14, %v3096_v15 }
  0x15   :  { %448 = vmatpush.bf16.msra.mxu1 %v3123_v57  ;;  %537 = vmatpush.bf16.msra.mxu2 %v3127_v58  ;;  %v3078_v24 = vld [vmem:[%s5575_s1 + $0x8] sm:$0xf]  ;;  %v3373_v25 = vld [vmem:[%s5575_s1 + $0x14] sm:$0xf0]  ;;  %v3371_v26 = vld [vmem:[%s5575_s1 + $0xc] sm:$0xf]  ;;  %v3071_v30 = vor.u32 %v3372_v20, %v3070_v17  ;;  %v3075_v33 = vor.u32 %v3370_v21, %v3072_v22 }
  0x16   :  { %626 = vmatpush.bf16.msra.mxu3 %v3131_v62  ;;  %v3080_v27 = vld [vmem:[%s5575_s1 + $0x18] sm:$0xf0]  ;;  %v3310_v28 = vld [vmem:[%s5576_s2 + $0xe0] sm:$0xf]  ;;  %v3432_v29 = vld [vmem:[%s5576_s2 + $0xec] sm:$0xf0]  ;;  %v3079_v34 = vor.u32 %v3373_v25, %v3078_v24 }
  0x17   :  { %v3430_v31 = vld [vmem:[%s5576_s2 + $0xe4] sm:$0xf]  ;;  %v3312_v32 = vld [vmem:[%s5576_s2 + $0xf0] sm:$0xf0]  ;;  %v3083_v35 = vor.u32 %v3371_v26, %v3080_v27  ;;  %v4080_v36 = vor.u32 %v3432_v29, %v3310_v28  ;;  %v3318_v37 = vld [vmem:[%s5576_s2 + $0xe8] sm:$0xf] }
  0x18   :  { %360 = vmatpush.bf16.msra.mxu0 %v3103_v4  ;;  %v3433_v38 = vld [vmem:[%s5576_s2 + $0xf4] sm:$0xf0]  ;;  %v3354_v39 = vld [vmem:[%s5577_s0] sm:$0xff]  ;;  %v4091_v40 = vor.u32 %v3430_v31, %v3312_v32  ;;  %v3431_v41 = vld [vmem:[%s5576_s2 + $0xec] sm:$0xf] }
  0x19   :  { %449 = vmatpush.bf16.msra.mxu1 %v3107_v5  ;;  %538 = vmatpush.bf16.msra.mxu2 %v3111_v6  ;;  %v3320_v42 = vld [vmem:[%s5576_s2 + $0xf8] sm:$0xf0]  ;;  %v4099_v43 = vor.u32 %v3433_v38, %v3318_v37  ;;  %v3294_v45 = vld [vmem:[%s5576_s2 + $0xc0] sm:$0xf]  ;;  %v3428_v46 = vld [vmem:[%s5576_s2 + $0xcc] sm:$0xf0] }
  0x1a   :  { %627 = vmatpush.bf16.msra.mxu3 %v3115_v10  ;;  %v4102_v44 = vor.u32 %v3431_v41, %v3320_v42  ;;  %v3426_v47 = vld [vmem:[%s5576_s2 + $0xc4] sm:$0xf]  ;;  %v4116_v48 = vor.u32 %v3428_v46, %v3294_v45  ;;  %v3296_v49 = vld [vmem:[%s5576_s2 + $0xd0] sm:$0xf0]  ;;  %v3302_v50 = vld [vmem:[%s5576_s2 + $0xc8] sm:$0xf] }
  0x1b   :  { %v3429_v51 = vld [vmem:[%s5576_s2 + $0xd4] sm:$0xf0]  ;;  %v4127_v52 = vor.u32 %v3426_v47, %v3296_v49  ;;  %v3427_v54 = vld [vmem:[%s5576_s2 + $0xcc] sm:$0xf]  ;;  %v3304_v55 = vld [vmem:[%s5576_s2 + $0xd8] sm:$0xf0] }
  0x1c   :  { %361 = vmatpush.bf16.msra.mxu0 %v3087_v16  ;;  %v4129_v53 = vor.u32 %v3429_v51, %v3302_v50  ;;  %v4138_v56 = vor.u32 %v3427_v54, %v3304_v55  ;;  %v3355_v57 = vld [vmem:[%s5577_s0 + $0x8] sm:$0xff]  ;;  %v3356_v58 = vld [vmem:[%s5577_s0 + $0x10] sm:$0xff]  ;;  %v3278_v59 = vld [vmem:[%s5576_s2 + $0xa0] sm:$0xf] }
  0x1d   :  { %450 = vmatpush.bf16.msra.mxu1 %v3091_v18  ;;  %539 = vmatpush.bf16.msra.mxu2 %v3095_v19  ;;  %v3424_v60 = vld [vmem:[%s5576_s2 + $0xac] sm:$0xf0]  ;;  %v3422_v61 = vld [vmem:[%s5576_s2 + $0xa4] sm:$0xf]  ;;  %v3280_v63 = vld [vmem:[%s5576_s2 + $0xb0] sm:$0xf0] }
  0x1e   :  { %628 = vmatpush.bf16.msra.mxu3 %v3099_v23  ;;  %v4158_v62 = vor.u32 %v3424_v60, %v3278_v59  ;;  %v3286_v0 = vld [vmem:[%s5576_s2 + $0xa8] sm:$0xf]  ;;  %v3425_v1 = vld [vmem:[%s5576_s2 + $0xb4] sm:$0xf0]  ;;  %v4169_v2 = vor.u32 %v3422_v61, %v3280_v63  ;;  %v3423_v4 = vld [vmem:[%s5576_s2 + $0xac] sm:$0xf] }
  0x1f   :  { %v4171_v3 = vor.u32 %v3425_v1, %v3286_v0  ;;  %v3288_v5 = vld [vmem:[%s5576_s2 + $0xb8] sm:$0xf0]  ;;  %v3358_v8 = vld [vmem:[%s5577_s0 + $0x20] sm:$0xff]  ;;  %v3420_v10 = vld [vmem:[%s5576_s2 + $0x8c] sm:$0xf0] }
  0x20   :  { %362 = vmatpush.bf16.msra.mxu0 %v3071_v30  ;;  %v4180_v6 = vor.u32 %v3423_v4, %v3288_v5  ;;  %v3357_v7 = vld [vmem:[%s5577_s0 + $0x18] sm:$0xff]  ;;  %v3262_v9 = vld [vmem:[%s5576_s2 + $0x80] sm:$0xf]  ;;  %v3418_v11 = vld [vmem:[%s5576_s2 + $0x84] sm:$0xf] }
  0x21   :  { %451 = vmatpush.bf16.msra.mxu1 %v3075_v33  ;;  %540 = vmatpush.bf16.msra.mxu2 %v3079_v34  ;;  %v4200_v12 = vor.u32 %v3420_v10, %v3262_v9  ;;  %v3264_v13 = vld [vmem:[%s5576_s2 + $0x90] sm:$0xf0]  ;;  %v3270_v14 = vld [vmem:[%s5576_s2 + $0x88] sm:$0xf]  ;;  %v3421_v15 = vld [vmem:[%s5576_s2 + $0x94] sm:$0xf0] }
  0x22   :  { %629 = vmatpush.bf16.msra.mxu3 %v3083_v35  ;;  %v4211_v16 = vor.u32 %v3418_v11, %v3264_v13  ;;  %v4213_v17 = vor.u32 %v3421_v15, %v3270_v14  ;;  %v3419_v18 = vld [vmem:[%s5576_s2 + $0x8c] sm:$0xf]  ;;  %v3272_v19 = vld [vmem:[%s5576_s2 + $0x98] sm:$0xf0]  ;;  %v3360_v22 = vld [vmem:[%s5577_s0 + $0x30] sm:$0xff] }
  0x23   :  { %363 = vmatmul.bf16.vlgmr.msra.gmra.mxu0 %v3354_v39  ;;  %v4222_v20 = vor.u32 %v3419_v18, %v3272_v19  ;;  %v3359_v21 = vld [vmem:[%s5577_s0 + $0x28] sm:$0xff]  ;;  %v3246_v23 = vld [vmem:[%s5576_s2 + $0x60] sm:$0xf]  ;;  %v3416_v24 = vld [vmem:[%s5576_s2 + $0x6c] sm:$0xf0] }
  0x24   :  { %1047 = vmatpush.bf16.msrb.mxu0 %v4080_v36  ;;  %452 = vmatmul.bf16.vlgmr.msra.gmra.mxu1 %v3354_v39  ;;  %v3414_v25 = vld [vmem:[%s5576_s2 + $0x64] sm:$0xf]  ;;  %v4242_v26 = vor.u32 %v3416_v24, %v3246_v23  ;;  %v3248_v27 = vld [vmem:[%s5576_s2 + $0x70] sm:$0xf0]  ;;  %v3254_v28 = vld [vmem:[%s5576_s2 + $0x68] sm:$0xf] }
  0x25   :  { %1061 = vmatpush.bf16.msrb.mxu1 %v4091_v40  ;;  %541 = vmatmul.bf16.vlgmr.msra.gmra.mxu2 %v3354_v39  ;;  %v3417_v29 = vld [vmem:[%s5576_s2 + $0x74] sm:$0xf0]  ;;  %v4253_v30 = vor.u32 %v3414_v25, %v3248_v27  ;;  %v3415_v32 = vld [vmem:[%s5576_s2 + $0x6c] sm:$0xf]  ;;  %v3256_v33 = vld [vmem:[%s5576_s2 + $0x78] sm:$0xf0] }
  0x26   :  { %630 = vmatmul.bf16.vlgmr.msra.gmra.mxu3 %v3354_v39  ;;  %1075 = vmatpush.bf16.msrb.mxu2 %v4099_v43  ;;  %v4255_v31 = vor.u32 %v3417_v29, %v3254_v28  ;;  %v4266_v34 = vor.u32 %v3415_v32, %v3256_v33  ;;  %v3361_v35 = vld [vmem:[%s5577_s0 + $0x38] sm:$0xff]  ;;  %v3362_v37 = vld [vmem:[%s5577_s0 + $0x40] sm:$0xff]  ;;  %v3412_v42 = vld [vmem:[%s5576_s2 + $0x4c] sm:$0xf0] }
  0x27   :  { %1089 = vmatpush.bf16.msrb.mxu3 %v4102_v44  ;;  %v3230_v41 = vld [vmem:[%s5576_s2 + $0x40] sm:$0xf]  ;;  %v3410_v45 = vld [vmem:[%s5576_s2 + $0x44] sm:$0xf]  ;;  %v3232_v47 = vld [vmem:[%s5576_s2 + $0x50] sm:$0xf0] }
  0x28   :  { %1048 = vmatpush.bf16.msrb.mxu0 %v4116_v48  ;;  %v4288_v46 = vor.u32 %v3412_v42, %v3230_v41  ;;  %v3238_v49 = vld [vmem:[%s5576_s2 + $0x48] sm:$0xf]  ;;  %v3413_v50 = vld [vmem:[%s5576_s2 + $0x54] sm:$0xf0]  ;;  %v4301_v54 = vor.u32 %v3410_v45, %v3232_v47  ;;  %v3411_v60 = vld [vmem:[%s5576_s2 + $0x4c] sm:$0xf] }
  0x29   :  { %1062 = vmatpush.bf16.msrb.mxu1 %v4127_v52  ;;  %v4303_v55 = vor.u32 %v3413_v50, %v3238_v49  ;;  %v3240_v61 = vld [vmem:[%s5576_s2 + $0x58] sm:$0xf0]  ;;  %v3363_v1 = vld [vmem:[%s5577_s0 + $0x48] sm:$0xff]  ;;  %v3364_v14 = vld [vmem:[%s5577_s0 + $0x50] sm:$0xff] }
  0x2a   :  { %1076 = vmatpush.bf16.msrb.mxu2 %v4129_v53  ;;  %v4320_v63 = vor.u32 %v3411_v60, %v3240_v61  ;;  %v3406_v23 = vld [vmem:[%s5576_s2 + $0x24] sm:$0xf]  ;;  %v3216_v25 = vld [vmem:[%s5576_s2 + $0x30] sm:$0xf0]  ;;  %v3222_v27 = vld [vmem:[%s5576_s2 + $0x28] sm:$0xf] }
  0x2b   :  { %1090 = vmatpush.bf16.msrb.mxu3 %v4138_v56  ;;  %v3409_v28 = vld [vmem:[%s5576_s2 + $0x34] sm:$0xf0]  ;;  %v4375_v32 = vor.u32 %v3406_v23, %v3216_v25  ;;  %v3407_v42 = vld [vmem:[%s5576_s2 + $0x2c] sm:$0xf]  ;;  %v3224_v45 = vld [vmem:[%s5576_s2 + $0x38] sm:$0xf0] }
  0x2c   :  { %1049 = vmatpush.bf16.msrb.mxu0 %v4158_v62  ;;  %v4377_v33 = vor.u32 %v3409_v28, %v3222_v27  ;;  %v4394_v47 = vor.u32 %v3407_v42, %v3224_v45  ;;  %v3365_v50 = vld [vmem:[%s5577_s0 + $0x58] sm:$0xff]  ;;  %v3366_v27 = vld [vmem:[%s5577_s0 + $0x60] sm:$0xff] }
  0x2d   :  { %1063 = vmatpush.bf16.msrb.mxu1 %v4169_v2 }
  0x2e   :  { %1077 = vmatpush.bf16.msrb.mxu2 %v4171_v3 }
  0x2f   :  { %1091 = vmatpush.bf16.msrb.mxu3 %v4180_v6 }
  0x30   :  { %1050 = vmatpush.bf16.msrb.mxu0 %v4200_v12 }
  0x31   :  { %1064 = vmatpush.bf16.msrb.mxu1 %v4211_v16 }
  0x32   :  { %1078 = vmatpush.bf16.msrb.mxu2 %v4213_v17 }
  0x33   :  { %368 = vmatmul.bf16.gmra.mxu0 %v3355_v57  ;;  %1092 = vmatpush.bf16.msrb.mxu3 %v4222_v20 }
  0x34   :  { %457 = vmatmul.bf16.gmra.mxu1 %v3355_v57  ;;  %1051 = vmatpush.bf16.msrb.mxu0 %v4242_v26 }
  0x35   :  { %546 = vmatmul.bf16.gmra.mxu2 %v3355_v57  ;;  %1065 = vmatpush.bf16.msrb.mxu1 %v4253_v30 }
  0x36   :  { %635 = vmatmul.bf16.gmra.mxu3 %v3355_v57  ;;  %1079 = vmatpush.bf16.msrb.mxu2 %v4255_v31 }
  0x37   :  { %1093 = vmatpush.bf16.msrb.mxu3 %v4266_v34 }
  0x38   :  { %1052 = vmatpush.bf16.msrb.mxu0 %v4288_v46 }
  0x39   :  { %1066 = vmatpush.bf16.msrb.mxu1 %v4301_v54 }
  0x3a   :  { %1080 = vmatpush.bf16.msrb.mxu2 %v4303_v55 }
  0x3b   :  { %1094 = vmatpush.bf16.msrb.mxu3 %v4320_v63 }
  0x3d   :  { %1067 = vmatpush.bf16.msrb.mxu1 %v4375_v32 }
  0x3e   :  { %1081 = vmatpush.bf16.msrb.mxu2 %v4377_v33 }
  0x3f   :  { %1095 = vmatpush.bf16.msrb.mxu3 %v4394_v47 }
  0x43   :  { %373 = vmatmul.bf16.gmra.mxu0 %v3356_v58 }
  0x44   :  { %462 = vmatmul.bf16.gmra.mxu1 %v3356_v58 }
  0x45   :  { %551 = vmatmul.bf16.gmra.mxu2 %v3356_v58 }
  0x46   :  { %640 = vmatmul.bf16.gmra.mxu3 %v3356_v58 }
  0x53   :  { %378 = vmatmul.bf16.gmra.mxu0 %v3357_v7 }
  0x54   :  { %467 = vmatmul.bf16.gmra.mxu1 %v3357_v7 }
  0x55   :  { %556 = vmatmul.bf16.gmra.mxu2 %v3357_v7 }
  0x56   :  { %645 = vmatmul.bf16.gmra.mxu3 %v3357_v7 }
  0x63   :  { %383 = vmatmul.bf16.gmra.mxu0 %v3358_v8 }
  0x64   :  { %472 = vmatmul.bf16.gmra.mxu1 %v3358_v8 }
  0x65   :  { %561 = vmatmul.bf16.gmra.mxu2 %v3358_v8 }
  0x66   :  { %650 = vmatmul.bf16.gmra.mxu3 %v3358_v8 }
  0x73   :  { %388 = vmatmul.bf16.gmra.mxu0 %v3359_v21 }
  0x74   :  { %477 = vmatmul.bf16.gmra.mxu1 %v3359_v21 }
  0x75   :  { %566 = vmatmul.bf16.gmra.mxu2 %v3359_v21 }
  0x76   :  { %655 = vmatmul.bf16.gmra.mxu3 %v3359_v21  ;;  %v3214_v21 = vld [vmem:[%s5576_s2 + $0x20] sm:$0xf] }
  0x83   :  { %393 = vmatmul.bf16.gmra.mxu0 %v3360_v22 }
  0x84   :  { %482 = vmatmul.bf16.gmra.mxu1 %v3360_v22 }
  0x85   :  { %571 = vmatmul.bf16.gmra.mxu2 %v3360_v22 }
  0x86   :  { %660 = vmatmul.bf16.gmra.mxu3 %v3360_v22  ;;  %v3408_v22 = vld [vmem:[%s5576_s2 + $0x2c] sm:$0xf0] }
  0x87   :  { %v4362_v24 = vor.u32 %v3408_v22, %v3214_v21 }
  0x89   :  { %1053 = vmatpush.bf16.msrb.mxu0 %v4362_v24 }
  0x93   :  { %398 = vmatmul.bf16.gmra.mxu0 %v3361_v35 }
  0x94   :  { %487 = vmatmul.bf16.gmra.mxu1 %v3361_v35 }
  0x95   :  { %576 = vmatmul.bf16.gmra.mxu2 %v3361_v35 }
  0x96   :  { %665 = vmatmul.bf16.gmra.mxu3 %v3361_v35 }
  0xa0   :  { %v4275_v38 = vpop.f32.mrf.mxu0 }
  0xa1   :  { %v4277_v39 = vpop.f32.mrf.mxu1 }
  0xa3   :  { %403 = vmatmul.bf16.gmra.mxu0 %v3362_v37 }
  0xa4   :  { %492 = vmatmul.bf16.gmra.mxu1 %v3362_v37 }
  0xa5   :  { %581 = vmatmul.bf16.gmra.mxu2 %v3362_v37 }
  0xa6   :  { %670 = vmatmul.bf16.gmra.mxu3 %v3362_v37 }
  0xa8   :  { %v4299_v51 = vpop.f32.mrf.mxu2  ;;  %v4307_v58 = vpop.f32.mrf.mxu0 }
  0xa9   :  { %v4305_v57 = vpop.f32.mrf.mxu3  ;;  %v4310_v59 = vpop.f32.mrf.mxu1 }
  0xb0   :  { %v4323_v0 = vpop.f32.mrf.mxu2  ;;  %v4330_v5 = vpop.f32.mrf.mxu0 }
  0xb1   :  { %v4328_v4 = vpop.f32.mrf.mxu3  ;;  %v4332_v7 = vpop.f32.mrf.mxu1 }
  0xb3   :  { %408 = vmatmul.bf16.gmra.mxu0 %v3363_v1 }
  0xb4   :  { %497 = vmatmul.bf16.gmra.mxu1 %v3363_v1 }
  0xb5   :  { %586 = vmatmul.bf16.gmra.mxu2 %v3363_v1 }
  0xb6   :  { %675 = vmatmul.bf16.gmra.mxu3 %v3363_v1 }
  0xb8   :  { %v4334_v8 = vpop.f32.mrf.mxu2  ;;  %v4338_v10 = vpop.f32.mrf.mxu0 }
  0xb9   :  { %v4336_v9 = vpop.f32.mrf.mxu3  ;;  %5580 = vst [vmem:[#allocation5_spill] sm:$0xff] %v4338_v10  ;;  %v4340_v11 = vpop.f32.mrf.mxu1 }
  0xba   :  { %5581 = vst [vmem:[#allocation6_spill] sm:$0xff] %v4340_v11 }
  0xc0   :  { %v4342_v13 = vpop.f32.mrf.mxu2  ;;  %v4349_v18 = vpop.f32.mrf.mxu0 }
  0xc1   :  { %5582 = vst [vmem:[#allocation7_spill] sm:$0xff] %v4342_v13  ;;  %v4347_v15 = vpop.f32.mrf.mxu3  ;;  %v4351_v19 = vpop.f32.mrf.mxu1 }
  0xc2   :  { %5583 = vst [vmem:[#allocation8_spill] sm:$0xff] %v4347_v15 }
  0xc3   :  { %5584 = vst [vmem:[#allocation9_spill] sm:$0xff] %v4349_v18  ;;  %413 = vmatmul.bf16.gmra.mxu0 %v3364_v14 }
  0xc4   :  { %5585 = vst [vmem:[#allocation10_spill] sm:$0xff] %v4351_v19  ;;  %502 = vmatmul.bf16.gmra.mxu1 %v3364_v14 }
  0xc5   :  { %591 = vmatmul.bf16.gmra.mxu2 %v3364_v14 }
  0xc6   :  { %680 = vmatmul.bf16.gmra.mxu3 %v3364_v14 }
  0xc8   :  { %v4373_v29 = vpop.f32.mrf.mxu2  ;;  %v4381_v37 = vpop.f32.mrf.mxu0 }
  0xc9   :  { %5586 = vst [vmem:[#allocation11_spill] sm:$0xff] %v4373_v29  ;;  %v4379_v35 = vpop.f32.mrf.mxu3  ;;  %v4384_v41 = vpop.f32.mrf.mxu1 }
  0xca   :  { %5587 = vst [vmem:[#allocation12_spill] sm:$0xff] %v4379_v35 }
  0xcb   :  { %5588 = vst [vmem:[#allocation13_spill] sm:$0xff] %v4381_v37 }
  0xcc   :  { %5589 = vst [vmem:[#allocation14_spill] sm:$0xff] %v4384_v41 }
  0xd0   :  { %v4397_v49 = vpop.f32.mrf.mxu2  ;;  %v4404_v61 = vpop.f32.mrf.mxu0 }
  0xd1   :  { %5590 = vst [vmem:[#allocation15_spill] sm:$0xff] %v4397_v49  ;;  %v4402_v60 = vpop.f32.mrf.mxu3  ;;  %v4406_v1 = vpop.f32.mrf.mxu1 }
  0xd2   :  { %5591 = vst [vmem:[#allocation16_spill] sm:$0xff] %v4402_v60 }
  0xd3   :  { %5592 = vst [vmem:[#allocation17_spill] sm:$0xff] %v4404_v61  ;;  %418 = vmatmul.bf16.gmra.mxu0 %v3365_v50 }
  0xd4   :  { %5593 = vst [vmem:[#allocation18_spill] sm:$0xff] %v4406_v1  ;;  %507 = vmatmul.bf16.gmra.mxu1 %v3365_v50 }
  0xd5   :  { %596 = vmatmul.bf16.gmra.mxu2 %v3365_v50 }
  0xd6   :  { %685 = vmatmul.bf16.gmra.mxu3 %v3365_v50  ;;  %v3198_v50 = vld [vmem:[%s5576_s2] sm:$0xf] }
  0xd8   :  { %v4408_v14 = vpop.f32.mrf.mxu2  ;;  %v4412_v22 = vpop.f32.mrf.mxu0 }
  0xd9   :  { %5594 = vst [vmem:[#allocation19_spill] sm:$0xff] %v4408_v14  ;;  %v4410_v21 = vpop.f32.mrf.mxu3  ;;  %v4414_v23 = vpop.f32.mrf.mxu1 }
  0xda   :  { %5595 = vst [vmem:[#allocation20_spill] sm:$0xff] %v4410_v21 }
  0xdb   :  { %5596 = vst [vmem:[#allocation21_spill] sm:$0xff] %v4412_v22 }
  0xdc   :  { %5597 = vst [vmem:[#allocation22_spill] sm:$0xff] %v4414_v23 }
  0xe0   :  { %v4416_v25 = vpop.f32.mrf.mxu2  ;;  %v4423_v42 = vpop.f32.mrf.mxu0 }
  0xe1   :  { %5598 = vst [vmem:[#allocation23_spill] sm:$0xff] %v4416_v25  ;;  %v4421_v28 = vpop.f32.mrf.mxu3  ;;  %v4425_v45 = vpop.f32.mrf.mxu1  ;;  %v3404_v25 = vld [vmem:[%s5576_s2 + $0xc] sm:$0xf0] }
  0xe2   :  { %5599 = vst [vmem:[#allocation24_spill] sm:$0xff] %v4421_v28  ;;  %v3402_v28 = vld [vmem:[%s5576_s2 + $0x4] sm:$0xf]  ;;  %v4436_v23 = vor.u32 %v3404_v25, %v3198_v50 }
  0xe3   :  { %5600 = vst [vmem:[#allocation25_spill] sm:$0xff] %v4423_v42  ;;  %423 = vmatmul.bf16.gmra.mxu0 %v3366_v27  ;;  %v3405_v42 = vld [vmem:[%s5576_s2 + $0x14] sm:$0xf0] }
  0xe4   :  { %5601 = vst [vmem:[#allocation26_spill] sm:$0xff] %v4425_v45  ;;  %512 = vmatmul.bf16.gmra.mxu1 %v3366_v27  ;;  %v3200_v45 = vld [vmem:[%s5576_s2 + $0x10] sm:$0xf0]  ;;  %1054 = vmatpush.bf16.msrb.mxu0 %v4436_v23 }
  0xe5   :  { %601 = vmatmul.bf16.gmra.mxu2 %v3366_v27  ;;  %v4449_v21 = vor.u32 %v3402_v28, %v3200_v45  ;;  %v3208_v28 = vld [vmem:[%s5576_s2 + $0x18] sm:$0xf0] }
  0xe6   :  { %690 = vmatmul.bf16.gmra.mxu3 %v3366_v27  ;;  %v3206_v27 = vld [vmem:[%s5576_s2 + $0x8] sm:$0xf] }
  0xe7   :  { %v4451_v14 = vor.u32 %v3405_v42, %v3206_v27  ;;  %1068 = vmatpush.bf16.msrb.mxu1 %v4449_v21  ;;  %v3367_v27 = vld [vmem:[%s5577_s0 + $0x68] sm:$0xff] }
  0xe8   :  { %v4447_v22 = vpop.f32.mrf.mxu2  ;;  %v4455_v50 = vpop.f32.mrf.mxu0  ;;  %1168 = vmatpush.bf16.msra.mxu0 %v4080_v36 }
  0xe9   :  { %5602 = vst [vmem:[#allocation27_spill] sm:$0xff] %v4447_v22  ;;  %v4453_v25 = vpop.f32.mrf.mxu3  ;;  %v4458_v1 = vpop.f32.mrf.mxu1  ;;  %1082 = vmatpush.bf16.msrb.mxu2 %v4451_v14  ;;  %v3403_v22 = vld [vmem:[%s5576_s2 + $0xc] sm:$0xf] }
  0xea   :  { %5603 = vst [vmem:[#allocation28_spill] sm:$0xff] %v4453_v25  ;;  %v4470_v42 = vor.u32 %v3403_v22, %v3208_v28 }
  0xeb   :  { %5604 = vst [vmem:[#allocation29_spill] sm:$0xff] %v4455_v50  ;;  %1182 = vmatpush.bf16.msra.mxu1 %v4091_v40  ;;  %v3369_v50 = vld [vmem:[%s5577_s0 + $0x78] sm:$0xff] }
  0xec   :  { %5605 = vst [vmem:[#allocation30_spill] sm:$0xff] %v4458_v1  ;;  %1096 = vmatpush.bf16.msrb.mxu3 %v4470_v42  ;;  %1169 = vmatpush.bf16.msra.mxu0 %v4116_v48 }
  0xed   :  { %1196 = vmatpush.bf16.msra.mxu2 %v4099_v43 }
  0xef   :  { %1183 = vmatpush.bf16.msra.mxu1 %v4127_v52 }
  0xf0   :  { %1210 = vmatpush.bf16.msra.mxu3 %v4102_v44  ;;  %v4476_v45 = vpop.f32.mrf.mxu2  ;;  %v4485_v28 = vpop.f32.mrf.mxu0  ;;  %1170 = vmatpush.bf16.msra.mxu0 %v4158_v62 }
  0xf1   :  { %5606 = vst [vmem:[#allocation31_spill] sm:$0xff] %v4476_v45  ;;  %1197 = vmatpush.bf16.msra.mxu2 %v4129_v53  ;;  %v4483_v22 = vpop.f32.mrf.mxu3  ;;  %v4487_v1 = vpop.f32.mrf.mxu1 }
  0xf2   :  { %5607 = vst [vmem:[#allocation32_spill] sm:$0xff] %v4483_v22 }
  0xf3   :  { %5608 = vst [vmem:[#allocation33_spill] sm:$0xff] %v4485_v28  ;;  %428 = vmatmul.bf16.gmra.mxu0 %v3367_v27  ;;  %1184 = vmatpush.bf16.msra.mxu1 %v4169_v2 }
  0xf4   :  { %5609 = vst [vmem:[#allocation34_spill] sm:$0xff] %v4487_v1  ;;  %1211 = vmatpush.bf16.msra.mxu3 %v4138_v56  ;;  %517 = vmatmul.bf16.gmra.mxu1 %v3367_v27 }
  0xf5   :  { %606 = vmatmul.bf16.gmra.mxu2 %v3367_v27  ;;  %1171 = vmatpush.bf16.msra.mxu0 %v4200_v12 }
  0xf6   :  { %695 = vmatmul.bf16.gmra.mxu3 %v3367_v27  ;;  %1198 = vmatpush.bf16.msra.mxu2 %v4171_v3 }
  0xf7   :  { %1185 = vmatpush.bf16.msra.mxu1 %v4211_v16 }
  0xf8   :  { %1212 = vmatpush.bf16.msra.mxu3 %v4180_v6  ;;  %v4495_v22 = vpop.f32.mrf.mxu2  ;;  %v4500_v28 = vpop.f32.mrf.mxu0 }
  0xf9   :  { %5610 = vst [vmem:[#allocation35_spill] sm:$0xff] %v4495_v22  ;;  %v4498_v1 = vpop.f32.mrf.mxu3  ;;  %v4502_v45 = vpop.f32.mrf.mxu1  ;;  %1172 = vmatpush.bf16.msra.mxu0 %v4242_v26 }
  0xfa   :  { %5611 = vst [vmem:[#allocation36_spill] sm:$0xff] %v4498_v1  ;;  %1199 = vmatpush.bf16.msra.mxu2 %v4213_v17 }
  0xfb   :  { %5612 = vst [vmem:[#allocation37_spill] sm:$0xff] %v4500_v28  ;;  %1186 = vmatpush.bf16.msra.mxu1 %v4253_v30 }
  0xfc   :  { %5613 = vst [vmem:[#allocation38_spill] sm:$0xff] %v4502_v45  ;;  %1213 = vmatpush.bf16.msra.mxu3 %v4222_v20  ;;  %v3368_v45 = vld [vmem:[%s5577_s0 + $0x70] sm:$0xff] }
  0xfd   :  { %1173 = vmatpush.bf16.msra.mxu0 %v4288_v46 }
  0xfe   :  { %1200 = vmatpush.bf16.msra.mxu2 %v4255_v31 }
  0xff   :  { %1187 = vmatpush.bf16.msra.mxu1 %v4301_v54 }
 0x100   :  { %1214 = vmatpush.bf16.msra.mxu3 %v4266_v34  ;;  %v4511_v27 = vpop.f32.mrf.mxu2  ;;  %v4519_v1 = vpop.f32.mrf.mxu0 }
 0x101   :  { %5614 = vst [vmem:[#allocation39_spill] sm:$0xff] %v4511_v27  ;;  %v4517_v28 = vpop.f32.mrf.mxu3  ;;  %v4521_v22 = vpop.f32.mrf.mxu1  ;;  %1174 = vmatpush.bf16.msra.mxu0 %v4362_v24 }
 0x102   :  { %5615 = vst [vmem:[#allocation40_spill] sm:$0xff] %v4517_v28  ;;  %1201 = vmatpush.bf16.msra.mxu2 %v4303_v55 }
 0x103   :  { %5616 = vst [vmem:[#allocation41_spill] sm:$0xff] %v4519_v1  ;;  %433 = vmatmul.bf16.gmra.mxu0 %v3368_v45  ;;  %1188 = vmatpush.bf16.msra.mxu1 %v4375_v32 }
 0x104   :  { %5617 = vst [vmem:[#allocation42_spill] sm:$0xff] %v4521_v22  ;;  %1215 = vmatpush.bf16.msra.mxu3 %v4320_v63  ;;  %522 = vmatmul.bf16.gmra.mxu1 %v3368_v45 }
 0x105   :  { %611 = vmatmul.bf16.gmra.mxu2 %v3368_v45  ;;  %1175 = vmatpush.bf16.msra.mxu0 %v4436_v23 }
 0x106   :  { %700 = vmatmul.bf16.gmra.mxu3 %v3368_v45  ;;  %1202 = vmatpush.bf16.msra.mxu2 %v4377_v33 }
 0x107   :  { %1189 = vmatpush.bf16.msra.mxu1 %v4449_v21 }
 0x108   :  { %1216 = vmatpush.bf16.msra.mxu3 %v4394_v47  ;;  %v4530_v1 = vpop.f32.mrf.mxu2  ;;  %v4535_v28 = vpop.f32.mrf.mxu0 }
 0x109   :  { %5618 = vst [vmem:[#allocation43_spill] sm:$0xff] %v4530_v1  ;;  %v4533_v22 = vpop.f32.mrf.mxu3  ;;  %v4537_v27 = vpop.f32.mrf.mxu1 }
 0x10a   :  { %5619 = vst [vmem:[#allocation44_spill] sm:$0xff] %v4533_v22  ;;  %1203 = vmatpush.bf16.msra.mxu2 %v4451_v14 }
 0x10b   :  { %5620 = vst [vmem:[#allocation45_spill] sm:$0xff] %v4535_v28 }
 0x10c   :  { %5621 = vst [vmem:[#allocation46_spill] sm:$0xff] %v4537_v27  ;;  %1217 = vmatpush.bf16.msra.mxu3 %v4470_v42 }
 0x110   :  { %v4541_v45 = vpop.f32.mrf.mxu2  ;;  %v4548_v1 = vpop.f32.mrf.mxu0 }
 0x111   :  { %5622 = vst [vmem:[#allocation47_spill] sm:$0xff] %v4541_v45  ;;  %v4546_v25 = vpop.f32.mrf.mxu3  ;;  %v4550_v61 = vpop.f32.mrf.mxu1 }
 0x112   :  { %5623 = vst [vmem:[#allocation48_spill] sm:$0xff] %v4546_v25 }
 0x113   :  { %5624 = vst [vmem:[#allocation49_spill] sm:$0xff] %v4548_v1  ;;  %438 = vmatmul.bf16.gmra.mxu0 %v3369_v50 }
 0x114   :  { %5625 = vst [vmem:[#allocation50_spill] sm:$0xff] %v4550_v61  ;;  %527 = vmatmul.bf16.gmra.mxu1 %v3369_v50  ;;  %v3850_v61 = vmov 0.0|0.0  }
 0x115   :  { %616 = vmatmul.bf16.gmra.mxu2 %v3369_v50 }
 0x116   :  { %705 = vmatmul.bf16.gmra.mxu3 %v3369_v50 }
 0x118   :  { %v4552_v27 = vpop.f32.mrf.mxu2  ;;  %v4556_v22 = vpop.f32.mrf.mxu0 }
 0x119   :  { %5626 = vst [vmem:[#allocation51_spill] sm:$0xff] %v4552_v27  ;;  %v4554_v28 = vpop.f32.mrf.mxu3  ;;  %v4558_v45 = vpop.f32.mrf.mxu1 }
 0x11a   :  { %5627 = vst [vmem:[#allocation52_spill] sm:$0xff] %v4554_v28 }
 0x11b   :  { %5628 = vst [vmem:[#allocation53_spill] sm:$0xff] %v4556_v22 }
 0x11c   :  { %5629 = vst [vmem:[#allocation54_spill] sm:$0xff] %v4558_v45 }
 0x120   :  { %v4560_v60 = vpop.f32.mrf.mxu2  ;;  %v4564_v25 = vpop.f32.mrf.mxu0 }
 0x121   :  { %5630 = vst [vmem:[#allocation55_spill] sm:$0xff] %v4560_v60  ;;  %v4562_v49 = vpop.f32.mrf.mxu3  ;;  %v4566_v1 = vpop.f32.mrf.mxu1 }
 0x122   :  { %5631 = vst [vmem:[#allocation56_spill] sm:$0xff] %v4562_v49 }
 0x123   :  { %5632 = vst [vmem:[#allocation57_spill] sm:$0xff] %v4564_v25  ;;  %1055 = vmatmul.bf16.vlgmr.msrb.gmra.mxu0 %v3850_v61 }
 0x124   :  { %5633 = vst [vmem:[#allocation58_spill] sm:$0xff] %v4566_v1  ;;  %1069 = vmatmul.bf16.vlgmr.msrb.gmra.mxu1 %v3850_v61  ;;  %1290 = vmatpush.bf16.msrb.mxu0 %v4080_v36 }
 0x125   :  { %1083 = vmatmul.bf16.vlgmr.msrb.gmra.mxu2 %v3850_v61  ;;  %1304 = vmatpush.bf16.msrb.mxu1 %v4091_v40 }
 0x126   :  { %1097 = vmatmul.bf16.vlgmr.msrb.gmra.mxu3 %v3850_v61  ;;  %1318 = vmatpush.bf16.msrb.mxu2 %v4099_v43 }
 0x127   :  { %1332 = vmatpush.bf16.msrb.mxu3 %v4102_v44 }
 0x128   :  { %v4571_v50 = vpop.f32.mrf.mxu2  ;;  %v4576_v25 = vpop.f32.mrf.mxu0  ;;  %1291 = vmatpush.bf16.msrb.mxu0 %v4116_v48 }
 0x129   :  { %5634 = vst [vmem:[#allocation59_spill] sm:$0xff] %v4571_v50  ;;  %v4574_v49 = vpop.f32.mrf.mxu3  ;;  %v4578_v1 = vpop.f32.mrf.mxu1  ;;  %1305 = vmatpush.bf16.msrb.mxu1 %v4127_v52 }
 0x12a   :  { %5635 = vst [vmem:[#allocation60_spill] sm:$0xff] %v4574_v49  ;;  %1319 = vmatpush.bf16.msrb.mxu2 %v4129_v53 }
 0x12b   :  { %5636 = vst [vmem:[#allocation61_spill] sm:$0xff] %v4576_v25  ;;  %1333 = vmatpush.bf16.msrb.mxu3 %v4138_v56 }
 0x12c   :  { %5637 = vst [vmem:[#allocation62_spill] sm:$0xff] %v4578_v1  ;;  %1292 = vmatpush.bf16.msrb.mxu0 %v4158_v62 }
 0x12d   :  { %1306 = vmatpush.bf16.msrb.mxu1 %v4169_v2 }
 0x12e   :  { %1320 = vmatpush.bf16.msrb.mxu2 %v4171_v3 }
 0x12f   :  { %1334 = vmatpush.bf16.msrb.mxu3 %v4180_v6 }
 0x130   :  { %v4587_v61 = vpop.f32.mrf.mxu2  ;;  %v4592_v1 = vpop.f32.mrf.mxu0  ;;  %1293 = vmatpush.bf16.msrb.mxu0 %v4200_v12 }
 0x131   :  { %5638 = vst [vmem:[#allocation63_spill] sm:$0xff] %v4587_v61  ;;  %v4590_v25 = vpop.f32.mrf.mxu3  ;;  %v4594_v49 = vpop.f32.mrf.mxu1  ;;  %1307 = vmatpush.bf16.msrb.mxu1 %v4211_v16 }
 0x132   :  { %5639 = vst [vmem:[#allocation64_spill] sm:$0xff] %v4590_v25  ;;  %1321 = vmatpush.bf16.msrb.mxu2 %v4213_v17 }
 0x133   :  { %5640 = vst [vmem:[#allocation65_spill] sm:$0xff] %v4592_v1  ;;  %1335 = vmatpush.bf16.msrb.mxu3 %v4222_v20 }
 0x134   :  { %5641 = vst [vmem:[#allocation66_spill] sm:$0xff] %v4594_v49  ;;  %1294 = vmatpush.bf16.msrb.mxu0 %v4242_v26 }
 0x135   :  { %1308 = vmatpush.bf16.msrb.mxu1 %v4253_v30 }
 0x136   :  { %1322 = vmatpush.bf16.msrb.mxu2 %v4255_v31 }
 0x137   :  { %1336 = vmatpush.bf16.msrb.mxu3 %v4266_v34 }
 0x138   :  { %v4603_v61 = vpop.f32.mrf.mxu2  ;;  %v4608_v49 = vpop.f32.mrf.mxu0  ;;  %1295 = vmatpush.bf16.msrb.mxu0 %v4288_v46 }
 0x139   :  { %5642 = vst [vmem:[#allocation67_spill] sm:$0xff] %v4603_v61  ;;  %v4606_v1 = vpop.f32.mrf.mxu3  ;;  %v4610_v25 = vpop.f32.mrf.mxu1  ;;  %1309 = vmatpush.bf16.msrb.mxu1 %v4301_v54 }
 0x13a   :  { %5643 = vst [vmem:[#allocation68_spill] sm:$0xff] %v4606_v1  ;;  %1323 = vmatpush.bf16.msrb.mxu2 %v4303_v55 }
 0x13b   :  { %5644 = vst [vmem:[#allocation69_spill] sm:$0xff] %v4608_v49  ;;  %1337 = vmatpush.bf16.msrb.mxu3 %v4320_v63 }
 0x13c   :  { %5645 = vst [vmem:[#allocation70_spill] sm:$0xff] %v4610_v25  ;;  %1296 = vmatpush.bf16.msrb.mxu0 %v4362_v24 }
 0x13d   :  { %1310 = vmatpush.bf16.msrb.mxu1 %v4375_v32 }
 0x13e   :  { %1324 = vmatpush.bf16.msrb.mxu2 %v4377_v33 }
 0x13f   :  { %1338 = vmatpush.bf16.msrb.mxu3 %v4394_v47 }
 0x140   :  { %v4619_v61 = vpop.f32.mrf.mxu2  ;;  %v4624_v25 = vpop.f32.mrf.mxu0  ;;  %1297 = vmatpush.bf16.msrb.mxu0 %v4436_v23 }
 0x141   :  { %5646 = vst [vmem:[#allocation71_spill] sm:$0xff] %v4619_v61  ;;  %v4622_v49 = vpop.f32.mrf.mxu3  ;;  %v4626_v1 = vpop.f32.mrf.mxu1  ;;  %1311 = vmatpush.bf16.msrb.mxu1 %v4449_v21 }
 0x142   :  { %5647 = vst [vmem:[#allocation72_spill] sm:$0xff] %v4622_v49  ;;  %1325 = vmatpush.bf16.msrb.mxu2 %v4451_v14 }
 0x143   :  { %5648 = vst [vmem:[#allocation73_spill] sm:$0xff] %v4624_v25  ;;  %1339 = vmatpush.bf16.msrb.mxu3 %v4470_v42 }
 0x144   :  { %5649 = vst [vmem:[#allocation74_spill] sm:$0xff] %v4626_v1 }
 0x148   :  { %v4632_v50 = vpop.f32.mrf.mxu2  ;;  %v4636_v61 = vpop.f32.mrf.mxu0 }
 0x149   :  { %5650 = vst [vmem:[#allocation75_spill] sm:$0xff] %v4632_v50  ;;  %v4634_v60 = vpop.f32.mrf.mxu3  ;;  %v4638_v45 = vpop.f32.mrf.mxu1 }
 0x14a   :  { %5651 = vst [vmem:[#allocation76_spill] sm:$0xff] %v4634_v60 }
 0x14b   :  { %5652 = vst [vmem:[#allocation77_spill] sm:$0xff] %v4636_v61 }
 0x14c   :  { %5653 = vst [vmem:[#allocation78_spill] sm:$0xff] %v4638_v45 }
 0x150   :  { %v4640_v49 = vpop.f32.mrf.mxu2  ;;  %v4644_v1 = vpop.f32.mrf.mxu0 }
 0x151   :  { %5654 = vst [vmem:[#allocation79_spill] sm:$0xff] %v4640_v49  ;;  %v4642_v25 = vpop.f32.mrf.mxu3  ;;  %v4646_v22 = vpop.f32.mrf.mxu1 }
 0x152   :  { %5655 = vst [vmem:[#allocation80_spill] sm:$0xff] %v4642_v25 }
 0x153   :  { %5656 = vst [vmem:[#allocation81_spill] sm:$0xff] %v4644_v1 }
 0x154   :  { %5657 = vst [vmem:[#allocation82_spill] sm:$0xff] %v4646_v22 }
 0x158   :  { %v4648_v28 = vpop.f32.mrf.mxu2  ;;  %v4652_v41 = vpop.f32.mrf.mxu0 }
 0x159   :  { %5658 = vst [vmem:[#allocation83_spill] sm:$0xff] %v4648_v28  ;;  %v4650_v27 = vpop.f32.mrf.mxu3  ;;  %v4654_v50 = vpop.f32.mrf.mxu1 }
 0x15a   :  { %5659 = vst [vmem:[#allocation84_spill] sm:$0xff] %v4650_v27 }
 0x15b   :  { %5660 = vst [vmem:[#allocation85_spill] sm:$0xff] %v4652_v41 }
 0x15c   :  { %5661 = vst [vmem:[#allocation86_spill] sm:$0xff] %v4654_v50 }
 0x160   :  { %v4656_v60 = vpop.f32.mrf.mxu2  ;;  %v4660_v45 = vpop.f32.mrf.mxu0 }
 0x161   :  { %5662 = vst [vmem:[#allocation87_spill] sm:$0xff] %v4656_v60  ;;  %v4658_v61 = vpop.f32.mrf.mxu3  ;;  %v4662_v49 = vpop.f32.mrf.mxu1 }
 0x162   :  { %5663 = vst [vmem:[#allocation88_spill] sm:$0xff] %v4658_v61 }
 0x163   :  { %5664 = vst [vmem:[#allocation89_spill] sm:$0xff] %v4660_v45 }
 0x164   :  { %5665 = vst [vmem:[#allocation90_spill] sm:$0xff] %v4662_v49 }
 0x168   :  { %v4664_v25 = vpop.f32.mrf.mxu2  ;;  %v4668_v22 = vpop.f32.mrf.mxu0 }
 0x169   :  { %5666 = vst [vmem:[#allocation91_spill] sm:$0xff] %v4664_v25  ;;  %v4666_v1 = vpop.f32.mrf.mxu3  ;;  %v4670_v28 = vpop.f32.mrf.mxu1 }
 0x16a   :  { %5667 = vst [vmem:[#allocation92_spill] sm:$0xff] %v4666_v1 }
 0x16b   :  { %5668 = vst [vmem:[#allocation93_spill] sm:$0xff] %v4668_v22 }
 0x16c   :  { %5669 = vst [vmem:[#allocation94_spill] sm:$0xff] %v4670_v28 }
 0x170   :  { %v4672_v27 = vpop.f32.mrf.mxu2  ;;  %v4676_v50 = vpop.f32.mrf.mxu0 }
 0x171   :  { %5670 = vst [vmem:[#allocation95_spill] sm:$0xff] %v4672_v27  ;;  %v4674_v41 = vpop.f32.mrf.mxu3  ;;  %v4678_v60 = vpop.f32.mrf.mxu1 }
 0x172   :  { %5671 = vst [vmem:[#allocation96_spill] sm:$0xff] %v4674_v41 }
 0x173   :  { %5672 = vst [vmem:[#allocation97_spill] sm:$0xff] %v4676_v50 }
 0x174   :  { %5673 = vst [vmem:[#allocation98_spill] sm:$0xff] %v4678_v60 }
 0x178   :  { %v4680_v61 = vpop.f32.mrf.mxu2  ;;  %v4684_v49 = vpop.f32.mrf.mxu0 }
 0x179   :  { %5674 = vst [vmem:[#allocation99_spill] sm:$0xff] %v4680_v61  ;;  %v4682_v45 = vpop.f32.mrf.mxu3  ;;  %v4686_v25 = vpop.f32.mrf.mxu1 }
 0x17a   :  { %5675 = vst [vmem:[#allocation100_spill] sm:$0xff] %v4682_v45 }
 0x17b   :  { %5676 = vst [vmem:[#allocation101_spill] sm:$0xff] %v4684_v49 }
 0x17c   :  { %5677 = vst [vmem:[#allocation102_spill] sm:$0xff] %v4686_v25 }
 0x180   :  { %v4688_v1 = vpop.f32.mrf.mxu2  ;;  %v4692_v28 = vpop.f32.mrf.mxu0 }
 0x181   :  { %5678 = vst [vmem:[#allocation103_spill] sm:$0xff] %v4688_v1  ;;  %v4690_v22 = vpop.f32.mrf.mxu3  ;;  %v4694_v27 = vpop.f32.mrf.mxu1 }
 0x182   :  { %5679 = vst [vmem:[#allocation104_spill] sm:$0xff] %v4690_v22 }
 0x183   :  { %5680 = vst [vmem:[#allocation105_spill] sm:$0xff] %v4692_v28 }
 0x184   :  { %5681 = vst [vmem:[#allocation106_spill] sm:$0xff] %v4694_v27 }
 0x188   :  { %v4696_v41 = vpop.f32.mrf.mxu2  ;;  %v4700_v60 = vpop.f32.mrf.mxu0 }
 0x189   :  { %5682 = vst [vmem:[#allocation107_spill] sm:$0xff] %v4696_v41  ;;  %v4698_v50 = vpop.f32.mrf.mxu3  ;;  %v4702_v61 = vpop.f32.mrf.mxu1  ;;  %v89_v41 = vld [vmem:[%s5578_s3] sm:$0xf] }
 0x18a   :  { %5683 = vst [vmem:[#allocation108_spill] sm:$0xff] %v4698_v50  ;;  %v4737_v35 = vperm.slane %v89_v41, 3 }
 0x18b   :  { %5684 = vst [vmem:[#allocation109_spill] sm:$0xff] %v4700_v60 }
 0x18c   :  { %5685 = vst [vmem:[#allocation110_spill] sm:$0xff] %v4702_v61  ;;  %v4723_v61 = vperm.slane %v89_v41, 0 }
 0x190   :  { %v4704_v45 = vpop.f32.mrf.mxu2  ;;  %v4708_v25 = vpop.f32.mrf.mxu0 }
 0x191   :  { %5686 = vst [vmem:[#allocation111_spill] sm:$0xff] %v4704_v45  ;;  %v4706_v49 = vpop.f32.mrf.mxu3  ;;  %v4710_v1 = vpop.f32.mrf.mxu1  ;;  %v4725_v45 = vperm.slane %v89_v41, 1 }
 0x192   :  { %5687 = vst [vmem:[#allocation112_spill] sm:$0xff] %v4706_v49 }
 0x193   :  { %5688 = vst [vmem:[#allocation113_spill] sm:$0xff] %v4708_v25  ;;  %v365_v25 = vadd.f32 %v4275_v38, %v4723_v61 }
 0x194   :  { %5689 = vst [vmem:[#allocation114_spill] sm:$0xff] %v4710_v1 }
 0x198   :  { %v4712_v22 = vpop.f32.mrf.mxu2  ;;  %v4719_v50 = vpop.f32.mrf.mxu0 }
 0x199   :  { %5690 = vst [vmem:[#allocation115_spill] sm:$0xff] %v4712_v22  ;;  %v4717_v27 = vpop.f32.mrf.mxu3  ;;  %v4721_v60 = vpop.f32.mrf.mxu1  ;;  %v454_v22 = vadd.f32 %v4277_v39, %v4725_v45  ;;  %v632_v39 = vadd.f32 %v4305_v57, %v4737_v35 }
 0x19a   :  { %5691 = vst [vmem:[#allocation116_spill] sm:$0xff] %v4717_v27 }
 0x19b   :  { %5692 = vst [vmem:[#allocation117_spill] sm:$0xff] %v4719_v50  ;;  %v4735_v50 = vperm.slane %v89_v41, 2 }
 0x19c   :  { %5693 = vst [vmem:[#allocation118_spill] sm:$0xff] %v4721_v60 }
 0x19d   :  { %v543_v38 = vadd.f32 %v4299_v51, %v4735_v50 }
 0x1a0   :  { %v4729_v1 = vpop.f32.mrf.mxu2  ;;  %v1056_v28 = vpop.f32.mrf.mxu0 }
 0x1a1   :  { %5694 = vst [vmem:[#allocation119_spill] sm:$0xff] %v4729_v1  ;;  %v4733_v49 = vpop.f32.mrf.mxu3  ;;  %v1103_v27 = vadd.f32 %v1056_v28, %v365_v25  ;;  %v1070_v37 = vpop.f32.mrf.mxu1  ;;  %v456_v28 = vadd.f32 %v4310_v59, %v4725_v45  ;;  %v634_v59 = vadd.f32 %v4328_v4, %v4737_v35 }
 0x1a2   :  { %5695 = vst [vmem:[#allocation120_spill] sm:$0xff] %v4733_v49  ;;  %v1104_v60 = vadd.f32 %v1070_v37, %v454_v22  ;;  %v367_v49 = vadd.f32 %v4307_v58, %v4723_v61  ;;  %v545_v58 = vadd.f32 %v4323_v0, %v4735_v50 }
 0x1a3   :  { %v1111_v29 = vmul.f32 0.5, %v1103_v27 }
 0x1a4   :  { %v1119_v19 = vmul.f32 0.5, %v1104_v60 }
 0x1a5   :  { %3530 = vtanh.f32 %v1111_v29 }
 0x1a6   :  { %3532 = vtanh.f32 %v1119_v19 }
 0x1a8   :  { %v1084_v25 = vpop.f32.mrf.mxu2  ;;  %v1058_v22 = vpop.f32.mrf.mxu0 }
 0x1a9   :  { %v1105_v37 = vadd.f32 %v1084_v25, %v543_v38  ;;  %v1098_v41 = vpop.f32.mrf.mxu3  ;;  %v1107_v60 = vadd.f32 %v1058_v22, %v367_v49  ;;  %v1072_v29 = vpop.f32.mrf.mxu1 }
 0x1aa   :  { %v1106_v27 = vadd.f32 %v1098_v41, %v632_v39  ;;  %v1108_v1 = vadd.f32 %v1072_v29, %v456_v28 }
 0x1ab   :  { %3534 = vtanh.f32 %v1105_v37  ;;  %v3531_v51 = vpop.eup %3530  ;;  %v1112_v19 = vmul.f32 0.5, %v1107_v60 }
 0x1ac   :  { %v3533_v18 = vpop.eup %3532  ;;  %v1115_v15 = vmul.f32 0.5, %v3531_v51  ;;  %v1120_v57 = vmul.f32 0.5, %v1108_v1  ;;  %v1129_v11 = vmul.f32 0.5, %v1106_v27 }
 0x1ad   :  { %v1123_v13 = vmul.f32 0.5, %v3533_v18  ;;  %3536 = vtanh.f32 %v1112_v19 }
 0x1ae   :  { %v1117_v10 = vadd.f32 0.5, %v1115_v15  ;;  %3538 = vtanh.f32 %v1120_v57 }
 0x1af   :  { %v1125_v38 = vadd.f32 0.5, %v1123_v13  ;;  %3540 = vtanh.f32 %v1129_v11 }
 0x1b0   :  { %v1086_v49 = vpop.f32.mrf.mxu2 }
 0x1b1   :  { %v3535_v39 = vpop.eup %3534  ;;  %v1109_v25 = vadd.f32 %v1086_v49, %v545_v58  ;;  %v1100_v28 = vpop.f32.mrf.mxu3  ;;  %v1137_v37 = vmul.f32 0.0, %v1125_v38 }
 0x1b2   :  { %v1139_v41 = vmul.f32 %v3535_v39, %v1117_v10  ;;  %v1110_v1 = vadd.f32 %v1100_v28, %v634_v59 }
 0x1b3   :  { %3542 = vtanh.f32 %v1109_v25  ;;  %v3537_v0 = vpop.eup %3536 }
 0x1b4   :  { %v4751_v18 = vadd.f32 %v1139_v41, %v1137_v37  ;;  %v1130_v22 = vmul.f32 0.5, %v1110_v1  ;;  %v3539_v15 = vpop.eup %3538  ;;  %v1116_v27 = vmul.f32 0.5, %v3537_v0 }
 0x1b5   :  { %v1124_v60 = vmul.f32 0.5, %v3539_v15  ;;  %v3541_v4 = vpop.eup %3540 }
 0x1b6   :  { %3544 = vtanh.f32 %v1130_v22  ;;  %v1118_v13 = vadd.f32 0.5, %v1116_v27  ;;  %v1133_v10 = vmul.f32 0.5, %v3541_v4  ;;  %v459_v4 = vadd.f32 %v4332_v7, %v4725_v45 }
 0x1b7   :  { %3546 = vtanh.f32 %v4751_v18  ;;  %v1126_v51 = vadd.f32 0.5, %v1124_v60  ;;  %v370_v60 = vadd.f32 %v4330_v5, %v4723_v61 }
 0x1b8   :  { %v1135_v38 = vadd.f32 0.5, %v1133_v10 }
 0x1b9   :  { %v3543_v29 = vpop.eup %3542  ;;  %v1138_v57 = vmul.f32 0.0, %v1126_v51 }
 0x1ba   :  { %v1140_v19 = vmul.f32 %v3543_v29, %v1118_v13 }
 0x1bc   :  { %v3545_v11 = vpop.eup %3544  ;;  %v4754_v58 = vadd.f32 %v1140_v19, %v1138_v57 }
 0x1bd   :  { %v3547_v59 = vpop.eup %3546  ;;  %v1134_v49 = vmul.f32 0.5, %v3545_v11  ;;  %v548_v11 = vadd.f32 %v4334_v8, %v4735_v50 }
 0x1be   :  { %3548 = vtanh.f32 %v4754_v58  ;;  %v1145_v39 = vmul.f32 %v3547_v59, %v1135_v38  ;;  %v637_v59 = vadd.f32 %v4336_v9, %v4737_v35  ;;  %v5696_v38 = vld [vmem:[#allocation5_spill] sm:$0xff] }
 0x1bf   :  { %v1136_v25 = vadd.f32 0.5, %v1134_v49  ;;  %v372_v5 = vadd.f32 %v5696_v38, %v4723_v61  ;;  %v5697_v49 = vld [vmem:[#allocation6_spill] sm:$0xff] }
 0x1c0   :  { %v1147_v37 = vpack.c.bf16 %v1145_v39, %v1145_v39  ;;  %v461_v7 = vadd.f32 %v5697_v49, %v4725_v45 }
 0x1c2   :  { %v1164_v0 = vunpack.c.l.b16 %v1147_v37 }
 0x1c4   :  { %v3549_v28 = vpop.eup %3548 }
 0x1c5   :  { %v1146_v41 = vmul.f32 %v3549_v28, %v1136_v25 }
 0x1c7   :  { %v1148_v1 = vpack.c.bf16 %v1146_v41, %v1146_v41  ;;  %v3437_v22 = vpack.c.bf16 %v1146_v41, %v1145_v39 }
 0x1c9   :  { %3438 = vst [vmem:[%s5579_s4] sm:$0xff] %v3437_v22   ;;  %v1165_v15 = vunpack.c.l.b16 %v1148_v1 }
 0x1cb   :  { %v1166_v27 = vpack.c.b16 %v1165_v15, %v1164_v0 }
 0x1cd   :  { %1176 = vmatmul.bf16.vlgmr.msra.gmra.mxu0 %v1166_v27  ;;  %1190 = vmatmul.bf16.vlgmr.msra.gmra.mxu1 %v1166_v27 }
 0x1ce   :  { %1204 = vmatmul.bf16.vlgmr.msra.gmra.mxu2 %v1166_v27  ;;  %1218 = vmatmul.bf16.vlgmr.msra.gmra.mxu3 %v1166_v27 }
 0x1cf   :  { %1412 = vmatpush.bf16.msra.mxu0 %v4080_v36  ;;  %1426 = vmatpush.bf16.msra.mxu1 %v4091_v40 }
 0x1d0   :  { %1440 = vmatpush.bf16.msra.mxu2 %v4099_v43  ;;  %1454 = vmatpush.bf16.msra.mxu3 %v4102_v44 }
 0x1d3   :  { %1413 = vmatpush.bf16.msra.mxu0 %v4116_v48  ;;  %1427 = vmatpush.bf16.msra.mxu1 %v4127_v52 }
 0x1d4   :  { %1441 = vmatpush.bf16.msra.mxu2 %v4129_v53  ;;  %1455 = vmatpush.bf16.msra.mxu3 %v4138_v56 }
 0x1d7   :  { %1414 = vmatpush.bf16.msra.mxu0 %v4158_v62  ;;  %1428 = vmatpush.bf16.msra.mxu1 %v4169_v2 }
 0x1d8   :  { %1442 = vmatpush.bf16.msra.mxu2 %v4171_v3  ;;  %1456 = vmatpush.bf16.msra.mxu3 %v4180_v6 }
 0x1db   :  { %1415 = vmatpush.bf16.msra.mxu0 %v4200_v12  ;;  %1429 = vmatpush.bf16.msra.mxu1 %v4211_v16 }
 0x1dc   :  { %1443 = vmatpush.bf16.msra.mxu2 %v4213_v17  ;;  %1457 = vmatpush.bf16.msra.mxu3 %v4222_v20 }
 0x1df   :  { %1416 = vmatpush.bf16.msra.mxu0 %v4242_v26  ;;  %1430 = vmatpush.bf16.msra.mxu1 %v4253_v30 }
 0x1e0   :  { %1444 = vmatpush.bf16.msra.mxu2 %v4255_v31  ;;  %1458 = vmatpush.bf16.msra.mxu3 %v4266_v34 }
 0x1e3   :  { %1417 = vmatpush.bf16.msra.mxu0 %v4288_v46  ;;  %1431 = vmatpush.bf16.msra.mxu1 %v4301_v54 }
 0x1e4   :  { %1445 = vmatpush.bf16.msra.mxu2 %v4303_v55  ;;  %1459 = vmatpush.bf16.msra.mxu3 %v4320_v63 }
 0x1e7   :  { %1418 = vmatpush.bf16.msra.mxu0 %v4362_v24  ;;  %1432 = vmatpush.bf16.msra.mxu1 %v4375_v32 }
 0x1e8   :  { %1446 = vmatpush.bf16.msra.mxu2 %v4377_v33  ;;  %1460 = vmatpush.bf16.msra.mxu3 %v4394_v47 }
 0x1eb   :  { %1419 = vmatpush.bf16.msra.mxu0 %v4436_v23  ;;  %1433 = vmatpush.bf16.msra.mxu1 %v4449_v21 }
 0x1ec   :  { %1447 = vmatpush.bf16.msra.mxu2 %v4451_v14  ;;  %1461 = vmatpush.bf16.msra.mxu3 %v4470_v42 }
 0x24a   :  { %v1177_v13 = vpop.f32.mrf.mxu0  ;;  %v1191_v29 = vpop.f32.mrf.mxu1 }
 0x24b   :  { %v1224_v51 = vadd.f32 %v1177_v13, %v370_v60  ;;  %v1225_v19 = vadd.f32 %v1191_v29, %v459_v4  ;;  %v5698_v29 = vld [vmem:[#allocation7_spill] sm:$0xff] }
 0x24d   :  { %v1232_v57 = vmul.f32 0.5, %v1224_v51  ;;  %v1240_v10 = vmul.f32 0.5, %v1225_v19  ;;  %v550_v51 = vadd.f32 %v5698_v29, %v4735_v50  ;;  %v5699_v19 = vld [vmem:[#allocation8_spill] sm:$0xff] }
 0x24f   :  { %3550 = vtanh.f32 %v1232_v57  ;;  %v639_v57 = vadd.f32 %v5699_v19, %v4737_v35 }
 0x250   :  { %3552 = vtanh.f32 %v1240_v10 }
 0x251   :  { %v1205_v39 = vpop.f32.mrf.mxu2  ;;  %v1219_v25 = vpop.f32.mrf.mxu3 }
 0x252   :  { %v1226_v28 = vadd.f32 %v1205_v39, %v548_v11  ;;  %v1179_v37 = vpop.f32.mrf.mxu0  ;;  %v1193_v41 = vpop.f32.mrf.mxu1  ;;  %v1227_v1 = vadd.f32 %v1219_v25, %v637_v59 }
 0x253   :  { %v1228_v22 = vadd.f32 %v1179_v37, %v372_v5  ;;  %v1229_v0 = vadd.f32 %v1193_v41, %v461_v7 }
 0x254   :  { %3554 = vtanh.f32 %v1226_v28  ;;  %v1250_v13 = vmul.f32 0.5, %v1227_v1 }
 0x255   :  { %v3551_v8 = vpop.eup %3550  ;;  %v1233_v15 = vmul.f32 0.5, %v1228_v22  ;;  %v1241_v27 = vmul.f32 0.5, %v1229_v0 }
 0x256   :  { %v3553_v60 = vpop.eup %3552  ;;  %v1236_v9 = vmul.f32 0.5, %v3551_v8 }
 0x257   :  { %v1244_v4 = vmul.f32 0.5, %v3553_v60  ;;  %3556 = vtanh.f32 %v1233_v15 }
 0x258   :  { %v1238_v10 = vadd.f32 0.5, %v1236_v9  ;;  %3558 = vtanh.f32 %v1241_v27 }
 0x259   :  { %v1246_v11 = vadd.f32 0.5, %v1244_v4  ;;  %v1207_v59 = vpop.f32.mrf.mxu2  ;;  %v1221_v38 = vpop.f32.mrf.mxu3  ;;  %3560 = vtanh.f32 %v1250_v13 }
 0x25a   :  { %v3555_v5 = vpop.eup %3554  ;;  %v1230_v49 = vadd.f32 %v1207_v59, %v550_v51  ;;  %v1231_v7 = vadd.f32 %v1221_v38, %v639_v57 }
 0x25b   :  { %v1258_v39 = vmul.f32 %v1246_v11, %v4751_v18  ;;  %v1260_v25 = vmul.f32 %v3555_v5, %v1238_v10 }
 0x25c   :  { %3562 = vtanh.f32 %v1230_v49  ;;  %v1251_v28 = vmul.f32 0.5, %v1231_v7 }
 0x25d   :  { %v3557_v37 = vpop.eup %3556  ;;  %v4809_v41 = vadd.f32 %v1260_v25, %v1258_v39 }
 0x25e   :  { %v3559_v1 = vpop.eup %3558  ;;  %v1237_v22 = vmul.f32 0.5, %v3557_v37  ;;  %3564 = vtanh.f32 %v1251_v28  ;;  %v5700_v28 = vld [vmem:[#allocation9_spill] sm:$0xff] }
 0x25f   :  { %v1245_v0 = vmul.f32 0.5, %v3559_v1  ;;  %v3561_v15 = vpop.eup %3560  ;;  %3566 = vtanh.f32 %v4809_v41  ;;  %v375_v37 = vadd.f32 %v5700_v28, %v4723_v61  ;;  %v5701_v1 = vld [vmem:[#allocation10_spill] sm:$0xff] }
 0x260   :  { %v1239_v8 = vadd.f32 0.5, %v1237_v22  ;;  %v1254_v4 = vmul.f32 0.5, %v3561_v15  ;;  %v464_v22 = vadd.f32 %v5701_v1, %v4725_v45 }
 0x261   :  { %v1247_v27 = vadd.f32 0.5, %v1245_v0 }
 0x262   :  { %v3563_v60 = vpop.eup %3562  ;;  %v1256_v19 = vadd.f32 0.5, %v1254_v4 }
 0x263   :  { %v1259_v9 = vmul.f32 %v1247_v27, %v4754_v58  ;;  %v1261_v18 = vmul.f32 %v3563_v60, %v1239_v8 }
 0x264   :  { %v3565_v13 = vpop.eup %3564 }
 0x265   :  { %v4813_v29 = vadd.f32 %v1261_v18, %v1259_v9  ;;  %v3567_v51 = vpop.eup %3566  ;;  %v1255_v57 = vmul.f32 0.5, %v3565_v13  ;;  %v5702_v18 = vld [vmem:[#allocation11_spill] sm:$0xff]  ;;  %v5703_v13 = vld [vmem:[#allocation12_spill] sm:$0xff] }
 0x266   :  { %v1266_v10 = vmul.f32 %v3567_v51, %v1256_v19  ;;  %v553_v4 = vadd.f32 %v5702_v18, %v4735_v50  ;;  %v642_v51 = vadd.f32 %v5703_v13, %v4737_v35  ;;  %v5704_v19 = vld [vmem:[#allocation13_spill] sm:$0xff] }
 0x267   :  { %3568 = vtanh.f32 %v4813_v29  ;;  %v1257_v11 = vadd.f32 0.5, %v1255_v57  ;;  %v377_v57 = vadd.f32 %v5704_v19, %v4723_v61 }
 0x268   :  { %v1268_v38 = vpack.c.bf16 %v1266_v10, %v1266_v10 }
 0x26a   :  { %v1286_v39 = vunpack.c.l.b16 %v1268_v38 }
 0x26d   :  { %v3569_v59 = vpop.eup %3568 }
 0x26e   :  { %v1267_v5 = vmul.f32 %v3569_v59, %v1257_v11 }
 0x270   :  { %v1269_v49 = vpack.c.bf16 %v1267_v5, %v1267_v5  ;;  %v3442_v7 = vpack.c.bf16 %v1267_v5, %v1266_v10  ;;  %v5705_v10 = vld [vmem:[#allocation14_spill] sm:$0xff] }
 0x271   :  { %v466_v11 = vadd.f32 %v5705_v10, %v4725_v45 }
 0x272   :  { %3514 = vst [vmem:[%s5579_s4 + $0x8] sm:$0xff] %v3442_v7   ;;  %v1287_v58 = vunpack.c.l.b16 %v1269_v49 }
 0x274   :  { %v1288_v25 = vpack.c.b16 %v1287_v58, %v1286_v39 }
 0x276   :  { %1298 = vmatmul.bf16.vlgmr.msrb.gmra.mxu0 %v1288_v25  ;;  %1312 = vmatmul.bf16.vlgmr.msrb.gmra.mxu1 %v1288_v25 }
 0x277   :  { %1326 = vmatmul.bf16.vlgmr.msrb.gmra.mxu2 %v1288_v25  ;;  %1340 = vmatmul.bf16.vlgmr.msrb.gmra.mxu3 %v1288_v25 }
 0x278   :  { %1534 = vmatpush.bf16.msrb.mxu0 %v4080_v36  ;;  %1548 = vmatpush.bf16.msrb.mxu1 %v4091_v40 }
 0x279   :  { %1562 = vmatpush.bf16.msrb.mxu2 %v4099_v43  ;;  %1576 = vmatpush.bf16.msrb.mxu3 %v4102_v44 }
 0x27c   :  { %1535 = vmatpush.bf16.msrb.mxu0 %v4116_v48  ;;  %1549 = vmatpush.bf16.msrb.mxu1 %v4127_v52 }
 0x27d   :  { %1563 = vmatpush.bf16.msrb.mxu2 %v4129_v53  ;;  %1577 = vmatpush.bf16.msrb.mxu3 %v4138_v56 }
 0x280   :  { %1536 = vmatpush.bf16.msrb.mxu0 %v4158_v62  ;;  %1550 = vmatpush.bf16.msrb.mxu1 %v4169_v2 }
 0x281   :  { %1564 = vmatpush.bf16.msrb.mxu2 %v4171_v3  ;;  %1578 = vmatpush.bf16.msrb.mxu3 %v4180_v6 }
 0x284   :  { %1537 = vmatpush.bf16.msrb.mxu0 %v4200_v12  ;;  %1551 = vmatpush.bf16.msrb.mxu1 %v4211_v16 }
 0x285   :  { %1565 = vmatpush.bf16.msrb.mxu2 %v4213_v17  ;;  %1579 = vmatpush.bf16.msrb.mxu3 %v4222_v20 }
 0x288   :  { %1538 = vmatpush.bf16.msrb.mxu0 %v4242_v26  ;;  %1552 = vmatpush.bf16.msrb.mxu1 %v4253_v30 }
 0x289   :  { %1566 = vmatpush.bf16.msrb.mxu2 %v4255_v31  ;;  %1580 = vmatpush.bf16.msrb.mxu3 %v4266_v34 }
 0x28c   :  { %1539 = vmatpush.bf16.msrb.mxu0 %v4288_v46  ;;  %1553 = vmatpush.bf16.msrb.mxu1 %v4301_v54 }
 0x28d   :  { %1567 = vmatpush.bf16.msrb.mxu2 %v4303_v55  ;;  %1581 = vmatpush.bf16.msrb.mxu3 %v4320_v63 }
 0x290   :  { %1540 = vmatpush.bf16.msrb.mxu0 %v4362_v24  ;;  %1554 = vmatpush.bf16.msrb.mxu1 %v4375_v32 }
 0x291   :  { %1568 = vmatpush.bf16.msrb.mxu2 %v4377_v33  ;;  %1582 = vmatpush.bf16.msrb.mxu3 %v4394_v47 }
 0x294   :  { %1541 = vmatpush.bf16.msrb.mxu0 %v4436_v23  ;;  %1555 = vmatpush.bf16.msrb.mxu1 %v4449_v21 }
 0x295   :  { %1569 = vmatpush.bf16.msrb.mxu2 %v4451_v14  ;;  %1583 = vmatpush.bf16.msrb.mxu3 %v4470_v42 }
 0x2f3   :  { %v1299_v0 = vpop.f32.mrf.mxu0  ;;  %v1313_v8 = vpop.f32.mrf.mxu1 }
 0x2f4   :  { %v1346_v15 = vadd.f32 %v1299_v0, %v375_v37  ;;  %v1347_v27 = vadd.f32 %v1313_v8, %v464_v22 }
 0x2f6   :  { %v1354_v60 = vmul.f32 0.5, %v1346_v15  ;;  %v1362_v9 = vmul.f32 0.5, %v1347_v27  ;;  %v5706_v27 = vld [vmem:[#allocation15_spill] sm:$0xff] }
 0x2f8   :  { %3570 = vtanh.f32 %v1354_v60  ;;  %v555_v60 = vadd.f32 %v5706_v27, %v4735_v50 }
 0x2f9   :  { %3572 = vtanh.f32 %v1362_v9  ;;  %v5707_v9 = vld [vmem:[#allocation16_spill] sm:$0xff] }
 0x2fa   :  { %v1327_v59 = vpop.f32.mrf.mxu2  ;;  %v1341_v38 = vpop.f32.mrf.mxu3  ;;  %v644_v18 = vadd.f32 %v5707_v9, %v4737_v35 }
 0x2fb   :  { %v1348_v5 = vadd.f32 %v1327_v59, %v553_v4  ;;  %v1301_v49 = vpop.f32.mrf.mxu0  ;;  %v1315_v7 = vpop.f32.mrf.mxu1  ;;  %v1349_v39 = vadd.f32 %v1341_v38, %v642_v51 }
 0x2fc   :  { %v1350_v58 = vadd.f32 %v1301_v49, %v377_v57  ;;  %v1351_v25 = vadd.f32 %v1315_v7, %v466_v11 }
 0x2fd   :  { %3574 = vtanh.f32 %v1348_v5  ;;  %v1372_v15 = vmul.f32 0.5, %v1349_v39 }
 0x2fe   :  { %v3571_v28 = vpop.eup %3570  ;;  %v1355_v37 = vmul.f32 0.5, %v1350_v58  ;;  %v1363_v1 = vmul.f32 0.5, %v1351_v25 }
 0x2ff   :  { %v3573_v22 = vpop.eup %3572  ;;  %v1358_v0 = vmul.f32 0.5, %v3571_v28 }
 0x300   :  { %v1366_v8 = vmul.f32 0.5, %v3573_v22  ;;  %3576 = vtanh.f32 %v1355_v37 }
 0x301   :  { %v1360_v4 = vadd.f32 0.5, %v1358_v0  ;;  %3578 = vtanh.f32 %v1363_v1 }
 0x302   :  { %v1368_v13 = vadd.f32 0.5, %v1366_v8  ;;  %v1329_v51 = vpop.f32.mrf.mxu2  ;;  %v1343_v19 = vpop.f32.mrf.mxu3  ;;  %3580 = vtanh.f32 %v1372_v15 }
 0x303   :  { %v3575_v57 = vpop.eup %3574  ;;  %v1352_v10 = vadd.f32 %v1329_v51, %v555_v60  ;;  %v1353_v11 = vadd.f32 %v1343_v19, %v644_v18 }
 0x304   :  { %v1380_v59 = vmul.f32 %v1368_v13, %v4809_v41  ;;  %v1382_v38 = vmul.f32 %v3575_v57, %v1360_v4 }
 0x305   :  { %3582 = vtanh.f32 %v1352_v10  ;;  %v1373_v5 = vmul.f32 0.5, %v1353_v11 }
 0x306   :  { %v3577_v49 = vpop.eup %3576  ;;  %v4868_v7 = vadd.f32 %v1382_v38, %v1380_v59 }
 0x307   :  { %v3579_v39 = vpop.eup %3578  ;;  %v1359_v58 = vmul.f32 0.5, %v3577_v49  ;;  %3584 = vtanh.f32 %v1373_v5  ;;  %v5708_v5 = vld [vmem:[#allocation17_spill] sm:$0xff] }
 0x308   :  { %v1367_v25 = vmul.f32 0.5, %v3579_v39  ;;  %v3581_v37 = vpop.eup %3580  ;;  %3586 = vtanh.f32 %v4868_v7  ;;  %v380_v49 = vadd.f32 %v5708_v5, %v4723_v61  ;;  %v5709_v39 = vld [vmem:[#allocation18_spill] sm:$0xff] }
 0x309   :  { %v1361_v28 = vadd.f32 0.5, %v1359_v58  ;;  %v1376_v8 = vmul.f32 0.5, %v3581_v37  ;;  %v469_v58 = vadd.f32 %v5709_v39, %v4725_v45 }
 0x30a   :  { %v1369_v1 = vadd.f32 0.5, %v1367_v25 }
 0x30b   :  { %v3583_v22 = vpop.eup %3582  ;;  %v1378_v9 = vadd.f32 0.5, %v1376_v8 }
 0x30c   :  { %v1381_v0 = vmul.f32 %v1369_v1, %v4813_v29  ;;  %v1383_v41 = vmul.f32 %v3583_v22, %v1361_v28 }
 0x30d   :  { %v3585_v15 = vpop.eup %3584 }
 0x30e   :  { %v4872_v27 = vadd.f32 %v1383_v41, %v1381_v0  ;;  %v3587_v60 = vpop.eup %3586  ;;  %v1377_v18 = vmul.f32 0.5, %v3585_v15  ;;  %v5710_v41 = vld [vmem:[#allocation19_spill] sm:$0xff]  ;;  %v5711_v15 = vld [vmem:[#allocation20_spill] sm:$0xff] }
 0x30f   :  { %v1388_v4 = vmul.f32 %v3587_v60, %v1378_v9  ;;  %v558_v8 = vadd.f32 %v5710_v41, %v4735_v50  ;;  %v647_v60 = vadd.f32 %v5711_v15, %v4737_v35  ;;  %v5712_v9 = vld [vmem:[#allocation21_spill] sm:$0xff] }
 0x310   :  { %3588 = vtanh.f32 %v4872_v27  ;;  %v1379_v13 = vadd.f32 0.5, %v1377_v18  ;;  %v382_v18 = vadd.f32 %v5712_v9, %v4723_v61 }
 0x311   :  { %v1390_v19 = vpack.c.bf16 %v1388_v4, %v1388_v4 }
 0x313   :  { %v1408_v59 = vunpack.c.l.b16 %v1390_v19 }
 0x316   :  { %v3589_v51 = vpop.eup %3588 }
 0x317   :  { %v1389_v57 = vmul.f32 %v3589_v51, %v1379_v13 }
 0x319   :  { %v1391_v10 = vpack.c.bf16 %v1389_v57, %v1389_v57  ;;  %v3447_v11 = vpack.c.bf16 %v1389_v57, %v1388_v4  ;;  %v5713_v4 = vld [vmem:[#allocation22_spill] sm:$0xff] }
 0x31a   :  { %v471_v13 = vadd.f32 %v5713_v4, %v4725_v45 }
 0x31b   :  { %3515 = vst [vmem:[%s5579_s4 + $0x10] sm:$0xff] %v3447_v11   ;;  %v1409_v29 = vunpack.c.l.b16 %v1391_v10 }
 0x31d   :  { %v1410_v38 = vpack.c.b16 %v1409_v29, %v1408_v59 }
 0x31f   :  { %1420 = vmatmul.bf16.vlgmr.msra.gmra.mxu0 %v1410_v38  ;;  %1434 = vmatmul.bf16.vlgmr.msra.gmra.mxu1 %v1410_v38 }
 0x320   :  { %1448 = vmatmul.bf16.vlgmr.msra.gmra.mxu2 %v1410_v38  ;;  %1462 = vmatmul.bf16.vlgmr.msra.gmra.mxu3 %v1410_v38 }
 0x321   :  { %1656 = vmatpush.bf16.msra.mxu0 %v4080_v36  ;;  %1670 = vmatpush.bf16.msra.mxu1 %v4091_v40 }
 0x322   :  { %1684 = vmatpush.bf16.msra.mxu2 %v4099_v43  ;;  %1698 = vmatpush.bf16.msra.mxu3 %v4102_v44 }
 0x325   :  { %1657 = vmatpush.bf16.msra.mxu0 %v4116_v48  ;;  %1671 = vmatpush.bf16.msra.mxu1 %v4127_v52 }
 0x326   :  { %1685 = vmatpush.bf16.msra.mxu2 %v4129_v53  ;;  %1699 = vmatpush.bf16.msra.mxu3 %v4138_v56 }
 0x329   :  { %1658 = vmatpush.bf16.msra.mxu0 %v4158_v62  ;;  %1672 = vmatpush.bf16.msra.mxu1 %v4169_v2 }
 0x32a   :  { %1686 = vmatpush.bf16.msra.mxu2 %v4171_v3  ;;  %1700 = vmatpush.bf16.msra.mxu3 %v4180_v6 }
 0x32d   :  { %1659 = vmatpush.bf16.msra.mxu0 %v4200_v12  ;;  %1673 = vmatpush.bf16.msra.mxu1 %v4211_v16 }
 0x32e   :  { %1687 = vmatpush.bf16.msra.mxu2 %v4213_v17  ;;  %1701 = vmatpush.bf16.msra.mxu3 %v4222_v20 }
 0x331   :  { %1660 = vmatpush.bf16.msra.mxu0 %v4242_v26  ;;  %1674 = vmatpush.bf16.msra.mxu1 %v4253_v30 }
 0x332   :  { %1688 = vmatpush.bf16.msra.mxu2 %v4255_v31  ;;  %1702 = vmatpush.bf16.msra.mxu3 %v4266_v34 }
 0x335   :  { %1661 = vmatpush.bf16.msra.mxu0 %v4288_v46  ;;  %1675 = vmatpush.bf16.msra.mxu1 %v4301_v54 }
 0x336   :  { %1689 = vmatpush.bf16.msra.mxu2 %v4303_v55  ;;  %1703 = vmatpush.bf16.msra.mxu3 %v4320_v63 }
 0x339   :  { %1662 = vmatpush.bf16.msra.mxu0 %v4362_v24  ;;  %1676 = vmatpush.bf16.msra.mxu1 %v4375_v32 }
 0x33a   :  { %1690 = vmatpush.bf16.msra.mxu2 %v4377_v33  ;;  %1704 = vmatpush.bf16.msra.mxu3 %v4394_v47 }
 0x33d   :  { %1663 = vmatpush.bf16.msra.mxu0 %v4436_v23  ;;  %1677 = vmatpush.bf16.msra.mxu1 %v4449_v21 }
 0x33e   :  { %1691 = vmatpush.bf16.msra.mxu2 %v4451_v14  ;;  %1705 = vmatpush.bf16.msra.mxu3 %v4470_v42 }
 0x39c   :  { %v1421_v25 = vpop.f32.mrf.mxu0  ;;  %v1435_v28 = vpop.f32.mrf.mxu1 }
 0x39d   :  { %v1468_v37 = vadd.f32 %v1421_v25, %v380_v49  ;;  %v1469_v1 = vadd.f32 %v1435_v28, %v469_v58 }
 0x39f   :  { %v1476_v22 = vmul.f32 0.5, %v1468_v37  ;;  %v1484_v0 = vmul.f32 0.5, %v1469_v1  ;;  %v5714_v1 = vld [vmem:[#allocation23_spill] sm:$0xff] }
 0x3a1   :  { %3590 = vtanh.f32 %v1476_v22  ;;  %v560_v22 = vadd.f32 %v5714_v1, %v4735_v50 }
 0x3a2   :  { %3592 = vtanh.f32 %v1484_v0  ;;  %v5715_v0 = vld [vmem:[#allocation24_spill] sm:$0xff] }
 0x3a3   :  { %v1449_v51 = vpop.f32.mrf.mxu2  ;;  %v1463_v19 = vpop.f32.mrf.mxu3  ;;  %v649_v41 = vadd.f32 %v5715_v0, %v4737_v35 }
 0x3a4   :  { %v1470_v57 = vadd.f32 %v1449_v51, %v558_v8  ;;  %v1423_v10 = vpop.f32.mrf.mxu0  ;;  %v1437_v11 = vpop.f32.mrf.mxu1  ;;  %v1471_v59 = vadd.f32 %v1463_v19, %v647_v60 }
 0x3a5   :  { %v1472_v29 = vadd.f32 %v1423_v10, %v382_v18  ;;  %v1473_v38 = vadd.f32 %v1437_v11, %v471_v13 }
 0x3a6   :  { %3594 = vtanh.f32 %v1470_v57  ;;  %v1494_v37 = vmul.f32 0.5, %v1471_v59 }
 0x3a7   :  { %v3591_v5 = vpop.eup %3590  ;;  %v1477_v49 = vmul.f32 0.5, %v1472_v29  ;;  %v1485_v39 = vmul.f32 0.5, %v1473_v38 }
 0x3a8   :  { %v3593_v58 = vpop.eup %3592  ;;  %v1480_v25 = vmul.f32 0.5, %v3591_v5 }
 0x3a9   :  { %v1488_v28 = vmul.f32 0.5, %v3593_v58  ;;  %3596 = vtanh.f32 %v1477_v49 }
 0x3aa   :  { %v1482_v8 = vadd.f32 0.5, %v1480_v25  ;;  %3598 = vtanh.f32 %v1485_v39 }
 0x3ab   :  { %v1490_v15 = vadd.f32 0.5, %v1488_v28  ;;  %v1451_v60 = vpop.f32.mrf.mxu2  ;;  %v1465_v9 = vpop.f32.mrf.mxu3  ;;  %3600 = vtanh.f32 %v1494_v37 }
 0x3ac   :  { %v3595_v18 = vpop.eup %3594  ;;  %v1474_v4 = vadd.f32 %v1451_v60, %v560_v22  ;;  %v1475_v13 = vadd.f32 %v1465_v9, %v649_v41 }
 0x3ad   :  { %v1502_v51 = vmul.f32 %v1490_v15, %v4868_v7  ;;  %v1504_v19 = vmul.f32 %v3595_v18, %v1482_v8 }
 0x3ae   :  { %3602 = vtanh.f32 %v1474_v4  ;;  %v1495_v57 = vmul.f32 0.5, %v1475_v13 }
 0x3af   :  { %v3597_v10 = vpop.eup %3596  ;;  %v4927_v11 = vadd.f32 %v1504_v19, %v1502_v51 }
 0x3b0   :  { %v3599_v59 = vpop.eup %3598  ;;  %v1481_v29 = vmul.f32 0.5, %v3597_v10  ;;  %3604 = vtanh.f32 %v1495_v57  ;;  %v5716_v57 = vld [vmem:[#allocation25_spill] sm:$0xff] }
 0x3b1   :  { %v1489_v38 = vmul.f32 0.5, %v3599_v59  ;;  %v3601_v49 = vpop.eup %3600  ;;  %3606 = vtanh.f32 %v4927_v11  ;;  %v385_v10 = vadd.f32 %v5716_v57, %v4723_v61  ;;  %v5717_v59 = vld [vmem:[#allocation26_spill] sm:$0xff] }
 0x3b2   :  { %v1483_v5 = vadd.f32 0.5, %v1481_v29  ;;  %v1498_v28 = vmul.f32 0.5, %v3601_v49  ;;  %v474_v29 = vadd.f32 %v5717_v59, %v4725_v45 }
 0x3b3   :  { %v1491_v39 = vadd.f32 0.5, %v1489_v38 }
 0x3b4   :  { %v3603_v58 = vpop.eup %3602  ;;  %v1500_v0 = vadd.f32 0.5, %v1498_v28 }
 0x3b5   :  { %v1503_v25 = vmul.f32 %v1491_v39, %v4872_v27  ;;  %v1505_v7 = vmul.f32 %v3603_v58, %v1483_v5 }
 0x3b6   :  { %v3605_v37 = vpop.eup %3604 }
 0x3b7   :  { %v4931_v1 = vadd.f32 %v1505_v7, %v1503_v25  ;;  %v3607_v22 = vpop.eup %3606  ;;  %v1499_v41 = vmul.f32 0.5, %v3605_v37  ;;  %v5718_v7 = vld [vmem:[#allocation27_spill] sm:$0xff]  ;;  %v5719_v37 = vld [vmem:[#allocation28_spill] sm:$0xff] }
 0x3b8   :  { %v1510_v8 = vmul.f32 %v3607_v22, %v1500_v0  ;;  %v563_v28 = vadd.f32 %v5718_v7, %v4735_v50  ;;  %v652_v22 = vadd.f32 %v5719_v37, %v4737_v35  ;;  %v5720_v0 = vld [vmem:[#allocation29_spill] sm:$0xff] }
 0x3b9   :  { %3608 = vtanh.f32 %v4931_v1  ;;  %v1501_v15 = vadd.f32 0.5, %v1499_v41  ;;  %v387_v41 = vadd.f32 %v5720_v0, %v4723_v61 }
 0x3ba   :  { %v1512_v9 = vpack.c.bf16 %v1510_v8, %v1510_v8 }
 0x3bc   :  { %v1530_v51 = vunpack.c.l.b16 %v1512_v9 }
 0x3bf   :  { %v3609_v60 = vpop.eup %3608 }
 0x3c0   :  { %v1511_v18 = vmul.f32 %v3609_v60, %v1501_v15 }
 0x3c2   :  { %v1513_v4 = vpack.c.bf16 %v1511_v18, %v1511_v18  ;;  %v3452_v13 = vpack.c.bf16 %v1511_v18, %v1510_v8  ;;  %v5721_v8 = vld [vmem:[#allocation30_spill] sm:$0xff] }
 0x3c3   :  { %v476_v15 = vadd.f32 %v5721_v8, %v4725_v45 }
 0x3c4   :  { %3516 = vst [vmem:[%s5579_s4 + $0x18] sm:$0xff] %v3452_v13   ;;  %v1531_v27 = vunpack.c.l.b16 %v1513_v4 }
 0x3c6   :  { %v1532_v19 = vpack.c.b16 %v1531_v27, %v1530_v51 }
 0x3c8   :  { %1542 = vmatmul.bf16.vlgmr.msrb.gmra.mxu0 %v1532_v19  ;;  %1556 = vmatmul.bf16.vlgmr.msrb.gmra.mxu1 %v1532_v19 }
 0x3c9   :  { %1570 = vmatmul.bf16.vlgmr.msrb.gmra.mxu2 %v1532_v19  ;;  %1584 = vmatmul.bf16.vlgmr.msrb.gmra.mxu3 %v1532_v19 }
 0x3ca   :  { %1778 = vmatpush.bf16.msrb.mxu0 %v4080_v36  ;;  %1792 = vmatpush.bf16.msrb.mxu1 %v4091_v40 }
 0x3cb   :  { %1806 = vmatpush.bf16.msrb.mxu2 %v4099_v43  ;;  %1820 = vmatpush.bf16.msrb.mxu3 %v4102_v44 }
 0x3ce   :  { %1779 = vmatpush.bf16.msrb.mxu0 %v4116_v48  ;;  %1793 = vmatpush.bf16.msrb.mxu1 %v4127_v52 }
 0x3cf   :  { %1807 = vmatpush.bf16.msrb.mxu2 %v4129_v53  ;;  %1821 = vmatpush.bf16.msrb.mxu3 %v4138_v56 }
 0x3d2   :  { %1780 = vmatpush.bf16.msrb.mxu0 %v4158_v62  ;;  %1794 = vmatpush.bf16.msrb.mxu1 %v4169_v2 }
 0x3d3   :  { %1808 = vmatpush.bf16.msrb.mxu2 %v4171_v3  ;;  %1822 = vmatpush.bf16.msrb.mxu3 %v4180_v6 }
 0x3d6   :  { %1781 = vmatpush.bf16.msrb.mxu0 %v4200_v12  ;;  %1795 = vmatpush.bf16.msrb.mxu1 %v4211_v16 }
 0x3d7   :  { %1809 = vmatpush.bf16.msrb.mxu2 %v4213_v17  ;;  %1823 = vmatpush.bf16.msrb.mxu3 %v4222_v20 }
 0x3da   :  { %1782 = vmatpush.bf16.msrb.mxu0 %v4242_v26  ;;  %1796 = vmatpush.bf16.msrb.mxu1 %v4253_v30 }
 0x3db   :  { %1810 = vmatpush.bf16.msrb.mxu2 %v4255_v31  ;;  %1824 = vmatpush.bf16.msrb.mxu3 %v4266_v34 }
 0x3de   :  { %1783 = vmatpush.bf16.msrb.mxu0 %v4288_v46  ;;  %1797 = vmatpush.bf16.msrb.mxu1 %v4301_v54 }
 0x3df   :  { %1811 = vmatpush.bf16.msrb.mxu2 %v4303_v55  ;;  %1825 = vmatpush.bf16.msrb.mxu3 %v4320_v63 }
 0x3e2   :  { %1784 = vmatpush.bf16.msrb.mxu0 %v4362_v24  ;;  %1798 = vmatpush.bf16.msrb.mxu1 %v4375_v32 }
 0x3e3   :  { %1812 = vmatpush.bf16.msrb.mxu2 %v4377_v33  ;;  %1826 = vmatpush.bf16.msrb.mxu3 %v4394_v47 }
 0x3e6   :  { %1785 = vmatpush.bf16.msrb.mxu0 %v4436_v23  ;;  %1799 = vmatpush.bf16.msrb.mxu1 %v4449_v21 }
 0x3e7   :  { %1813 = vmatpush.bf16.msrb.mxu2 %v4451_v14  ;;  %1827 = vmatpush.bf16.msrb.mxu3 %v4470_v42 }
 0x445   :  { %v1543_v38 = vpop.f32.mrf.mxu0  ;;  %v1557_v5 = vpop.f32.mrf.mxu1 }
 0x446   :  { %v1590_v49 = vadd.f32 %v1543_v38, %v385_v10  ;;  %v1591_v39 = vadd.f32 %v1557_v5, %v474_v29 }
 0x448   :  { %v1598_v58 = vmul.f32 0.5, %v1590_v49  ;;  %v1606_v25 = vmul.f32 0.5, %v1591_v39  ;;  %v5722_v39 = vld [vmem:[#allocation31_spill] sm:$0xff] }
 0x44a   :  { %3610 = vtanh.f32 %v1598_v58  ;;  %v565_v58 = vadd.f32 %v5722_v39, %v4735_v50 }
 0x44b   :  { %3612 = vtanh.f32 %v1606_v25  ;;  %v5723_v25 = vld [vmem:[#allocation32_spill] sm:$0xff] }
 0x44c   :  { %v1571_v60 = vpop.f32.mrf.mxu2  ;;  %v1585_v9 = vpop.f32.mrf.mxu3  ;;  %v654_v7 = vadd.f32 %v5723_v25, %v4737_v35 }
 0x44d   :  { %v1592_v18 = vadd.f32 %v1571_v60, %v563_v28  ;;  %v1545_v4 = vpop.f32.mrf.mxu0  ;;  %v1559_v13 = vpop.f32.mrf.mxu1  ;;  %v1593_v51 = vadd.f32 %v1585_v9, %v652_v22 }
 0x44e   :  { %v1594_v27 = vadd.f32 %v1545_v4, %v387_v41  ;;  %v1595_v19 = vadd.f32 %v1559_v13, %v476_v15 }
 0x44f   :  { %3614 = vtanh.f32 %v1592_v18  ;;  %v1616_v49 = vmul.f32 0.5, %v1593_v51 }
 0x450   :  { %v3611_v57 = vpop.eup %3610  ;;  %v1599_v10 = vmul.f32 0.5, %v1594_v27  ;;  %v1607_v59 = vmul.f32 0.5, %v1595_v19 }
 0x451   :  { %v3613_v29 = vpop.eup %3612  ;;  %v1602_v38 = vmul.f32 0.5, %v3611_v57 }
 0x452   :  { %v1610_v5 = vmul.f32 0.5, %v3613_v29  ;;  %3616 = vtanh.f32 %v1599_v10 }
 0x453   :  { %v1604_v28 = vadd.f32 0.5, %v1602_v38  ;;  %3618 = vtanh.f32 %v1607_v59 }
 0x454   :  { %v1612_v37 = vadd.f32 0.5, %v1610_v5  ;;  %v1573_v22 = vpop.f32.mrf.mxu2  ;;  %v1587_v0 = vpop.f32.mrf.mxu3  ;;  %3620 = vtanh.f32 %v1616_v49 }
 0x455   :  { %v3615_v41 = vpop.eup %3614  ;;  %v1596_v8 = vadd.f32 %v1573_v22, %v565_v58  ;;  %v1597_v15 = vadd.f32 %v1587_v0, %v654_v7 }
 0x456   :  { %v1624_v60 = vmul.f32 %v1612_v37, %v4927_v11  ;;  %v1626_v9 = vmul.f32 %v3615_v41, %v1604_v28 }
 0x457   :  { %3622 = vtanh.f32 %v1596_v8  ;;  %v1617_v18 = vmul.f32 0.5, %v1597_v15 }
 0x458   :  { %v3617_v4 = vpop.eup %3616  ;;  %v4986_v13 = vadd.f32 %v1626_v9, %v1624_v60 }
 0x459   :  { %v3619_v51 = vpop.eup %3618  ;;  %v1603_v27 = vmul.f32 0.5, %v3617_v4  ;;  %3624 = vtanh.f32 %v1617_v18  ;;  %v5724_v18 = vld [vmem:[#allocation33_spill] sm:$0xff] }
 0x45a   :  { %v1611_v19 = vmul.f32 0.5, %v3619_v51  ;;  %v3621_v10 = vpop.eup %3620  ;;  %3626 = vtanh.f32 %v4986_v13  ;;  %v390_v4 = vadd.f32 %v5724_v18, %v4723_v61  ;;  %v5725_v51 = vld [vmem:[#allocation34_spill] sm:$0xff] }
 0x45b   :  { %v1605_v57 = vadd.f32 0.5, %v1603_v27  ;;  %v1620_v5 = vmul.f32 0.5, %v3621_v10  ;;  %v479_v27 = vadd.f32 %v5725_v51, %v4725_v45 }
 0x45c   :  { %v1613_v59 = vadd.f32 0.5, %v1611_v19 }
 0x45d   :  { %v3623_v29 = vpop.eup %3622  ;;  %v1622_v25 = vadd.f32 0.5, %v1620_v5 }
 0x45e   :  { %v1625_v38 = vmul.f32 %v1613_v59, %v4931_v1  ;;  %v1627_v11 = vmul.f32 %v3623_v29, %v1605_v57 }
 0x45f   :  { %v3625_v49 = vpop.eup %3624 }
 0x460   :  { %v4990_v39 = vadd.f32 %v1627_v11, %v1625_v38  ;;  %v3627_v58 = vpop.eup %3626  ;;  %v1621_v7 = vmul.f32 0.5, %v3625_v49  ;;  %v5726_v11 = vld [vmem:[#allocation35_spill] sm:$0xff]  ;;  %v5727_v49 = vld [vmem:[#allocation36_spill] sm:$0xff] }
 0x461   :  { %v1632_v28 = vmul.f32 %v3627_v58, %v1622_v25  ;;  %v568_v5 = vadd.f32 %v5726_v11, %v4735_v50  ;;  %v657_v58 = vadd.f32 %v5727_v49, %v4737_v35  ;;  %v5728_v25 = vld [vmem:[#allocation37_spill] sm:$0xff] }
 0x462   :  { %3628 = vtanh.f32 %v4990_v39  ;;  %v1623_v37 = vadd.f32 0.5, %v1621_v7  ;;  %v392_v7 = vadd.f32 %v5728_v25, %v4723_v61 }
 0x463   :  { %v1634_v0 = vpack.c.bf16 %v1632_v28, %v1632_v28 }
 0x465   :  { %v1652_v60 = vunpack.c.l.b16 %v1634_v0 }
 0x468   :  { %v3629_v22 = vpop.eup %3628 }
 0x469   :  { %v1633_v41 = vmul.f32 %v3629_v22, %v1623_v37 }
 0x46b   :  { %v1635_v8 = vpack.c.bf16 %v1633_v41, %v1633_v41  ;;  %v3457_v15 = vpack.c.bf16 %v1633_v41, %v1632_v28  ;;  %v5729_v28 = vld [vmem:[#allocation38_spill] sm:$0xff] }
 0x46c   :  { %v481_v37 = vadd.f32 %v5729_v28, %v4725_v45 }
 0x46d   :  { %3517 = vst [vmem:[%s5579_s4 + $0x20] sm:$0xff] %v3457_v15   ;;  %v1653_v1 = vunpack.c.l.b16 %v1635_v8 }
 0x46f   :  { %v1654_v9 = vpack.c.b16 %v1653_v1, %v1652_v60 }
 0x471   :  { %1664 = vmatmul.bf16.vlgmr.msra.gmra.mxu0 %v1654_v9  ;;  %1678 = vmatmul.bf16.vlgmr.msra.gmra.mxu1 %v1654_v9 }
 0x472   :  { %1692 = vmatmul.bf16.vlgmr.msra.gmra.mxu2 %v1654_v9  ;;  %1706 = vmatmul.bf16.vlgmr.msra.gmra.mxu3 %v1654_v9 }
 0x473   :  { %1900 = vmatpush.bf16.msra.mxu0 %v4080_v36  ;;  %1914 = vmatpush.bf16.msra.mxu1 %v4091_v40 }
 0x474   :  { %1928 = vmatpush.bf16.msra.mxu2 %v4099_v43  ;;  %1942 = vmatpush.bf16.msra.mxu3 %v4102_v44 }
 0x477   :  { %1901 = vmatpush.bf16.msra.mxu0 %v4116_v48  ;;  %1915 = vmatpush.bf16.msra.mxu1 %v4127_v52 }
 0x478   :  { %1929 = vmatpush.bf16.msra.mxu2 %v4129_v53  ;;  %1943 = vmatpush.bf16.msra.mxu3 %v4138_v56 }
 0x47b   :  { %1902 = vmatpush.bf16.msra.mxu0 %v4158_v62  ;;  %1916 = vmatpush.bf16.msra.mxu1 %v4169_v2 }
 0x47c   :  { %1930 = vmatpush.bf16.msra.mxu2 %v4171_v3  ;;  %1944 = vmatpush.bf16.msra.mxu3 %v4180_v6 }
 0x47f   :  { %1903 = vmatpush.bf16.msra.mxu0 %v4200_v12  ;;  %1917 = vmatpush.bf16.msra.mxu1 %v4211_v16 }
 0x480   :  { %1931 = vmatpush.bf16.msra.mxu2 %v4213_v17  ;;  %1945 = vmatpush.bf16.msra.mxu3 %v4222_v20 }
 0x483   :  { %1904 = vmatpush.bf16.msra.mxu0 %v4242_v26  ;;  %1918 = vmatpush.bf16.msra.mxu1 %v4253_v30 }
 0x484   :  { %1932 = vmatpush.bf16.msra.mxu2 %v4255_v31  ;;  %1946 = vmatpush.bf16.msra.mxu3 %v4266_v34 }
 0x487   :  { %1905 = vmatpush.bf16.msra.mxu0 %v4288_v46  ;;  %1919 = vmatpush.bf16.msra.mxu1 %v4301_v54 }
 0x488   :  { %1933 = vmatpush.bf16.msra.mxu2 %v4303_v55  ;;  %1947 = vmatpush.bf16.msra.mxu3 %v4320_v63 }
 0x48b   :  { %1906 = vmatpush.bf16.msra.mxu0 %v4362_v24  ;;  %1920 = vmatpush.bf16.msra.mxu1 %v4375_v32 }
 0x48c   :  { %1934 = vmatpush.bf16.msra.mxu2 %v4377_v33  ;;  %1948 = vmatpush.bf16.msra.mxu3 %v4394_v47 }
 0x48f   :  { %1907 = vmatpush.bf16.msra.mxu0 %v4436_v23  ;;  %1921 = vmatpush.bf16.msra.mxu1 %v4449_v21 }
 0x490   :  { %1935 = vmatpush.bf16.msra.mxu2 %v4451_v14  ;;  %1949 = vmatpush.bf16.msra.mxu3 %v4470_v42 }
 0x4ee   :  { %v1665_v19 = vpop.f32.mrf.mxu0  ;;  %v1679_v57 = vpop.f32.mrf.mxu1 }
 0x4ef   :  { %v1712_v10 = vadd.f32 %v1665_v19, %v390_v4  ;;  %v1713_v59 = vadd.f32 %v1679_v57, %v479_v27 }
 0x4f1   :  { %v1720_v29 = vmul.f32 0.5, %v1712_v10  ;;  %v1728_v38 = vmul.f32 0.5, %v1713_v59  ;;  %v5730_v59 = vld [vmem:[#allocation39_spill] sm:$0xff] }
 0x4f3   :  { %3630 = vtanh.f32 %v1720_v29  ;;  %v570_v29 = vadd.f32 %v5730_v59, %v4735_v50 }
 0x4f4   :  { %3632 = vtanh.f32 %v1728_v38  ;;  %v5731_v38 = vld [vmem:[#allocation40_spill] sm:$0xff] }
 0x4f5   :  { %v1693_v22 = vpop.f32.mrf.mxu2  ;;  %v1707_v0 = vpop.f32.mrf.mxu3  ;;  %v659_v11 = vadd.f32 %v5731_v38, %v4737_v35 }
 0x4f6   :  { %v1714_v41 = vadd.f32 %v1693_v22, %v568_v5  ;;  %v1667_v8 = vpop.f32.mrf.mxu0  ;;  %v1681_v15 = vpop.f32.mrf.mxu1  ;;  %v1715_v60 = vadd.f32 %v1707_v0, %v657_v58 }
 0x4f7   :  { %v1716_v1 = vadd.f32 %v1667_v8, %v392_v7  ;;  %v1717_v9 = vadd.f32 %v1681_v15, %v481_v37 }
 0x4f8   :  { %3634 = vtanh.f32 %v1714_v41  ;;  %v1738_v10 = vmul.f32 0.5, %v1715_v60 }
 0x4f9   :  { %v3631_v18 = vpop.eup %3630  ;;  %v1721_v4 = vmul.f32 0.5, %v1716_v1  ;;  %v1729_v51 = vmul.f32 0.5, %v1717_v9 }
 0x4fa   :  { %v3633_v27 = vpop.eup %3632  ;;  %v1724_v19 = vmul.f32 0.5, %v3631_v18 }
 0x4fb   :  { %v1732_v57 = vmul.f32 0.5, %v3633_v27  ;;  %3636 = vtanh.f32 %v1721_v4 }
 0x4fc   :  { %v1726_v5 = vadd.f32 0.5, %v1724_v19  ;;  %3638 = vtanh.f32 %v1729_v51 }
 0x4fd   :  { %v1734_v49 = vadd.f32 0.5, %v1732_v57  ;;  %v1695_v58 = vpop.f32.mrf.mxu2  ;;  %v1709_v25 = vpop.f32.mrf.mxu3  ;;  %3640 = vtanh.f32 %v1738_v10 }
 0x4fe   :  { %v3635_v7 = vpop.eup %3634  ;;  %v1718_v28 = vadd.f32 %v1695_v58, %v570_v29  ;;  %v1719_v37 = vadd.f32 %v1709_v25, %v659_v11 }
 0x4ff   :  { %v1746_v22 = vmul.f32 %v1734_v49, %v4986_v13  ;;  %v1748_v0 = vmul.f32 %v3635_v7, %v1726_v5 }
 0x500   :  { %3642 = vtanh.f32 %v1718_v28  ;;  %v1739_v41 = vmul.f32 0.5, %v1719_v37 }
 0x501   :  { %v3637_v8 = vpop.eup %3636  ;;  %v5045_v15 = vadd.f32 %v1748_v0, %v1746_v22 }
 0x502   :  { %v3639_v60 = vpop.eup %3638  ;;  %v1725_v1 = vmul.f32 0.5, %v3637_v8  ;;  %3644 = vtanh.f32 %v1739_v41  ;;  %v5732_v41 = vld [vmem:[#allocation41_spill] sm:$0xff] }
 0x503   :  { %v1733_v9 = vmul.f32 0.5, %v3639_v60  ;;  %v3641_v4 = vpop.eup %3640  ;;  %3646 = vtanh.f32 %v5045_v15  ;;  %v395_v8 = vadd.f32 %v5732_v41, %v4723_v61  ;;  %v5733_v60 = vld [vmem:[#allocation42_spill] sm:$0xff] }
 0x504   :  { %v1727_v18 = vadd.f32 0.5, %v1725_v1  ;;  %v1742_v57 = vmul.f32 0.5, %v3641_v4  ;;  %v484_v1 = vadd.f32 %v5733_v60, %v4725_v45 }
 0x505   :  { %v1735_v51 = vadd.f32 0.5, %v1733_v9 }
 0x506   :  { %v3643_v27 = vpop.eup %3642  ;;  %v1744_v38 = vadd.f32 0.5, %v1742_v57 }
 0x507   :  { %v1747_v19 = vmul.f32 %v1735_v51, %v4990_v39  ;;  %v1749_v13 = vmul.f32 %v3643_v27, %v1727_v18 }
 0x508   :  { %v3645_v10 = vpop.eup %3644 }
 0x509   :  { %v5049_v59 = vadd.f32 %v1749_v13, %v1747_v19  ;;  %v3647_v29 = vpop.eup %3646  ;;  %v1743_v11 = vmul.f32 0.5, %v3645_v10  ;;  %v5734_v13 = vld [vmem:[#allocation43_spill] sm:$0xff]  ;;  %v5735_v10 = vld [vmem:[#allocation44_spill] sm:$0xff] }
 0x50a   :  { %v1754_v5 = vmul.f32 %v3647_v29, %v1744_v38  ;;  %v573_v57 = vadd.f32 %v5734_v13, %v4735_v50  ;;  %v662_v29 = vadd.f32 %v5735_v10, %v4737_v35  ;;  %v5736_v38 = vld [vmem:[#allocation45_spill] sm:$0xff] }
 0x50b   :  { %3648 = vtanh.f32 %v5049_v59  ;;  %v1745_v49 = vadd.f32 0.5, %v1743_v11  ;;  %v397_v11 = vadd.f32 %v5736_v38, %v4723_v61 }
 0x50c   :  { %v1756_v25 = vpack.c.bf16 %v1754_v5, %v1754_v5 }
 0x50e   :  { %v1774_v22 = vunpack.c.l.b16 %v1756_v25 }
 0x511   :  { %v3649_v58 = vpop.eup %3648 }
 0x512   :  { %v1755_v7 = vmul.f32 %v3649_v58, %v1745_v49 }
 0x514   :  { %v1757_v28 = vpack.c.bf16 %v1755_v7, %v1755_v7  ;;  %v3462_v37 = vpack.c.bf16 %v1755_v7, %v1754_v5  ;;  %v5737_v5 = vld [vmem:[#allocation46_spill] sm:$0xff] }
 0x515   :  { %v486_v49 = vadd.f32 %v5737_v5, %v4725_v45 }
 0x516   :  { %3518 = vst [vmem:[%s5579_s4 + $0x28] sm:$0xff] %v3462_v37   ;;  %v1775_v39 = vunpack.c.l.b16 %v1757_v28 }
 0x518   :  { %v1776_v0 = vpack.c.b16 %v1775_v39, %v1774_v22 }
 0x51a   :  { %1786 = vmatmul.bf16.vlgmr.msrb.gmra.mxu0 %v1776_v0  ;;  %1800 = vmatmul.bf16.vlgmr.msrb.gmra.mxu1 %v1776_v0 }
 0x51b   :  { %1814 = vmatmul.bf16.vlgmr.msrb.gmra.mxu2 %v1776_v0  ;;  %1828 = vmatmul.bf16.vlgmr.msrb.gmra.mxu3 %v1776_v0 }
 0x51c   :  { %2022 = vmatpush.bf16.msrb.mxu0 %v4080_v36  ;;  %2036 = vmatpush.bf16.msrb.mxu1 %v4091_v40 }
 0x51d   :  { %2050 = vmatpush.bf16.msrb.mxu2 %v4099_v43  ;;  %2064 = vmatpush.bf16.msrb.mxu3 %v4102_v44 }
 0x520   :  { %2023 = vmatpush.bf16.msrb.mxu0 %v4116_v48  ;;  %2037 = vmatpush.bf16.msrb.mxu1 %v4127_v52 }
 0x521   :  { %2051 = vmatpush.bf16.msrb.mxu2 %v4129_v53  ;;  %2065 = vmatpush.bf16.msrb.mxu3 %v4138_v56 }
 0x524   :  { %2024 = vmatpush.bf16.msrb.mxu0 %v4158_v62  ;;  %2038 = vmatpush.bf16.msrb.mxu1 %v4169_v2 }
 0x525   :  { %2052 = vmatpush.bf16.msrb.mxu2 %v4171_v3  ;;  %2066 = vmatpush.bf16.msrb.mxu3 %v4180_v6 }
 0x528   :  { %2025 = vmatpush.bf16.msrb.mxu0 %v4200_v12  ;;  %2039 = vmatpush.bf16.msrb.mxu1 %v4211_v16 }
 0x529   :  { %2053 = vmatpush.bf16.msrb.mxu2 %v4213_v17  ;;  %2067 = vmatpush.bf16.msrb.mxu3 %v4222_v20 }
 0x52c   :  { %2026 = vmatpush.bf16.msrb.mxu0 %v4242_v26  ;;  %2040 = vmatpush.bf16.msrb.mxu1 %v4253_v30 }
 0x52d   :  { %2054 = vmatpush.bf16.msrb.mxu2 %v4255_v31  ;;  %2068 = vmatpush.bf16.msrb.mxu3 %v4266_v34 }
 0x530   :  { %2027 = vmatpush.bf16.msrb.mxu0 %v4288_v46  ;;  %2041 = vmatpush.bf16.msrb.mxu1 %v4301_v54 }
 0x531   :  { %2055 = vmatpush.bf16.msrb.mxu2 %v4303_v55  ;;  %2069 = vmatpush.bf16.msrb.mxu3 %v4320_v63 }
 0x534   :  { %2028 = vmatpush.bf16.msrb.mxu0 %v4362_v24  ;;  %2042 = vmatpush.bf16.msrb.mxu1 %v4375_v32 }
 0x535   :  { %2056 = vmatpush.bf16.msrb.mxu2 %v4377_v33  ;;  %2070 = vmatpush.bf16.msrb.mxu3 %v4394_v47 }
 0x538   :  { %2029 = vmatpush.bf16.msrb.mxu0 %v4436_v23  ;;  %2043 = vmatpush.bf16.msrb.mxu1 %v4449_v21 }
 0x539   :  { %2057 = vmatpush.bf16.msrb.mxu2 %v4451_v14  ;;  %2071 = vmatpush.bf16.msrb.mxu3 %v4470_v42 }
 0x597   :  { %v1787_v9 = vpop.f32.mrf.mxu0  ;;  %v1801_v18 = vpop.f32.mrf.mxu1 }
 0x598   :  { %v1834_v4 = vadd.f32 %v1787_v9, %v395_v8  ;;  %v1835_v51 = vadd.f32 %v1801_v18, %v484_v1 }
 0x59a   :  { %v1842_v27 = vmul.f32 0.5, %v1834_v4  ;;  %v1850_v19 = vmul.f32 0.5, %v1835_v51  ;;  %v5738_v51 = vld [vmem:[#allocation47_spill] sm:$0xff] }
 0x59c   :  { %3650 = vtanh.f32 %v1842_v27  ;;  %v575_v27 = vadd.f32 %v5738_v51, %v4735_v50 }
 0x59d   :  { %3652 = vtanh.f32 %v1850_v19  ;;  %v5739_v19 = vld [vmem:[#allocation48_spill] sm:$0xff] }
 0x59e   :  { %v1815_v58 = vpop.f32.mrf.mxu2  ;;  %v1829_v25 = vpop.f32.mrf.mxu3  ;;  %v664_v13 = vadd.f32 %v5739_v19, %v4737_v35 }
 0x59f   :  { %v1836_v7 = vadd.f32 %v1815_v58, %v573_v57  ;;  %v1789_v28 = vpop.f32.mrf.mxu0  ;;  %v1803_v37 = vpop.f32.mrf.mxu1  ;;  %v1837_v22 = vadd.f32 %v1829_v25, %v662_v29 }
 0x5a0   :  { %v1838_v39 = vadd.f32 %v1789_v28, %v397_v11  ;;  %v1839_v0 = vadd.f32 %v1803_v37, %v486_v49 }
 0x5a1   :  { %3654 = vtanh.f32 %v1836_v7  ;;  %v1860_v4 = vmul.f32 0.5, %v1837_v22 }
 0x5a2   :  { %v3651_v41 = vpop.eup %3650  ;;  %v1843_v8 = vmul.f32 0.5, %v1838_v39  ;;  %v1851_v60 = vmul.f32 0.5, %v1839_v0 }
 0x5a3   :  { %v3653_v1 = vpop.eup %3652  ;;  %v1846_v9 = vmul.f32 0.5, %v3651_v41 }
 0x5a4   :  { %v1854_v18 = vmul.f32 0.5, %v3653_v1  ;;  %3656 = vtanh.f32 %v1843_v8 }
 0x5a5   :  { %v1848_v57 = vadd.f32 0.5, %v1846_v9  ;;  %3658 = vtanh.f32 %v1851_v60 }
 0x5a6   :  { %v1856_v10 = vadd.f32 0.5, %v1854_v18  ;;  %v1817_v29 = vpop.f32.mrf.mxu2  ;;  %v1831_v38 = vpop.f32.mrf.mxu3  ;;  %3660 = vtanh.f32 %v1860_v4 }
 0x5a7   :  { %v3655_v11 = vpop.eup %3654  ;;  %v1840_v5 = vadd.f32 %v1817_v29, %v575_v27  ;;  %v1841_v49 = vadd.f32 %v1831_v38, %v664_v13 }
 0x5a8   :  { %v1868_v58 = vmul.f32 %v1856_v10, %v5045_v15  ;;  %v1870_v25 = vmul.f32 %v3655_v11, %v1848_v57 }
 0x5a9   :  { %3662 = vtanh.f32 %v1840_v5  ;;  %v1861_v7 = vmul.f32 0.5, %v1841_v49 }
 0x5aa   :  { %v3657_v28 = vpop.eup %3656  ;;  %v5104_v37 = vadd.f32 %v1870_v25, %v1868_v58 }
 0x5ab   :  { %v3659_v22 = vpop.eup %3658  ;;  %v1847_v39 = vmul.f32 0.5, %v3657_v28  ;;  %3664 = vtanh.f32 %v1861_v7  ;;  %v5740_v7 = vld [vmem:[#allocation49_spill] sm:$0xff] }
 0x5ac   :  { %v1855_v0 = vmul.f32 0.5, %v3659_v22  ;;  %v3661_v8 = vpop.eup %3660  ;;  %3666 = vtanh.f32 %v5104_v37  ;;  %v400_v28 = vadd.f32 %v5740_v7, %v4723_v61  ;;  %v5741_v22 = vld [vmem:[#allocation50_spill] sm:$0xff] }
 0x5ad   :  { %v1849_v41 = vadd.f32 0.5, %v1847_v39  ;;  %v1864_v18 = vmul.f32 0.5, %v3661_v8  ;;  %v489_v39 = vadd.f32 %v5741_v22, %v4725_v45 }
 0x5ae   :  { %v1857_v60 = vadd.f32 0.5, %v1855_v0 }
 0x5af   :  { %v3663_v1 = vpop.eup %3662  ;;  %v1866_v19 = vadd.f32 0.5, %v1864_v18 }
 0x5b0   :  { %v1869_v9 = vmul.f32 %v1857_v60, %v5049_v59  ;;  %v1871_v15 = vmul.f32 %v3663_v1, %v1849_v41 }
 0x5b1   :  { %v3665_v4 = vpop.eup %3664 }
 0x5b2   :  { %v5108_v51 = vadd.f32 %v1871_v15, %v1869_v9  ;;  %v3667_v27 = vpop.eup %3666  ;;  %v1865_v13 = vmul.f32 0.5, %v3665_v4  ;;  %v5742_v15 = vld [vmem:[#allocation51_spill] sm:$0xff]  ;;  %v5743_v4 = vld [vmem:[#allocation52_spill] sm:$0xff] }
 0x5b3   :  { %v1876_v57 = vmul.f32 %v3667_v27, %v1866_v19  ;;  %v578_v18 = vadd.f32 %v5742_v15, %v4735_v50  ;;  %v667_v27 = vadd.f32 %v5743_v4, %v4737_v35  ;;  %v5744_v19 = vld [vmem:[#allocation53_spill] sm:$0xff] }
 0x5b4   :  { %3668 = vtanh.f32 %v5108_v51  ;;  %v1867_v10 = vadd.f32 0.5, %v1865_v13  ;;  %v402_v13 = vadd.f32 %v5744_v19, %v4723_v61 }
 0x5b5   :  { %v1878_v38 = vpack.c.bf16 %v1876_v57, %v1876_v57 }
 0x5b7   :  { %v1896_v58 = vunpack.c.l.b16 %v1878_v38 }
 0x5ba   :  { %v3669_v29 = vpop.eup %3668 }
 0x5bb   :  { %v1877_v11 = vmul.f32 %v3669_v29, %v1867_v10 }
 0x5bd   :  { %v1879_v5 = vpack.c.bf16 %v1877_v11, %v1877_v11  ;;  %v3467_v49 = vpack.c.bf16 %v1877_v11, %v1876_v57  ;;  %v5745_v57 = vld [vmem:[#allocation54_spill] sm:$0xff] }
 0x5be   :  { %v491_v10 = vadd.f32 %v5745_v57, %v4725_v45 }
 0x5bf   :  { %3519 = vst [vmem:[%s5579_s4 + $0x30] sm:$0xff] %v3467_v49   ;;  %v1897_v59 = vunpack.c.l.b16 %v1879_v5 }
 0x5c1   :  { %v1898_v25 = vpack.c.b16 %v1897_v59, %v1896_v58 }
 0x5c3   :  { %1908 = vmatmul.bf16.vlgmr.msra.gmra.mxu0 %v1898_v25  ;;  %1922 = vmatmul.bf16.vlgmr.msra.gmra.mxu1 %v1898_v25 }
 0x5c4   :  { %1936 = vmatmul.bf16.vlgmr.msra.gmra.mxu2 %v1898_v25  ;;  %1950 = vmatmul.bf16.vlgmr.msra.gmra.mxu3 %v1898_v25 }
 0x5c5   :  { %2144 = vmatpush.bf16.msra.mxu0 %v4080_v36  ;;  %2158 = vmatpush.bf16.msra.mxu1 %v4091_v40 }
 0x5c6   :  { %2172 = vmatpush.bf16.msra.mxu2 %v4099_v43  ;;  %2186 = vmatpush.bf16.msra.mxu3 %v4102_v44 }
 0x5c9   :  { %2145 = vmatpush.bf16.msra.mxu0 %v4116_v48  ;;  %2159 = vmatpush.bf16.msra.mxu1 %v4127_v52 }
 0x5ca   :  { %2173 = vmatpush.bf16.msra.mxu2 %v4129_v53  ;;  %2187 = vmatpush.bf16.msra.mxu3 %v4138_v56 }
 0x5cd   :  { %2146 = vmatpush.bf16.msra.mxu0 %v4158_v62  ;;  %2160 = vmatpush.bf16.msra.mxu1 %v4169_v2 }
 0x5ce   :  { %2174 = vmatpush.bf16.msra.mxu2 %v4171_v3  ;;  %2188 = vmatpush.bf16.msra.mxu3 %v4180_v6 }
 0x5d1   :  { %2147 = vmatpush.bf16.msra.mxu0 %v4200_v12  ;;  %2161 = vmatpush.bf16.msra.mxu1 %v4211_v16 }
 0x5d2   :  { %2175 = vmatpush.bf16.msra.mxu2 %v4213_v17  ;;  %2189 = vmatpush.bf16.msra.mxu3 %v4222_v20 }
 0x5d5   :  { %2148 = vmatpush.bf16.msra.mxu0 %v4242_v26  ;;  %2162 = vmatpush.bf16.msra.mxu1 %v4253_v30 }
 0x5d6   :  { %2176 = vmatpush.bf16.msra.mxu2 %v4255_v31  ;;  %2190 = vmatpush.bf16.msra.mxu3 %v4266_v34 }
 0x5d9   :  { %2149 = vmatpush.bf16.msra.mxu0 %v4288_v46  ;;  %2163 = vmatpush.bf16.msra.mxu1 %v4301_v54 }
 0x5da   :  { %2177 = vmatpush.bf16.msra.mxu2 %v4303_v55  ;;  %2191 = vmatpush.bf16.msra.mxu3 %v4320_v63 }
 0x5dd   :  { %2150 = vmatpush.bf16.msra.mxu0 %v4362_v24  ;;  %2164 = vmatpush.bf16.msra.mxu1 %v4375_v32 }
 0x5de   :  { %2178 = vmatpush.bf16.msra.mxu2 %v4377_v33  ;;  %2192 = vmatpush.bf16.msra.mxu3 %v4394_v47 }
 0x5e1   :  { %2151 = vmatpush.bf16.msra.mxu0 %v4436_v23  ;;  %2165 = vmatpush.bf16.msra.mxu1 %v4449_v21 }
 0x5e2   :  { %2179 = vmatpush.bf16.msra.mxu2 %v4451_v14  ;;  %2193 = vmatpush.bf16.msra.mxu3 %v4470_v42 }
 0x640   :  { %v1909_v0 = vpop.f32.mrf.mxu0  ;;  %v1923_v41 = vpop.f32.mrf.mxu1 }
 0x641   :  { %v1956_v8 = vadd.f32 %v1909_v0, %v400_v28  ;;  %v1957_v60 = vadd.f32 %v1923_v41, %v489_v39 }
 0x643   :  { %v1964_v1 = vmul.f32 0.5, %v1956_v8  ;;  %v1972_v9 = vmul.f32 0.5, %v1957_v60  ;;  %v5746_v60 = vld [vmem:[#allocation55_spill] sm:$0xff] }
 0x645   :  { %3670 = vtanh.f32 %v1964_v1  ;;  %v580_v1 = vadd.f32 %v5746_v60, %v4735_v50 }
 0x646   :  { %3672 = vtanh.f32 %v1972_v9  ;;  %v5747_v9 = vld [vmem:[#allocation56_spill] sm:$0xff] }
 0x647   :  { %v1937_v29 = vpop.f32.mrf.mxu2  ;;  %v1951_v38 = vpop.f32.mrf.mxu3  ;;  %v669_v15 = vadd.f32 %v5747_v9, %v4737_v35 }
 0x648   :  { %v1958_v11 = vadd.f32 %v1937_v29, %v578_v18  ;;  %v1911_v5 = vpop.f32.mrf.mxu0  ;;  %v1925_v49 = vpop.f32.mrf.mxu1  ;;  %v1959_v58 = vadd.f32 %v1951_v38, %v667_v27 }
 0x649   :  { %v1960_v59 = vadd.f32 %v1911_v5, %v402_v13  ;;  %v1961_v25 = vadd.f32 %v1925_v49, %v491_v10 }
 0x64a   :  { %3674 = vtanh.f32 %v1958_v11  ;;  %v1982_v8 = vmul.f32 0.5, %v1959_v58 }
 0x64b   :  { %v3671_v7 = vpop.eup %3670  ;;  %v1965_v28 = vmul.f32 0.5, %v1960_v59  ;;  %v1973_v22 = vmul.f32 0.5, %v1961_v25 }
 0x64c   :  { %v3673_v39 = vpop.eup %3672  ;;  %v1968_v0 = vmul.f32 0.5, %v3671_v7 }
 0x64d   :  { %v1976_v41 = vmul.f32 0.5, %v3673_v39  ;;  %3676 = vtanh.f32 %v1965_v28 }
 0x64e   :  { %v1970_v18 = vadd.f32 0.5, %v1968_v0  ;;  %3678 = vtanh.f32 %v1973_v22 }
 0x64f   :  { %v1978_v4 = vadd.f32 0.5, %v1976_v41  ;;  %v1939_v27 = vpop.f32.mrf.mxu2  ;;  %v1953_v19 = vpop.f32.mrf.mxu3  ;;  %3680 = vtanh.f32 %v1982_v8 }
 0x650   :  { %v3675_v13 = vpop.eup %3674  ;;  %v1962_v57 = vadd.f32 %v1939_v27, %v580_v1  ;;  %v1963_v10 = vadd.f32 %v1953_v19, %v669_v15 }
 0x651   :  { %v1990_v29 = vmul.f32 %v1978_v4, %v5104_v37  ;;  %v1992_v38 = vmul.f32 %v3675_v13, %v1970_v18 }
 0x652   :  { %3682 = vtanh.f32 %v1962_v57  ;;  %v1983_v11 = vmul.f32 0.5, %v1963_v10 }
 0x653   :  { %v3677_v5 = vpop.eup %3676  ;;  %v5163_v49 = vadd.f32 %v1992_v38, %v1990_v29 }
 0x654   :  { %v3679_v58 = vpop.eup %3678  ;;  %v1969_v59 = vmul.f32 0.5, %v3677_v5  ;;  %3684 = vtanh.f32 %v1983_v11  ;;  %v5748_v11 = vld [vmem:[#allocation57_spill] sm:$0xff] }
 0x655   :  { %v1977_v25 = vmul.f32 0.5, %v3679_v58  ;;  %v3681_v28 = vpop.eup %3680  ;;  %3686 = vtanh.f32 %v5163_v49  ;;  %v405_v5 = vadd.f32 %v5748_v11, %v4723_v61  ;;  %v5749_v58 = vld [vmem:[#allocation58_spill] sm:$0xff] }
 0x656   :  { %v1971_v7 = vadd.f32 0.5, %v1969_v59  ;;  %v1986_v41 = vmul.f32 0.5, %v3681_v28  ;;  %v494_v59 = vadd.f32 %v5749_v58, %v4725_v45 }
 0x657   :  { %v1979_v22 = vadd.f32 0.5, %v1977_v25 }
 0x658   :  { %v3683_v39 = vpop.eup %3682  ;;  %v1988_v9 = vadd.f32 0.5, %v1986_v41 }
 0x659   :  { %v1991_v0 = vmul.f32 %v1979_v22, %v5108_v51  ;;  %v1993_v37 = vmul.f32 %v3683_v39, %v1971_v7 }
 0x65a   :  { %v3685_v8 = vpop.eup %3684 }
 0x65b   :  { %v5167_v60 = vadd.f32 %v1993_v37, %v1991_v0  ;;  %v3687_v1 = vpop.eup %3686  ;;  %v1987_v15 = vmul.f32 0.5, %v3685_v8  ;;  %v5750_v37 = vld [vmem:[#allocation59_spill] sm:$0xff]  ;;  %v5751_v8 = vld [vmem:[#allocation60_spill] sm:$0xff] }
 0x65c   :  { %v1998_v18 = vmul.f32 %v3687_v1, %v1988_v9  ;;  %v583_v41 = vadd.f32 %v5750_v37, %v4735_v50  ;;  %v672_v1 = vadd.f32 %v5751_v8, %v4737_v35  ;;  %v5752_v9 = vld [vmem:[#allocation61_spill] sm:$0xff] }
 0x65d   :  { %3688 = vtanh.f32 %v5167_v60  ;;  %v1989_v4 = vadd.f32 0.5, %v1987_v15  ;;  %v407_v15 = vadd.f32 %v5752_v9, %v4723_v61 }
 0x65e   :  { %v2000_v19 = vpack.c.bf16 %v1998_v18, %v1998_v18 }
 0x660   :  { %v2018_v29 = vunpack.c.l.b16 %v2000_v19 }
 0x663   :  { %v3689_v27 = vpop.eup %3688 }
 0x664   :  { %v1999_v13 = vmul.f32 %v3689_v27, %v1989_v4 }
 0x666   :  { %v2001_v57 = vpack.c.bf16 %v1999_v13, %v1999_v13  ;;  %v3472_v10 = vpack.c.bf16 %v1999_v13, %v1998_v18  ;;  %v5753_v18 = vld [vmem:[#allocation62_spill] sm:$0xff] }
 0x667   :  { %v496_v4 = vadd.f32 %v5753_v18, %v4725_v45 }
 0x668   :  { %3520 = vst [vmem:[%s5579_s4 + $0x38] sm:$0xff] %v3472_v10   ;;  %v2019_v51 = vunpack.c.l.b16 %v2001_v57 }
 0x66a   :  { %v2020_v38 = vpack.c.b16 %v2019_v51, %v2018_v29 }
 0x66c   :  { %2030 = vmatmul.bf16.vlgmr.msrb.gmra.mxu0 %v2020_v38  ;;  %2044 = vmatmul.bf16.vlgmr.msrb.gmra.mxu1 %v2020_v38 }
 0x66d   :  { %2058 = vmatmul.bf16.vlgmr.msrb.gmra.mxu2 %v2020_v38  ;;  %2072 = vmatmul.bf16.vlgmr.msrb.gmra.mxu3 %v2020_v38 }
 0x66e   :  { %2266 = vmatpush.bf16.msrb.mxu0 %v4080_v36  ;;  %2280 = vmatpush.bf16.msrb.mxu1 %v4091_v40 }
 0x66f   :  { %2294 = vmatpush.bf16.msrb.mxu2 %v4099_v43  ;;  %2308 = vmatpush.bf16.msrb.mxu3 %v4102_v44 }
 0x672   :  { %2267 = vmatpush.bf16.msrb.mxu0 %v4116_v48  ;;  %2281 = vmatpush.bf16.msrb.mxu1 %v4127_v52 }
 0x673   :  { %2295 = vmatpush.bf16.msrb.mxu2 %v4129_v53  ;;  %2309 = vmatpush.bf16.msrb.mxu3 %v4138_v56 }
 0x676   :  { %2268 = vmatpush.bf16.msrb.mxu0 %v4158_v62  ;;  %2282 = vmatpush.bf16.msrb.mxu1 %v4169_v2 }
 0x677   :  { %2296 = vmatpush.bf16.msrb.mxu2 %v4171_v3  ;;  %2310 = vmatpush.bf16.msrb.mxu3 %v4180_v6 }
 0x67a   :  { %2269 = vmatpush.bf16.msrb.mxu0 %v4200_v12  ;;  %2283 = vmatpush.bf16.msrb.mxu1 %v4211_v16 }
 0x67b   :  { %2297 = vmatpush.bf16.msrb.mxu2 %v4213_v17  ;;  %2311 = vmatpush.bf16.msrb.mxu3 %v4222_v20 }
 0x67e   :  { %2270 = vmatpush.bf16.msrb.mxu0 %v4242_v26  ;;  %2284 = vmatpush.bf16.msrb.mxu1 %v4253_v30 }
 0x67f   :  { %2298 = vmatpush.bf16.msrb.mxu2 %v4255_v31  ;;  %2312 = vmatpush.bf16.msrb.mxu3 %v4266_v34 }
 0x682   :  { %2271 = vmatpush.bf16.msrb.mxu0 %v4288_v46  ;;  %2285 = vmatpush.bf16.msrb.mxu1 %v4301_v54 }
 0x683   :  { %2299 = vmatpush.bf16.msrb.mxu2 %v4303_v55  ;;  %2313 = vmatpush.bf16.msrb.mxu3 %v4320_v63 }
 0x686   :  { %2272 = vmatpush.bf16.msrb.mxu0 %v4362_v24  ;;  %2286 = vmatpush.bf16.msrb.mxu1 %v4375_v32 }
 0x687   :  { %2300 = vmatpush.bf16.msrb.mxu2 %v4377_v33  ;;  %2314 = vmatpush.bf16.msrb.mxu3 %v4394_v47 }
 0x68a   :  { %2273 = vmatpush.bf16.msrb.mxu0 %v4436_v23  ;;  %2287 = vmatpush.bf16.msrb.mxu1 %v4449_v21 }
 0x68b   :  { %2301 = vmatpush.bf16.msrb.mxu2 %v4451_v14  ;;  %2315 = vmatpush.bf16.msrb.mxu3 %v4470_v42 }
 0x6e9   :  { %v2031_v25 = vpop.f32.mrf.mxu0  ;;  %v2045_v7 = vpop.f32.mrf.mxu1 }
 0x6ea   :  { %v2078_v28 = vadd.f32 %v2031_v25, %v405_v5  ;;  %v2079_v22 = vadd.f32 %v2045_v7, %v494_v59 }
 0x6ec   :  { %v2086_v39 = vmul.f32 0.5, %v2078_v28  ;;  %v2094_v0 = vmul.f32 0.5, %v2079_v22  ;;  %v5754_v22 = vld [vmem:[#allocation63_spill] sm:$0xff] }
 0x6ee   :  { %3690 = vtanh.f32 %v2086_v39  ;;  %v585_v39 = vadd.f32 %v5754_v22, %v4735_v50 }
 0x6ef   :  { %3692 = vtanh.f32 %v2094_v0  ;;  %v5755_v0 = vld [vmem:[#allocation64_spill] sm:$0xff] }
 0x6f0   :  { %v2059_v27 = vpop.f32.mrf.mxu2  ;;  %v2073_v19 = vpop.f32.mrf.mxu3  ;;  %v674_v37 = vadd.f32 %v5755_v0, %v4737_v35 }
 0x6f1   :  { %v2080_v13 = vadd.f32 %v2059_v27, %v583_v41  ;;  %v2033_v57 = vpop.f32.mrf.mxu0  ;;  %v2047_v10 = vpop.f32.mrf.mxu1  ;;  %v2081_v29 = vadd.f32 %v2073_v19, %v672_v1 }
 0x6f2   :  { %v2082_v51 = vadd.f32 %v2033_v57, %v407_v15  ;;  %v2083_v38 = vadd.f32 %v2047_v10, %v496_v4 }
 0x6f3   :  { %3694 = vtanh.f32 %v2080_v13  ;;  %v2104_v28 = vmul.f32 0.5, %v2081_v29 }
 0x6f4   :  { %v3691_v11 = vpop.eup %3690  ;;  %v2087_v5 = vmul.f32 0.5, %v2082_v51  ;;  %v2095_v58 = vmul.f32 0.5, %v2083_v38 }
 0x6f5   :  { %v3693_v59 = vpop.eup %3692  ;;  %v2090_v25 = vmul.f32 0.5, %v3691_v11 }
 0x6f6   :  { %v2098_v7 = vmul.f32 0.5, %v3693_v59  ;;  %3696 = vtanh.f32 %v2087_v5 }
 0x6f7   :  { %v2092_v41 = vadd.f32 0.5, %v2090_v25  ;;  %3698 = vtanh.f32 %v2095_v58 }
 0x6f8   :  { %v2100_v8 = vadd.f32 0.5, %v2098_v7  ;;  %v2061_v1 = vpop.f32.mrf.mxu2  ;;  %v2075_v9 = vpop.f32.mrf.mxu3  ;;  %3700 = vtanh.f32 %v2104_v28 }
 0x6f9   :  { %v3695_v15 = vpop.eup %3694  ;;  %v2084_v18 = vadd.f32 %v2061_v1, %v585_v39  ;;  %v2085_v4 = vadd.f32 %v2075_v9, %v674_v37 }
 0x6fa   :  { %v2112_v27 = vmul.f32 %v2100_v8, %v5163_v49  ;;  %v2114_v19 = vmul.f32 %v3695_v15, %v2092_v41 }
 0x6fb   :  { %3702 = vtanh.f32 %v2084_v18  ;;  %v2105_v13 = vmul.f32 0.5, %v2085_v4 }
 0x6fc   :  { %v3697_v57 = vpop.eup %3696  ;;  %v5222_v10 = vadd.f32 %v2114_v19, %v2112_v27 }
 0x6fd   :  { %v3699_v29 = vpop.eup %3698  ;;  %v2091_v51 = vmul.f32 0.5, %v3697_v57  ;;  %3704 = vtanh.f32 %v2105_v13  ;;  %v5756_v13 = vld [vmem:[#allocation65_spill] sm:$0xff] }
 0x6fe   :  { %v2099_v38 = vmul.f32 0.5, %v3699_v29  ;;  %v3701_v5 = vpop.eup %3700  ;;  %3706 = vtanh.f32 %v5222_v10  ;;  %v410_v57 = vadd.f32 %v5756_v13, %v4723_v61  ;;  %v5757_v29 = vld [vmem:[#allocation66_spill] sm:$0xff] }
 0x6ff   :  { %v2093_v11 = vadd.f32 0.5, %v2091_v51  ;;  %v2108_v7 = vmul.f32 0.5, %v3701_v5  ;;  %v499_v51 = vadd.f32 %v5757_v29, %v4725_v45 }
 0x700   :  { %v2101_v58 = vadd.f32 0.5, %v2099_v38 }
 0x701   :  { %v3703_v59 = vpop.eup %3702  ;;  %v2110_v0 = vadd.f32 0.5, %v2108_v7 }
 0x702   :  { %v2113_v25 = vmul.f32 %v2101_v58, %v5167_v60  ;;  %v2115_v49 = vmul.f32 %v3703_v59, %v2093_v11 }
 0x703   :  { %v3705_v28 = vpop.eup %3704 }
 0x704   :  { %v5226_v22 = vadd.f32 %v2115_v49, %v2113_v25  ;;  %v3707_v39 = vpop.eup %3706  ;;  %v2109_v37 = vmul.f32 0.5, %v3705_v28  ;;  %v5758_v49 = vld [vmem:[#allocation67_spill] sm:$0xff]  ;;  %v5759_v28 = vld [vmem:[#allocation68_spill] sm:$0xff] }
 0x705   :  { %v2120_v41 = vmul.f32 %v3707_v39, %v2110_v0  ;;  %v588_v7 = vadd.f32 %v5758_v49, %v4735_v50  ;;  %v677_v39 = vadd.f32 %v5759_v28, %v4737_v35  ;;  %v5760_v0 = vld [vmem:[#allocation69_spill] sm:$0xff] }
 0x706   :  { %3708 = vtanh.f32 %v5226_v22  ;;  %v2111_v8 = vadd.f32 0.5, %v2109_v37  ;;  %v412_v37 = vadd.f32 %v5760_v0, %v4723_v61 }
 0x707   :  { %v2122_v9 = vpack.c.bf16 %v2120_v41, %v2120_v41 }
 0x709   :  { %v2140_v27 = vunpack.c.l.b16 %v2122_v9 }
 0x70c   :  { %v3709_v1 = vpop.eup %3708 }
 0x70d   :  { %v2121_v15 = vmul.f32 %v3709_v1, %v2111_v8 }
 0x70f   :  { %v2123_v18 = vpack.c.bf16 %v2121_v15, %v2121_v15  ;;  %v3477_v4 = vpack.c.bf16 %v2121_v15, %v2120_v41  ;;  %v5761_v41 = vld [vmem:[#allocation70_spill] sm:$0xff] }
 0x710   :  { %v501_v8 = vadd.f32 %v5761_v41, %v4725_v45 }
 0x711   :  { %3521 = vst [vmem:[%s5579_s4 + $0x40] sm:$0xff] %v3477_v4   ;;  %v2141_v60 = vunpack.c.l.b16 %v2123_v18 }
 0x713   :  { %v2142_v19 = vpack.c.b16 %v2141_v60, %v2140_v27 }
 0x715   :  { %2152 = vmatmul.bf16.vlgmr.msra.gmra.mxu0 %v2142_v19  ;;  %2166 = vmatmul.bf16.vlgmr.msra.gmra.mxu1 %v2142_v19 }
 0x716   :  { %2180 = vmatmul.bf16.vlgmr.msra.gmra.mxu2 %v2142_v19  ;;  %2194 = vmatmul.bf16.vlgmr.msra.gmra.mxu3 %v2142_v19 }
 0x717   :  { %2388 = vmatpush.bf16.msra.mxu0 %v4080_v36  ;;  %2402 = vmatpush.bf16.msra.mxu1 %v4091_v40 }
 0x718   :  { %2416 = vmatpush.bf16.msra.mxu2 %v4099_v43  ;;  %2430 = vmatpush.bf16.msra.mxu3 %v4102_v44 }
 0x71b   :  { %2389 = vmatpush.bf16.msra.mxu0 %v4116_v48  ;;  %2403 = vmatpush.bf16.msra.mxu1 %v4127_v52 }
 0x71c   :  { %2417 = vmatpush.bf16.msra.mxu2 %v4129_v53  ;;  %2431 = vmatpush.bf16.msra.mxu3 %v4138_v56 }
 0x71f   :  { %2390 = vmatpush.bf16.msra.mxu0 %v4158_v62  ;;  %2404 = vmatpush.bf16.msra.mxu1 %v4169_v2 }
 0x720   :  { %2418 = vmatpush.bf16.msra.mxu2 %v4171_v3  ;;  %2432 = vmatpush.bf16.msra.mxu3 %v4180_v6 }
 0x723   :  { %2391 = vmatpush.bf16.msra.mxu0 %v4200_v12  ;;  %2405 = vmatpush.bf16.msra.mxu1 %v4211_v16 }
 0x724   :  { %2419 = vmatpush.bf16.msra.mxu2 %v4213_v17  ;;  %2433 = vmatpush.bf16.msra.mxu3 %v4222_v20 }
 0x727   :  { %2392 = vmatpush.bf16.msra.mxu0 %v4242_v26  ;;  %2406 = vmatpush.bf16.msra.mxu1 %v4253_v30 }
 0x728   :  { %2420 = vmatpush.bf16.msra.mxu2 %v4255_v31  ;;  %2434 = vmatpush.bf16.msra.mxu3 %v4266_v34 }
 0x72b   :  { %2393 = vmatpush.bf16.msra.mxu0 %v4288_v46  ;;  %2407 = vmatpush.bf16.msra.mxu1 %v4301_v54 }
 0x72c   :  { %2421 = vmatpush.bf16.msra.mxu2 %v4303_v55  ;;  %2435 = vmatpush.bf16.msra.mxu3 %v4320_v63 }
 0x72f   :  { %2394 = vmatpush.bf16.msra.mxu0 %v4362_v24  ;;  %2408 = vmatpush.bf16.msra.mxu1 %v4375_v32 }
 0x730   :  { %2422 = vmatpush.bf16.msra.mxu2 %v4377_v33  ;;  %2436 = vmatpush.bf16.msra.mxu3 %v4394_v47 }
 0x733   :  { %2395 = vmatpush.bf16.msra.mxu0 %v4436_v23  ;;  %2409 = vmatpush.bf16.msra.mxu1 %v4449_v21 }
 0x734   :  { %2423 = vmatpush.bf16.msra.mxu2 %v4451_v14  ;;  %2437 = vmatpush.bf16.msra.mxu3 %v4470_v42 }
 0x792   :  { %v2153_v38 = vpop.f32.mrf.mxu0  ;;  %v2167_v11 = vpop.f32.mrf.mxu1 }
 0x793   :  { %v2200_v5 = vadd.f32 %v2153_v38, %v410_v57  ;;  %v2201_v58 = vadd.f32 %v2167_v11, %v499_v51 }
 0x795   :  { %v2208_v59 = vmul.f32 0.5, %v2200_v5  ;;  %v2216_v25 = vmul.f32 0.5, %v2201_v58  ;;  %v5762_v58 = vld [vmem:[#allocation71_spill] sm:$0xff] }
 0x797   :  { %3710 = vtanh.f32 %v2208_v59  ;;  %v590_v59 = vadd.f32 %v5762_v58, %v4735_v50 }
 0x798   :  { %3712 = vtanh.f32 %v2216_v25  ;;  %v5763_v25 = vld [vmem:[#allocation72_spill] sm:$0xff] }
 0x799   :  { %v2181_v1 = vpop.f32.mrf.mxu2  ;;  %v2195_v9 = vpop.f32.mrf.mxu3  ;;  %v679_v49 = vadd.f32 %v5763_v25, %v4737_v35 }
 0x79a   :  { %v2202_v15 = vadd.f32 %v2181_v1, %v588_v7  ;;  %v2155_v18 = vpop.f32.mrf.mxu0  ;;  %v2169_v4 = vpop.f32.mrf.mxu1  ;;  %v2203_v27 = vadd.f32 %v2195_v9, %v677_v39 }
 0x79b   :  { %v2204_v60 = vadd.f32 %v2155_v18, %v412_v37  ;;  %v2205_v19 = vadd.f32 %v2169_v4, %v501_v8 }
 0x79c   :  { %3714 = vtanh.f32 %v2202_v15  ;;  %v2226_v5 = vmul.f32 0.5, %v2203_v27 }
 0x79d   :  { %v3711_v13 = vpop.eup %3710  ;;  %v2209_v57 = vmul.f32 0.5, %v2204_v60  ;;  %v2217_v29 = vmul.f32 0.5, %v2205_v19 }
 0x79e   :  { %v3713_v51 = vpop.eup %3712  ;;  %v2212_v38 = vmul.f32 0.5, %v3711_v13 }
 0x79f   :  { %v2220_v11 = vmul.f32 0.5, %v3713_v51  ;;  %3716 = vtanh.f32 %v2209_v57 }
 0x7a0   :  { %v2214_v7 = vadd.f32 0.5, %v2212_v38  ;;  %3718 = vtanh.f32 %v2217_v29 }
 0x7a1   :  { %v2222_v28 = vadd.f32 0.5, %v2220_v11  ;;  %v2183_v39 = vpop.f32.mrf.mxu2  ;;  %v2197_v0 = vpop.f32.mrf.mxu3  ;;  %3720 = vtanh.f32 %v2226_v5 }
 0x7a2   :  { %v3715_v37 = vpop.eup %3714  ;;  %v2206_v41 = vadd.f32 %v2183_v39, %v590_v59  ;;  %v2207_v8 = vadd.f32 %v2197_v0, %v679_v49 }
 0x7a3   :  { %v2234_v1 = vmul.f32 %v2222_v28, %v5222_v10  ;;  %v2236_v9 = vmul.f32 %v3715_v37, %v2214_v7 }
 0x7a4   :  { %3722 = vtanh.f32 %v2206_v41  ;;  %v2227_v15 = vmul.f32 0.5, %v2207_v8 }
 0x7a5   :  { %v3717_v18 = vpop.eup %3716  ;;  %v5281_v4 = vadd.f32 %v2236_v9, %v2234_v1 }
 0x7a6   :  { %v3719_v27 = vpop.eup %3718  ;;  %v2213_v60 = vmul.f32 0.5, %v3717_v18  ;;  %3724 = vtanh.f32 %v2227_v15  ;;  %v5764_v15 = vld [vmem:[#allocation73_spill] sm:$0xff] }
 0x7a7   :  { %v2221_v19 = vmul.f32 0.5, %v3719_v27  ;;  %v3721_v57 = vpop.eup %3720  ;;  %3726 = vtanh.f32 %v5281_v4  ;;  %v415_v18 = vadd.f32 %v5764_v15, %v4723_v61  ;;  %v5765_v27 = vld [vmem:[#allocation74_spill] sm:$0xff] }
 0x7a8   :  { %v2215_v13 = vadd.f32 0.5, %v2213_v60  ;;  %v2230_v11 = vmul.f32 0.5, %v3721_v57  ;;  %v504_v60 = vadd.f32 %v5765_v27, %v4725_v45 }
 0x7a9   :  { %v2223_v29 = vadd.f32 0.5, %v2221_v19 }
 0x7aa   :  { %v3723_v51 = vpop.eup %3722  ;;  %v2232_v25 = vadd.f32 0.5, %v2230_v11 }
 0x7ab   :  { %v2235_v38 = vmul.f32 %v2223_v29, %v5226_v22  ;;  %v2237_v10 = vmul.f32 %v3723_v51, %v2215_v13 }
 0x7ac   :  { %v3725_v5 = vpop.eup %3724 }
 0x7ad   :  { %v5285_v58 = vadd.f32 %v2237_v10, %v2235_v38  ;;  %v3727_v59 = vpop.eup %3726  ;;  %v2231_v49 = vmul.f32 0.5, %v3725_v5  ;;  %v5766_v10 = vld [vmem:[#allocation75_spill] sm:$0xff]  ;;  %v5767_v5 = vld [vmem:[#allocation76_spill] sm:$0xff] }
 0x7ae   :  { %v2242_v7 = vmul.f32 %v3727_v59, %v2232_v25  ;;  %v593_v11 = vadd.f32 %v5766_v10, %v4735_v50  ;;  %v682_v59 = vadd.f32 %v5767_v5, %v4737_v35  ;;  %v5768_v25 = vld [vmem:[#allocation77_spill] sm:$0xff] }
 0x7af   :  { %3728 = vtanh.f32 %v5285_v58  ;;  %v2233_v28 = vadd.f32 0.5, %v2231_v49  ;;  %v417_v49 = vadd.f32 %v5768_v25, %v4723_v61 }
 0x7b0   :  { %v2244_v0 = vpack.c.bf16 %v2242_v7, %v2242_v7 }
 0x7b2   :  { %v2262_v1 = vunpack.c.l.b16 %v2244_v0 }
 0x7b5   :  { %v3729_v39 = vpop.eup %3728 }
 0x7b6   :  { %v2243_v37 = vmul.f32 %v3729_v39, %v2233_v28 }
 0x7b8   :  { %v2245_v41 = vpack.c.bf16 %v2243_v37, %v2243_v37  ;;  %v3482_v8 = vpack.c.bf16 %v2243_v37, %v2242_v7  ;;  %v5769_v7 = vld [vmem:[#allocation78_spill] sm:$0xff] }
 0x7b9   :  { %v506_v28 = vadd.f32 %v5769_v7, %v4725_v45 }
 0x7ba   :  { %3522 = vst [vmem:[%s5579_s4 + $0x48] sm:$0xff] %v3482_v8   ;;  %v2263_v22 = vunpack.c.l.b16 %v2245_v41 }
 0x7bc   :  { %v2264_v9 = vpack.c.b16 %v2263_v22, %v2262_v1 }
 0x7be   :  { %2274 = vmatmul.bf16.vlgmr.msrb.gmra.mxu0 %v2264_v9  ;;  %2288 = vmatmul.bf16.vlgmr.msrb.gmra.mxu1 %v2264_v9 }
 0x7bf   :  { %2302 = vmatmul.bf16.vlgmr.msrb.gmra.mxu2 %v2264_v9  ;;  %2316 = vmatmul.bf16.vlgmr.msrb.gmra.mxu3 %v2264_v9 }
 0x7c0   :  { %2510 = vmatpush.bf16.msrb.mxu0 %v4080_v36  ;;  %2524 = vmatpush.bf16.msrb.mxu1 %v4091_v40 }
 0x7c1   :  { %2538 = vmatpush.bf16.msrb.mxu2 %v4099_v43  ;;  %2552 = vmatpush.bf16.msrb.mxu3 %v4102_v44 }
 0x7c4   :  { %2511 = vmatpush.bf16.msrb.mxu0 %v4116_v48  ;;  %2525 = vmatpush.bf16.msrb.mxu1 %v4127_v52 }
 0x7c5   :  { %2539 = vmatpush.bf16.msrb.mxu2 %v4129_v53  ;;  %2553 = vmatpush.bf16.msrb.mxu3 %v4138_v56 }
 0x7c8   :  { %2512 = vmatpush.bf16.msrb.mxu0 %v4158_v62  ;;  %2526 = vmatpush.bf16.msrb.mxu1 %v4169_v2 }
 0x7c9   :  { %2540 = vmatpush.bf16.msrb.mxu2 %v4171_v3  ;;  %2554 = vmatpush.bf16.msrb.mxu3 %v4180_v6 }
 0x7cc   :  { %2513 = vmatpush.bf16.msrb.mxu0 %v4200_v12  ;;  %2527 = vmatpush.bf16.msrb.mxu1 %v4211_v16 }
 0x7cd   :  { %2541 = vmatpush.bf16.msrb.mxu2 %v4213_v17  ;;  %2555 = vmatpush.bf16.msrb.mxu3 %v4222_v20 }
 0x7d0   :  { %2514 = vmatpush.bf16.msrb.mxu0 %v4242_v26  ;;  %2528 = vmatpush.bf16.msrb.mxu1 %v4253_v30 }
 0x7d1   :  { %2542 = vmatpush.bf16.msrb.mxu2 %v4255_v31  ;;  %2556 = vmatpush.bf16.msrb.mxu3 %v4266_v34 }
 0x7d4   :  { %2515 = vmatpush.bf16.msrb.mxu0 %v4288_v46  ;;  %2529 = vmatpush.bf16.msrb.mxu1 %v4301_v54 }
 0x7d5   :  { %2543 = vmatpush.bf16.msrb.mxu2 %v4303_v55  ;;  %2557 = vmatpush.bf16.msrb.mxu3 %v4320_v63 }
 0x7d8   :  { %2516 = vmatpush.bf16.msrb.mxu0 %v4362_v24  ;;  %2530 = vmatpush.bf16.msrb.mxu1 %v4375_v32 }
 0x7d9   :  { %2544 = vmatpush.bf16.msrb.mxu2 %v4377_v33  ;;  %2558 = vmatpush.bf16.msrb.mxu3 %v4394_v47 }
 0x7dc   :  { %2517 = vmatpush.bf16.msrb.mxu0 %v4436_v23  ;;  %2531 = vmatpush.bf16.msrb.mxu1 %v4449_v21 }
 0x7dd   :  { %2545 = vmatpush.bf16.msrb.mxu2 %v4451_v14  ;;  %2559 = vmatpush.bf16.msrb.mxu3 %v4470_v42 }
 0x83b   :  { %v2275_v19 = vpop.f32.mrf.mxu0  ;;  %v2289_v13 = vpop.f32.mrf.mxu1 }
 0x83c   :  { %v2322_v57 = vadd.f32 %v2275_v19, %v415_v18  ;;  %v2323_v29 = vadd.f32 %v2289_v13, %v504_v60 }
 0x83e   :  { %v2330_v51 = vmul.f32 0.5, %v2322_v57  ;;  %v2338_v38 = vmul.f32 0.5, %v2323_v29  ;;  %v5770_v29 = vld [vmem:[#allocation79_spill] sm:$0xff] }
 0x840   :  { %3730 = vtanh.f32 %v2330_v51  ;;  %v595_v51 = vadd.f32 %v5770_v29, %v4735_v50 }
 0x841   :  { %3732 = vtanh.f32 %v2338_v38  ;;  %v5771_v38 = vld [vmem:[#allocation80_spill] sm:$0xff] }
 0x842   :  { %v2303_v39 = vpop.f32.mrf.mxu2  ;;  %v2317_v0 = vpop.f32.mrf.mxu3  ;;  %v684_v10 = vadd.f32 %v5771_v38, %v4737_v35 }
 0x843   :  { %v2324_v37 = vadd.f32 %v2303_v39, %v593_v11  ;;  %v2277_v41 = vpop.f32.mrf.mxu0  ;;  %v2291_v8 = vpop.f32.mrf.mxu1  ;;  %v2325_v1 = vadd.f32 %v2317_v0, %v682_v59 }
 0x844   :  { %v2326_v22 = vadd.f32 %v2277_v41, %v417_v49  ;;  %v2327_v9 = vadd.f32 %v2291_v8, %v506_v28 }
 0x845   :  { %3734 = vtanh.f32 %v2324_v37  ;;  %v2348_v57 = vmul.f32 0.5, %v2325_v1 }
 0x846   :  { %v3731_v15 = vpop.eup %3730  ;;  %v2331_v18 = vmul.f32 0.5, %v2326_v22  ;;  %v2339_v27 = vmul.f32 0.5, %v2327_v9 }
 0x847   :  { %v3733_v60 = vpop.eup %3732  ;;  %v2334_v19 = vmul.f32 0.5, %v3731_v15 }
 0x848   :  { %v2342_v13 = vmul.f32 0.5, %v3733_v60  ;;  %3736 = vtanh.f32 %v2331_v18 }
 0x849   :  { %v2336_v11 = vadd.f32 0.5, %v2334_v19  ;;  %3738 = vtanh.f32 %v2339_v27 }
 0x84a   :  { %v2344_v5 = vadd.f32 0.5, %v2342_v13  ;;  %v2305_v59 = vpop.f32.mrf.mxu2  ;;  %v2319_v25 = vpop.f32.mrf.mxu3  ;;  %3740 = vtanh.f32 %v2348_v57 }
 0x84b   :  { %v3735_v49 = vpop.eup %3734  ;;  %v2328_v7 = vadd.f32 %v2305_v59, %v595_v51  ;;  %v2329_v28 = vadd.f32 %v2319_v25, %v684_v10 }
 0x84c   :  { %v2356_v39 = vmul.f32 %v2344_v5, %v5281_v4  ;;  %v2358_v0 = vmul.f32 %v3735_v49, %v2336_v11 }
 0x84d   :  { %3742 = vtanh.f32 %v2328_v7  ;;  %v2349_v37 = vmul.f32 0.5, %v2329_v28 }
 0x84e   :  { %v3737_v41 = vpop.eup %3736  ;;  %v5340_v8 = vadd.f32 %v2358_v0, %v2356_v39 }
 0x84f   :  { %v3739_v1 = vpop.eup %3738  ;;  %v2335_v22 = vmul.f32 0.5, %v3737_v41  ;;  %3744 = vtanh.f32 %v2349_v37  ;;  %v5772_v37 = vld [vmem:[#allocation81_spill] sm:$0xff] }
 0x850   :  { %v2343_v9 = vmul.f32 0.5, %v3739_v1  ;;  %v3741_v18 = vpop.eup %3740  ;;  %3746 = vtanh.f32 %v5340_v8  ;;  %v420_v41 = vadd.f32 %v5772_v37, %v4723_v61  ;;  %v5773_v1 = vld [vmem:[#allocation82_spill] sm:$0xff] }
 0x851   :  { %v2337_v15 = vadd.f32 0.5, %v2335_v22  ;;  %v2352_v13 = vmul.f32 0.5, %v3741_v18  ;;  %v509_v22 = vadd.f32 %v5773_v1, %v4725_v45 }
 0x852   :  { %v2345_v27 = vadd.f32 0.5, %v2343_v9 }
 0x853   :  { %v3743_v60 = vpop.eup %3742  ;;  %v2354_v38 = vadd.f32 0.5, %v2352_v13 }
 0x854   :  { %v2357_v19 = vmul.f32 %v2345_v27, %v5285_v58  ;;  %v2359_v4 = vmul.f32 %v3743_v60, %v2337_v15 }
 0x855   :  { %v3745_v57 = vpop.eup %3744 }
 0x856   :  { %v5344_v29 = vadd.f32 %v2359_v4, %v2357_v19  ;;  %v3747_v51 = vpop.eup %3746  ;;  %v2353_v10 = vmul.f32 0.5, %v3745_v57  ;;  %v5774_v4 = vld [vmem:[#allocation83_spill] sm:$0xff]  ;;  %v5775_v57 = vld [vmem:[#allocation84_spill] sm:$0xff] }
 0x857   :  { %v2364_v11 = vmul.f32 %v3747_v51, %v2354_v38  ;;  %v598_v13 = vadd.f32 %v5774_v4, %v4735_v50  ;;  %v687_v51 = vadd.f32 %v5775_v57, %v4737_v35  ;;  %v5776_v38 = vld [vmem:[#allocation85_spill] sm:$0xff] }
 0x858   :  { %3748 = vtanh.f32 %v5344_v29  ;;  %v2355_v5 = vadd.f32 0.5, %v2353_v10  ;;  %v422_v10 = vadd.f32 %v5776_v38, %v4723_v61 }
 0x859   :  { %v2366_v25 = vpack.c.bf16 %v2364_v11, %v2364_v11 }
 0x85b   :  { %v2384_v39 = vunpack.c.l.b16 %v2366_v25 }
 0x85e   :  { %v3749_v59 = vpop.eup %3748 }
 0x85f   :  { %v2365_v49 = vmul.f32 %v3749_v59, %v2355_v5 }
 0x861   :  { %v2367_v7 = vpack.c.bf16 %v2365_v49, %v2365_v49  ;;  %v3487_v28 = vpack.c.bf16 %v2365_v49, %v2364_v11  ;;  %v5777_v11 = vld [vmem:[#allocation86_spill] sm:$0xff] }
 0x862   :  { %v511_v5 = vadd.f32 %v5777_v11, %v4725_v45 }
 0x863   :  { %3523 = vst [vmem:[%s5579_s4 + $0x50] sm:$0xff] %v3487_v28   ;;  %v2385_v58 = vunpack.c.l.b16 %v2367_v7 }
 0x865   :  { %v2386_v0 = vpack.c.b16 %v2385_v58, %v2384_v39 }
 0x867   :  { %2396 = vmatmul.bf16.vlgmr.msra.gmra.mxu0 %v2386_v0  ;;  %2410 = vmatmul.bf16.vlgmr.msra.gmra.mxu1 %v2386_v0 }
 0x868   :  { %2424 = vmatmul.bf16.vlgmr.msra.gmra.mxu2 %v2386_v0  ;;  %2438 = vmatmul.bf16.vlgmr.msra.gmra.mxu3 %v2386_v0 }
 0x869   :  { %2632 = vmatpush.bf16.msra.mxu0 %v4080_v36  ;;  %2646 = vmatpush.bf16.msra.mxu1 %v4091_v40 }
 0x86a   :  { %2660 = vmatpush.bf16.msra.mxu2 %v4099_v43  ;;  %2674 = vmatpush.bf16.msra.mxu3 %v4102_v44 }
 0x86d   :  { %2633 = vmatpush.bf16.msra.mxu0 %v4116_v48  ;;  %2647 = vmatpush.bf16.msra.mxu1 %v4127_v52 }
 0x86e   :  { %2661 = vmatpush.bf16.msra.mxu2 %v4129_v53  ;;  %2675 = vmatpush.bf16.msra.mxu3 %v4138_v56 }
 0x871   :  { %2634 = vmatpush.bf16.msra.mxu0 %v4158_v62  ;;  %2648 = vmatpush.bf16.msra.mxu1 %v4169_v2 }
 0x872   :  { %2662 = vmatpush.bf16.msra.mxu2 %v4171_v3  ;;  %2676 = vmatpush.bf16.msra.mxu3 %v4180_v6 }
 0x875   :  { %2635 = vmatpush.bf16.msra.mxu0 %v4200_v12  ;;  %2649 = vmatpush.bf16.msra.mxu1 %v4211_v16 }
 0x876   :  { %2663 = vmatpush.bf16.msra.mxu2 %v4213_v17  ;;  %2677 = vmatpush.bf16.msra.mxu3 %v4222_v20 }
 0x879   :  { %2636 = vmatpush.bf16.msra.mxu0 %v4242_v26  ;;  %2650 = vmatpush.bf16.msra.mxu1 %v4253_v30 }
 0x87a   :  { %2664 = vmatpush.bf16.msra.mxu2 %v4255_v31  ;;  %2678 = vmatpush.bf16.msra.mxu3 %v4266_v34 }
 0x87d   :  { %2637 = vmatpush.bf16.msra.mxu0 %v4288_v46  ;;  %2651 = vmatpush.bf16.msra.mxu1 %v4301_v54 }
 0x87e   :  { %2665 = vmatpush.bf16.msra.mxu2 %v4303_v55  ;;  %2679 = vmatpush.bf16.msra.mxu3 %v4320_v63 }
 0x881   :  { %2638 = vmatpush.bf16.msra.mxu0 %v4362_v24  ;;  %2652 = vmatpush.bf16.msra.mxu1 %v4375_v32 }
 0x882   :  { %2666 = vmatpush.bf16.msra.mxu2 %v4377_v33  ;;  %2680 = vmatpush.bf16.msra.mxu3 %v4394_v47 }
 0x885   :  { %2639 = vmatpush.bf16.msra.mxu0 %v4436_v23  ;;  %2653 = vmatpush.bf16.msra.mxu1 %v4449_v21 }
 0x886   :  { %2667 = vmatpush.bf16.msra.mxu2 %v4451_v14  ;;  %2681 = vmatpush.bf16.msra.mxu3 %v4470_v42 }
 0x8e4   :  { %v2397_v9 = vpop.f32.mrf.mxu0  ;;  %v2411_v15 = vpop.f32.mrf.mxu1 }
 0x8e5   :  { %v2444_v18 = vadd.f32 %v2397_v9, %v420_v41  ;;  %v2445_v27 = vadd.f32 %v2411_v15, %v509_v22 }
 0x8e7   :  { %v2452_v60 = vmul.f32 0.5, %v2444_v18  ;;  %v2460_v19 = vmul.f32 0.5, %v2445_v27  ;;  %v5778_v27 = vld [vmem:[#allocation87_spill] sm:$0xff] }
 0x8e9   :  { %3750 = vtanh.f32 %v2452_v60  ;;  %v600_v60 = vadd.f32 %v5778_v27, %v4735_v50 }
 0x8ea   :  { %3752 = vtanh.f32 %v2460_v19  ;;  %v5779_v19 = vld [vmem:[#allocation88_spill] sm:$0xff] }
 0x8eb   :  { %v2425_v59 = vpop.f32.mrf.mxu2  ;;  %v2439_v25 = vpop.f32.mrf.mxu3  ;;  %v689_v4 = vadd.f32 %v5779_v19, %v4737_v35 }
 0x8ec   :  { %v2446_v49 = vadd.f32 %v2425_v59, %v598_v13  ;;  %v2399_v7 = vpop.f32.mrf.mxu0  ;;  %v2413_v28 = vpop.f32.mrf.mxu1  ;;  %v2447_v39 = vadd.f32 %v2439_v25, %v687_v51 }
 0x8ed   :  { %v2448_v58 = vadd.f32 %v2399_v7, %v422_v10  ;;  %v2449_v0 = vadd.f32 %v2413_v28, %v511_v5 }
 0x8ee   :  { %3754 = vtanh.f32 %v2446_v49  ;;  %v2470_v18 = vmul.f32 0.5, %v2447_v39 }
 0x8ef   :  { %v3751_v37 = vpop.eup %3750  ;;  %v2453_v41 = vmul.f32 0.5, %v2448_v58  ;;  %v2461_v1 = vmul.f32 0.5, %v2449_v0 }
 0x8f0   :  { %v3753_v22 = vpop.eup %3752  ;;  %v2456_v9 = vmul.f32 0.5, %v3751_v37 }
 0x8f1   :  { %v2464_v15 = vmul.f32 0.5, %v3753_v22  ;;  %3756 = vtanh.f32 %v2453_v41 }
 0x8f2   :  { %v2458_v13 = vadd.f32 0.5, %v2456_v9  ;;  %3758 = vtanh.f32 %v2461_v1 }
 0x8f3   :  { %v2466_v57 = vadd.f32 0.5, %v2464_v15  ;;  %v2427_v51 = vpop.f32.mrf.mxu2  ;;  %v2441_v38 = vpop.f32.mrf.mxu3  ;;  %3760 = vtanh.f32 %v2470_v18 }
 0x8f4   :  { %v3755_v10 = vpop.eup %3754  ;;  %v2450_v11 = vadd.f32 %v2427_v51, %v600_v60  ;;  %v2451_v5 = vadd.f32 %v2441_v38, %v689_v4 }
 0x8f5   :  { %v2478_v59 = vmul.f32 %v2466_v57, %v5340_v8  ;;  %v2480_v25 = vmul.f32 %v3755_v10, %v2458_v13 }
 0x8f6   :  { %3762 = vtanh.f32 %v2450_v11  ;;  %v2471_v49 = vmul.f32 0.5, %v2451_v5 }
 0x8f7   :  { %v3757_v7 = vpop.eup %3756  ;;  %v5399_v28 = vadd.f32 %v2480_v25, %v2478_v59 }
 0x8f8   :  { %v3759_v39 = vpop.eup %3758  ;;  %v2457_v58 = vmul.f32 0.5, %v3757_v7  ;;  %3764 = vtanh.f32 %v2471_v49  ;;  %v5780_v49 = vld [vmem:[#allocation89_spill] sm:$0xff] }
 0x8f9   :  { %v2465_v0 = vmul.f32 0.5, %v3759_v39  ;;  %v3761_v41 = vpop.eup %3760  ;;  %3766 = vtanh.f32 %v5399_v28  ;;  %v425_v7 = vadd.f32 %v5780_v49, %v4723_v61  ;;  %v5781_v39 = vld [vmem:[#allocation90_spill] sm:$0xff] }
 0x8fa   :  { %v2459_v37 = vadd.f32 0.5, %v2457_v58  ;;  %v2474_v15 = vmul.f32 0.5, %v3761_v41  ;;  %v514_v58 = vadd.f32 %v5781_v39, %v4725_v45 }
 0x8fb   :  { %v2467_v1 = vadd.f32 0.5, %v2465_v0 }
 0x8fc   :  { %v3763_v22 = vpop.eup %3762  ;;  %v2476_v19 = vadd.f32 0.5, %v2474_v15 }
 0x8fd   :  { %v2479_v9 = vmul.f32 %v2467_v1, %v5344_v29  ;;  %v2481_v8 = vmul.f32 %v3763_v22, %v2459_v37 }
 0x8fe   :  { %v3765_v18 = vpop.eup %3764 }
 0x8ff   :  { %v5403_v27 = vadd.f32 %v2481_v8, %v2479_v9  ;;  %v3767_v60 = vpop.eup %3766  ;;  %v2475_v4 = vmul.f32 0.5, %v3765_v18  ;;  %v5782_v8 = vld [vmem:[#allocation91_spill] sm:$0xff]  ;;  %v5783_v18 = vld [vmem:[#allocation92_spill] sm:$0xff] }
 0x900   :  { %v2486_v13 = vmul.f32 %v3767_v60, %v2476_v19  ;;  %v603_v15 = vadd.f32 %v5782_v8, %v4735_v50  ;;  %v692_v60 = vadd.f32 %v5783_v18, %v4737_v35  ;;  %v5784_v19 = vld [vmem:[#allocation93_spill] sm:$0xff] }
 0x901   :  { %3768 = vtanh.f32 %v5403_v27  ;;  %v2477_v57 = vadd.f32 0.5, %v2475_v4  ;;  %v427_v4 = vadd.f32 %v5784_v19, %v4723_v61 }
 0x902   :  { %v2488_v38 = vpack.c.bf16 %v2486_v13, %v2486_v13 }
 0x904   :  { %v2506_v59 = vunpack.c.l.b16 %v2488_v38 }
 0x907   :  { %v3769_v51 = vpop.eup %3768 }
 0x908   :  { %v2487_v10 = vmul.f32 %v3769_v51, %v2477_v57 }
 0x90a   :  { %v2489_v11 = vpack.c.bf16 %v2487_v10, %v2487_v10  ;;  %v3492_v5 = vpack.c.bf16 %v2487_v10, %v2486_v13  ;;  %v5785_v13 = vld [vmem:[#allocation94_spill] sm:$0xff] }
 0x90b   :  { %v516_v57 = vadd.f32 %v5785_v13, %v4725_v45 }
 0x90c   :  { %3524 = vst [vmem:[%s5579_s4 + $0x58] sm:$0xff] %v3492_v5   ;;  %v2507_v29 = vunpack.c.l.b16 %v2489_v11 }
 0x90e   :  { %v2508_v25 = vpack.c.b16 %v2507_v29, %v2506_v59 }
 0x910   :  { %2518 = vmatmul.bf16.vlgmr.msrb.gmra.mxu0 %v2508_v25  ;;  %2532 = vmatmul.bf16.vlgmr.msrb.gmra.mxu1 %v2508_v25 }
 0x911   :  { %2546 = vmatmul.bf16.vlgmr.msrb.gmra.mxu2 %v2508_v25  ;;  %2560 = vmatmul.bf16.vlgmr.msrb.gmra.mxu3 %v2508_v25 }
 0x912   :  { %2754 = vmatpush.bf16.msrb.mxu0 %v4080_v36  ;;  %2768 = vmatpush.bf16.msrb.mxu1 %v4091_v40 }
 0x913   :  { %2782 = vmatpush.bf16.msrb.mxu2 %v4099_v43  ;;  %2796 = vmatpush.bf16.msrb.mxu3 %v4102_v44 }
 0x916   :  { %2755 = vmatpush.bf16.msrb.mxu0 %v4116_v48  ;;  %2769 = vmatpush.bf16.msrb.mxu1 %v4127_v52 }
 0x917   :  { %2783 = vmatpush.bf16.msrb.mxu2 %v4129_v53  ;;  %2797 = vmatpush.bf16.msrb.mxu3 %v4138_v56 }
 0x91a   :  { %2756 = vmatpush.bf16.msrb.mxu0 %v4158_v62  ;;  %2770 = vmatpush.bf16.msrb.mxu1 %v4169_v2 }
 0x91b   :  { %2784 = vmatpush.bf16.msrb.mxu2 %v4171_v3  ;;  %2798 = vmatpush.bf16.msrb.mxu3 %v4180_v6 }
 0x91e   :  { %2757 = vmatpush.bf16.msrb.mxu0 %v4200_v12  ;;  %2771 = vmatpush.bf16.msrb.mxu1 %v4211_v16 }
 0x91f   :  { %2785 = vmatpush.bf16.msrb.mxu2 %v4213_v17  ;;  %2799 = vmatpush.bf16.msrb.mxu3 %v4222_v20 }
 0x922   :  { %2758 = vmatpush.bf16.msrb.mxu0 %v4242_v26  ;;  %2772 = vmatpush.bf16.msrb.mxu1 %v4253_v30 }
 0x923   :  { %2786 = vmatpush.bf16.msrb.mxu2 %v4255_v31  ;;  %2800 = vmatpush.bf16.msrb.mxu3 %v4266_v34 }
 0x926   :  { %2759 = vmatpush.bf16.msrb.mxu0 %v4288_v46  ;;  %2773 = vmatpush.bf16.msrb.mxu1 %v4301_v54 }
 0x927   :  { %2787 = vmatpush.bf16.msrb.mxu2 %v4303_v55  ;;  %2801 = vmatpush.bf16.msrb.mxu3 %v4320_v63 }
 0x92a   :  { %2760 = vmatpush.bf16.msrb.mxu0 %v4362_v24  ;;  %2774 = vmatpush.bf16.msrb.mxu1 %v4375_v32 }
 0x92b   :  { %2788 = vmatpush.bf16.msrb.mxu2 %v4377_v33  ;;  %2802 = vmatpush.bf16.msrb.mxu3 %v4394_v47 }
 0x92e   :  { %2761 = vmatpush.bf16.msrb.mxu0 %v4436_v23  ;;  %2775 = vmatpush.bf16.msrb.mxu1 %v4449_v21 }
 0x92f   :  { %2789 = vmatpush.bf16.msrb.mxu2 %v4451_v14  ;;  %2803 = vmatpush.bf16.msrb.mxu3 %v4470_v42 }
 0x98d   :  { %v2519_v0 = vpop.f32.mrf.mxu0  ;;  %v2533_v37 = vpop.f32.mrf.mxu1 }
 0x98e   :  { %v2566_v41 = vadd.f32 %v2519_v0, %v425_v7  ;;  %v2567_v1 = vadd.f32 %v2533_v37, %v514_v58 }
 0x990   :  { %v2574_v22 = vmul.f32 0.5, %v2566_v41  ;;  %v2582_v9 = vmul.f32 0.5, %v2567_v1  ;;  %v5786_v1 = vld [vmem:[#allocation95_spill] sm:$0xff] }
 0x992   :  { %3770 = vtanh.f32 %v2574_v22  ;;  %v605_v22 = vadd.f32 %v5786_v1, %v4735_v50 }
 0x993   :  { %3772 = vtanh.f32 %v2582_v9  ;;  %v5787_v9 = vld [vmem:[#allocation96_spill] sm:$0xff] }
 0x994   :  { %v2547_v51 = vpop.f32.mrf.mxu2  ;;  %v2561_v38 = vpop.f32.mrf.mxu3  ;;  %v694_v8 = vadd.f32 %v5787_v9, %v4737_v35 }
 0x995   :  { %v2568_v10 = vadd.f32 %v2547_v51, %v603_v15  ;;  %v2521_v11 = vpop.f32.mrf.mxu0  ;;  %v2535_v5 = vpop.f32.mrf.mxu1  ;;  %v2569_v59 = vadd.f32 %v2561_v38, %v692_v60 }
 0x996   :  { %v2570_v29 = vadd.f32 %v2521_v11, %v427_v4  ;;  %v2571_v25 = vadd.f32 %v2535_v5, %v516_v57 }
 0x997   :  { %3774 = vtanh.f32 %v2568_v10  ;;  %v2592_v41 = vmul.f32 0.5, %v2569_v59 }
 0x998   :  { %v3771_v49 = vpop.eup %3770  ;;  %v2575_v7 = vmul.f32 0.5, %v2570_v29  ;;  %v2583_v39 = vmul.f32 0.5, %v2571_v25 }
 0x999   :  { %v3773_v58 = vpop.eup %3772  ;;  %v2578_v0 = vmul.f32 0.5, %v3771_v49 }
 0x99a   :  { %v2586_v37 = vmul.f32 0.5, %v3773_v58  ;;  %3776 = vtanh.f32 %v2575_v7 }
 0x99b   :  { %v2580_v15 = vadd.f32 0.5, %v2578_v0  ;;  %3778 = vtanh.f32 %v2583_v39 }
 0x99c   :  { %v2588_v18 = vadd.f32 0.5, %v2586_v37  ;;  %v2549_v60 = vpop.f32.mrf.mxu2  ;;  %v2563_v19 = vpop.f32.mrf.mxu3  ;;  %3780 = vtanh.f32 %v2592_v41 }
 0x99d   :  { %v3775_v4 = vpop.eup %3774  ;;  %v2572_v13 = vadd.f32 %v2549_v60, %v605_v22  ;;  %v2573_v57 = vadd.f32 %v2563_v19, %v694_v8 }
 0x99e   :  { %v2600_v51 = vmul.f32 %v2588_v18, %v5399_v28  ;;  %v2602_v38 = vmul.f32 %v3775_v4, %v2580_v15 }
 0x99f   :  { %3782 = vtanh.f32 %v2572_v13  ;;  %v2593_v10 = vmul.f32 0.5, %v2573_v57 }
 0x9a0   :  { %v3777_v11 = vpop.eup %3776  ;;  %v5458_v5 = vadd.f32 %v2602_v38, %v2600_v51 }
 0x9a1   :  { %v3779_v59 = vpop.eup %3778  ;;  %v2579_v29 = vmul.f32 0.5, %v3777_v11  ;;  %3784 = vtanh.f32 %v2593_v10  ;;  %v5794_v11 = vld [vmem:[#allocation103_spill] sm:$0xff] }
 0x9a2   :  { %v2587_v25 = vmul.f32 0.5, %v3779_v59  ;;  %v3781_v7 = vpop.eup %3780  ;;  %3786 = vtanh.f32 %v5458_v5  ;;  %v610_v59 = vadd.f32 %v5794_v11, %v4735_v50 }
 0x9a3   :  { %v2581_v49 = vadd.f32 0.5, %v2579_v29  ;;  %v2596_v37 = vmul.f32 0.5, %v3781_v7  ;;  %v5795_v29 = vld [vmem:[#allocation104_spill] sm:$0xff] }
 0x9a4   :  { %v2589_v39 = vadd.f32 0.5, %v2587_v25  ;;  %v699_v25 = vadd.f32 %v5795_v29, %v4737_v35 }
 0x9a5   :  { %v3783_v58 = vpop.eup %3782  ;;  %v2598_v9 = vadd.f32 0.5, %v2596_v37 }
 0x9a6   :  { %v2601_v0 = vmul.f32 %v2589_v39, %v5403_v27  ;;  %v2603_v28 = vmul.f32 %v3783_v58, %v2581_v49 }
 0x9a7   :  { %v3785_v41 = vpop.eup %3784 }
 0x9a8   :  { %v5462_v1 = vadd.f32 %v2603_v28, %v2601_v0  ;;  %v3787_v22 = vpop.eup %3786  ;;  %v2597_v8 = vmul.f32 0.5, %v3785_v41 }
 0x9a9   :  { %v2608_v15 = vmul.f32 %v3787_v22, %v2598_v9 }
 0x9aa   :  { %3788 = vtanh.f32 %v5462_v1  ;;  %v2599_v18 = vadd.f32 0.5, %v2597_v8 }
 0x9ab   :  { %v2610_v19 = vpack.c.bf16 %v2608_v15, %v2608_v15 }
 0x9ad   :  { %v2628_v51 = vunpack.c.l.b16 %v2610_v19 }
 0x9b0   :  { %v3789_v60 = vpop.eup %3788 }
 0x9b1   :  { %v2609_v4 = vmul.f32 %v3789_v60, %v2599_v18 }
 0x9b3   :  { %v2611_v13 = vpack.c.bf16 %v2609_v4, %v2609_v4  ;;  %v3497_v57 = vpack.c.bf16 %v2609_v4, %v2608_v15 }
 0x9b5   :  { %3525 = vst [vmem:[%s5579_s4 + $0x60] sm:$0xff] %v3497_v57   ;;  %v2629_v27 = vunpack.c.l.b16 %v2611_v13 }
 0x9b7   :  { %v2630_v38 = vpack.c.b16 %v2629_v27, %v2628_v51 }
 0x9b9   :  { %2640 = vmatmul.bf16.vlgmr.msra.gmra.mxu0 %v2630_v38  ;;  %2654 = vmatmul.bf16.vlgmr.msra.gmra.mxu1 %v2630_v38 }
 0x9ba   :  { %2668 = vmatmul.bf16.vlgmr.msra.gmra.mxu2 %v2630_v38  ;;  %2682 = vmatmul.bf16.vlgmr.msra.gmra.mxu3 %v2630_v38 }
 0x9bb   :  { %2876 = vmatpush.bf16.msra.mxu0 %v4080_v36  ;;  %2890 = vmatpush.bf16.msra.mxu1 %v4091_v40  ;;  %v5788_v36 = vld [vmem:[#allocation97_spill] sm:$0xff] }
 0x9bc   :  { %2904 = vmatpush.bf16.msra.mxu2 %v4099_v43  ;;  %2918 = vmatpush.bf16.msra.mxu3 %v4102_v44  ;;  %v430_v40 = vadd.f32 %v5788_v36, %v4723_v61  ;;  %v5789_v43 = vld [vmem:[#allocation98_spill] sm:$0xff] }
 0x9bd   :  { %v519_v44 = vadd.f32 %v5789_v43, %v4725_v45 }
 0x9bf   :  { %2877 = vmatpush.bf16.msra.mxu0 %v4116_v48  ;;  %2891 = vmatpush.bf16.msra.mxu1 %v4127_v52 }
 0x9c0   :  { %2905 = vmatpush.bf16.msra.mxu2 %v4129_v53  ;;  %2919 = vmatpush.bf16.msra.mxu3 %v4138_v56 }
 0x9c3   :  { %2878 = vmatpush.bf16.msra.mxu0 %v4158_v62  ;;  %2892 = vmatpush.bf16.msra.mxu1 %v4169_v2 }
 0x9c4   :  { %2906 = vmatpush.bf16.msra.mxu2 %v4171_v3  ;;  %2920 = vmatpush.bf16.msra.mxu3 %v4180_v6  ;;  %v5790_v3 = vld [vmem:[#allocation99_spill] sm:$0xff] }
 0x9c5   :  { %v608_v6 = vadd.f32 %v5790_v3, %v4735_v50 }
 0x9c7   :  { %2879 = vmatpush.bf16.msra.mxu0 %v4200_v12  ;;  %2893 = vmatpush.bf16.msra.mxu1 %v4211_v16  ;;  %v5791_v12 = vld [vmem:[#allocation100_spill] sm:$0xff] }
 0x9c8   :  { %2907 = vmatpush.bf16.msra.mxu2 %v4213_v17  ;;  %2921 = vmatpush.bf16.msra.mxu3 %v4222_v20  ;;  %v697_v16 = vadd.f32 %v5791_v12, %v4737_v35  ;;  %v5792_v17 = vld [vmem:[#allocation101_spill] sm:$0xff] }
 0x9c9   :  { %v432_v20 = vadd.f32 %v5792_v17, %v4723_v61  ;;  %v5796_v17 = vld [vmem:[#allocation105_spill] sm:$0xff] }
 0x9cb   :  { %2880 = vmatpush.bf16.msra.mxu0 %v4242_v26  ;;  %2894 = vmatpush.bf16.msra.mxu1 %v4253_v30  ;;  %v5793_v26 = vld [vmem:[#allocation102_spill] sm:$0xff] }
 0x9cc   :  { %2908 = vmatpush.bf16.msra.mxu2 %v4255_v31  ;;  %2922 = vmatpush.bf16.msra.mxu3 %v4266_v34  ;;  %v521_v30 = vadd.f32 %v5793_v26, %v4725_v45  ;;  %v5797_v26 = vld [vmem:[#allocation106_spill] sm:$0xff] }
 0x9cf   :  { %2881 = vmatpush.bf16.msra.mxu0 %v4288_v46  ;;  %2895 = vmatpush.bf16.msra.mxu1 %v4301_v54 }
 0x9d0   :  { %2909 = vmatpush.bf16.msra.mxu2 %v4303_v55  ;;  %2923 = vmatpush.bf16.msra.mxu3 %v4320_v63 }
 0x9d3   :  { %2882 = vmatpush.bf16.msra.mxu0 %v4362_v24  ;;  %2896 = vmatpush.bf16.msra.mxu1 %v4375_v32 }
 0x9d4   :  { %2910 = vmatpush.bf16.msra.mxu2 %v4377_v33  ;;  %2924 = vmatpush.bf16.msra.mxu3 %v4394_v47 }
 0x9d7   :  { %2883 = vmatpush.bf16.msra.mxu0 %v4436_v23  ;;  %2897 = vmatpush.bf16.msra.mxu1 %v4449_v21 }
 0x9d8   :  { %2911 = vmatpush.bf16.msra.mxu2 %v4451_v14  ;;  %2925 = vmatpush.bf16.msra.mxu3 %v4470_v42 }
 0xa36   :  { %v2641_v48 = vpop.f32.mrf.mxu0  ;;  %v2655_v52 = vpop.f32.mrf.mxu1 }
 0xa37   :  { %v2688_v53 = vadd.f32 %v2641_v48, %v430_v40  ;;  %v2689_v56 = vadd.f32 %v2655_v52, %v519_v44 }
 0xa39   :  { %v2696_v62 = vmul.f32 0.5, %v2688_v53  ;;  %v2704_v2 = vmul.f32 0.5, %v2689_v56 }
 0xa3b   :  { %3790 = vtanh.f32 %v2696_v62 }
 0xa3c   :  { %3792 = vtanh.f32 %v2704_v2 }
 0xa3d   :  { %v2669_v31 = vpop.f32.mrf.mxu2  ;;  %v2683_v34 = vpop.f32.mrf.mxu3 }
 0xa3e   :  { %v2690_v46 = vadd.f32 %v2669_v31, %v608_v6  ;;  %v2643_v54 = vpop.f32.mrf.mxu0  ;;  %v2657_v55 = vpop.f32.mrf.mxu1  ;;  %v2691_v63 = vadd.f32 %v2683_v34, %v697_v16 }
 0xa3f   :  { %v2692_v24 = vadd.f32 %v2643_v54, %v432_v20  ;;  %v2693_v32 = vadd.f32 %v2657_v55, %v521_v30  ;;  %v435_v20 = vadd.f32 %v5796_v17, %v4723_v61  ;;  %v524_v30 = vadd.f32 %v5797_v26, %v4725_v45 }
 0xa40   :  { %3794 = vtanh.f32 %v2690_v46  ;;  %v2714_v10 = vmul.f32 0.5, %v2691_v63 }
 0xa41   :  { %v3791_v33 = vpop.eup %3790  ;;  %v2697_v47 = vmul.f32 0.5, %v2692_v24  ;;  %v2705_v14 = vmul.f32 0.5, %v2693_v32  ;;  %v5798_v24 = vld [vmem:[#allocation107_spill] sm:$0xff] }
 0xa42   :  { %v3793_v21 = vpop.eup %3792  ;;  %v2700_v23 = vmul.f32 0.5, %v3791_v33  ;;  %v613_v32 = vadd.f32 %v5798_v24, %v4735_v50  ;;  %v5799_v33 = vld [vmem:[#allocation108_spill] sm:$0xff] }
 0xa43   :  { %v2708_v42 = vmul.f32 0.5, %v3793_v21  ;;  %3796 = vtanh.f32 %v2697_v47  ;;  %v702_v47 = vadd.f32 %v5799_v33, %v4737_v35 }
 0xa44   :  { %v2702_v49 = vadd.f32 0.5, %v2700_v23  ;;  %3798 = vtanh.f32 %v2705_v14  ;;  %v5800_v14 = vld [vmem:[#allocation109_spill] sm:$0xff]  ;;  %v5801_v23 = vld [vmem:[#allocation110_spill] sm:$0xff] }
 0xa45   :  { %v2710_v7 = vadd.f32 0.5, %v2708_v42  ;;  %v2671_v39 = vpop.f32.mrf.mxu2  ;;  %v2685_v58 = vpop.f32.mrf.mxu3  ;;  %3800 = vtanh.f32 %v2714_v10  ;;  %v437_v21 = vadd.f32 %v5800_v14, %v4723_v61  ;;  %v526_v42 = vadd.f32 %v5801_v23, %v4725_v45  ;;  %v5804_v14 = vld [vmem:[#allocation113_spill] sm:$0xff]  ;;  %v5805_v23 = vld [vmem:[#allocation114_spill] sm:$0xff] }
 0xa46   :  { %v3795_v0 = vpop.eup %3794  ;;  %v2694_v28 = vadd.f32 %v2671_v39, %v610_v59  ;;  %v2695_v37 = vadd.f32 %v2685_v58, %v699_v25 }
 0xa47   :  { %v2722_v41 = vmul.f32 %v2710_v7, %v5458_v5  ;;  %v2724_v22 = vmul.f32 %v3795_v0, %v2702_v49 }
 0xa48   :  { %3802 = vtanh.f32 %v2694_v28  ;;  %v2715_v9 = vmul.f32 0.5, %v2695_v37 }
 0xa49   :  { %v3797_v8 = vpop.eup %3796  ;;  %v5517_v15 = vadd.f32 %v2724_v22, %v2722_v41 }
 0xa4a   :  { %v3799_v18 = vpop.eup %3798  ;;  %v2701_v60 = vmul.f32 0.5, %v3797_v8  ;;  %3804 = vtanh.f32 %v2715_v9  ;;  %v5802_v8 = vld [vmem:[#allocation111_spill] sm:$0xff] }
 0xa4b   :  { %v2709_v19 = vmul.f32 0.5, %v3799_v18  ;;  %v3801_v13 = vpop.eup %3800  ;;  %3806 = vtanh.f32 %v5517_v15  ;;  %v615_v18 = vadd.f32 %v5802_v8, %v4735_v50 }
 0xa4c   :  { %v2703_v4 = vadd.f32 0.5, %v2701_v60  ;;  %v2718_v38 = vmul.f32 0.5, %v3801_v13  ;;  %v5803_v60 = vld [vmem:[#allocation112_spill] sm:$0xff] }
 0xa4d   :  { %v2711_v57 = vadd.f32 0.5, %v2709_v19  ;;  %v704_v19 = vadd.f32 %v5803_v60, %v4737_v35 }
 0xa4e   :  { %v3803_v51 = vpop.eup %3802  ;;  %v2720_v44 = vadd.f32 0.5, %v2718_v38 }
 0xa4f   :  { %v2723_v27 = vmul.f32 %v2711_v57, %v5462_v1  ;;  %v2725_v5 = vmul.f32 %v3803_v51, %v2703_v4 }
 0xa50   :  { %v3805_v36 = vpop.eup %3804 }
 0xa51   :  { %v5521_v40 = vadd.f32 %v2725_v5, %v2723_v27  ;;  %v3807_v43 = vpop.eup %3806  ;;  %v2719_v48 = vmul.f32 0.5, %v3805_v36 }
 0xa52   :  { %v2730_v52 = vmul.f32 %v3807_v43, %v2720_v44 }
 0xa53   :  { %3808 = vtanh.f32 %v5521_v40  ;;  %v2721_v53 = vadd.f32 0.5, %v2719_v48 }
 0xa54   :  { %v2732_v62 = vpack.c.bf16 %v2730_v52, %v2730_v52 }
 0xa56   :  { %v2750_v12 = vunpack.c.l.b16 %v2732_v62 }
 0xa59   :  { %v3809_v56 = vpop.eup %3808 }
 0xa5a   :  { %v2731_v2 = vmul.f32 %v3809_v56, %v2721_v53 }
 0xa5c   :  { %v2733_v3 = vpack.c.bf16 %v2731_v2, %v2731_v2  ;;  %v3502_v6 = vpack.c.bf16 %v2731_v2, %v2730_v52 }
 0xa5e   :  { %3526 = vst [vmem:[%s5579_s4 + $0x68] sm:$0xff] %v3502_v6   ;;  %v2751_v1 = vunpack.c.l.b16 %v2733_v3 }
 0xa60   :  { %v2752_v16 = vpack.c.b16 %v2751_v1, %v2750_v12 }
 0xa62   :  { %2762 = vmatmul.bf16.vlgmr.msrb.gmra.mxu0 %v2752_v16  ;;  %2776 = vmatmul.bf16.vlgmr.msrb.gmra.mxu1 %v2752_v16 }
 0xa63   :  { %2790 = vmatmul.bf16.vlgmr.msrb.gmra.mxu2 %v2752_v16  ;;  %2804 = vmatmul.bf16.vlgmr.msrb.gmra.mxu3 %v2752_v16 }
 0xadf   :  { %v2763_v31 = vpop.f32.mrf.mxu0  ;;  %v2777_v34 = vpop.f32.mrf.mxu1 }
 0xae0   :  { %v2810_v46 = vadd.f32 %v2763_v31, %v435_v20  ;;  %v2811_v54 = vadd.f32 %v2777_v34, %v524_v30 }
 0xae2   :  { %v2818_v55 = vmul.f32 0.5, %v2810_v46  ;;  %v2826_v63 = vmul.f32 0.5, %v2811_v54 }
 0xae4   :  { %3810 = vtanh.f32 %v2818_v55 }
 0xae5   :  { %3812 = vtanh.f32 %v2826_v63 }
 0xae6   :  { %v2791_v10 = vpop.f32.mrf.mxu2  ;;  %v2805_v11 = vpop.f32.mrf.mxu3 }
 0xae7   :  { %v2812_v59 = vadd.f32 %v2791_v10, %v613_v32  ;;  %v2765_v29 = vpop.f32.mrf.mxu0  ;;  %v2779_v25 = vpop.f32.mrf.mxu1  ;;  %v2813_v49 = vadd.f32 %v2805_v11, %v702_v47 }
 0xae8   :  { %v2814_v7 = vadd.f32 %v2765_v29, %v437_v21  ;;  %v2815_v39 = vadd.f32 %v2779_v25, %v526_v42  ;;  %v440_v21 = vadd.f32 %v5804_v14, %v4723_v61  ;;  %v529_v42 = vadd.f32 %v5805_v23, %v4725_v45 }
 0xae9   :  { %3814 = vtanh.f32 %v2812_v59  ;;  %v2836_v9 = vmul.f32 0.5, %v2813_v49 }
 0xaea   :  { %v3811_v58 = vpop.eup %3810  ;;  %v2819_v0 = vmul.f32 0.5, %v2814_v7  ;;  %v2827_v28 = vmul.f32 0.5, %v2815_v39  ;;  %v5806_v7 = vld [vmem:[#allocation115_spill] sm:$0xff] }
 0xaeb   :  { %v3813_v37 = vpop.eup %3812  ;;  %v2822_v41 = vmul.f32 0.5, %v3811_v58  ;;  %v618_v39 = vadd.f32 %v5806_v7, %v4735_v50  ;;  %v5807_v58 = vld [vmem:[#allocation116_spill] sm:$0xff] }
 0xaec   :  { %v2830_v22 = vmul.f32 0.5, %v3813_v37  ;;  %3816 = vtanh.f32 %v2819_v0  ;;  %v707_v0 = vadd.f32 %v5807_v58, %v4737_v35 }
 0xaed   :  { %v2824_v4 = vadd.f32 0.5, %v2822_v41  ;;  %3818 = vtanh.f32 %v2827_v28  ;;  %v5808_v28 = vld [vmem:[#allocation117_spill] sm:$0xff]  ;;  %v5809_v41 = vld [vmem:[#allocation118_spill] sm:$0xff] }
 0xaee   :  { %v2832_v13 = vadd.f32 0.5, %v2830_v22  ;;  %v2793_v57 = vpop.f32.mrf.mxu2  ;;  %v2807_v51 = vpop.f32.mrf.mxu3  ;;  %3820 = vtanh.f32 %v2836_v9  ;;  %v442_v37 = vadd.f32 %v5808_v28, %v4723_v61  ;;  %v531_v22 = vadd.f32 %v5809_v41, %v4725_v45  ;;  %v5810_v45 = vld [vmem:[#allocation119_spill] sm:$0xff] }
 0xaef   :  { %v3815_v27 = vpop.eup %3814  ;;  %v2816_v5 = vadd.f32 %v2793_v57, %v615_v18  ;;  %v2817_v38 = vadd.f32 %v2807_v51, %v704_v19 }
 0xaf0   :  { %v2844_v36 = vmul.f32 %v2832_v13, %v5517_v15  ;;  %v2846_v43 = vmul.f32 %v3815_v27, %v2824_v4 }
 0xaf1   :  { %3822 = vtanh.f32 %v2816_v5  ;;  %v2837_v44 = vmul.f32 0.5, %v2817_v38 }
 0xaf2   :  { %v3817_v48 = vpop.eup %3816  ;;  %v5544_v52 = vadd.f32 %v2846_v43, %v2844_v36 }
 0xaf3   :  { %v3819_v53 = vpop.eup %3818  ;;  %v2823_v56 = vmul.f32 0.5, %v3817_v48  ;;  %3824 = vtanh.f32 %v2837_v44  ;;  %v620_v44 = vadd.f32 %v5810_v45, %v4735_v50  ;;  %v5811_v48 = vld [vmem:[#allocation120_spill] sm:$0xff] }
 0xaf4   :  { %v2831_v62 = vmul.f32 0.5, %v3819_v53  ;;  %v3821_v3 = vpop.eup %3820  ;;  %3826 = vtanh.f32 %v5544_v52  ;;  %v709_v53 = vadd.f32 %v5811_v48, %v4737_v35 }
 0xaf5   :  { %v2825_v2 = vadd.f32 0.5, %v2823_v56  ;;  %v2840_v16 = vmul.f32 0.5, %v3821_v3 }
 0xaf6   :  { %v2833_v6 = vadd.f32 0.5, %v2831_v62 }
 0xaf7   :  { %v3823_v12 = vpop.eup %3822  ;;  %v2842_v30 = vadd.f32 0.5, %v2840_v16 }
 0xaf8   :  { %v2845_v1 = vmul.f32 %v2833_v6, %v5521_v40  ;;  %v2847_v15 = vmul.f32 %v3823_v12, %v2825_v2 }
 0xaf9   :  { %v3825_v17 = vpop.eup %3824 }
 0xafa   :  { %v5548_v20 = vadd.f32 %v2847_v15, %v2845_v1  ;;  %v3827_v26 = vpop.eup %3826  ;;  %v2841_v31 = vmul.f32 0.5, %v3825_v17 }
 0xafb   :  { %v2852_v34 = vmul.f32 %v3827_v26, %v2842_v30 }
 0xafc   :  { %3828 = vtanh.f32 %v5548_v20  ;;  %v2843_v46 = vadd.f32 0.5, %v2841_v31 }
 0xafd   :  { %v2854_v55 = vpack.c.bf16 %v2852_v34, %v2852_v34 }
 0xaff   :  { %v2872_v33 = vunpack.c.l.b16 %v2854_v55 }
 0xb02   :  { %v3829_v54 = vpop.eup %3828 }
 0xb03   :  { %v2853_v63 = vmul.f32 %v3829_v54, %v2843_v46 }
 0xb05   :  { %v2855_v24 = vpack.c.bf16 %v2853_v63, %v2853_v63  ;;  %v3507_v32 = vpack.c.bf16 %v2853_v63, %v2852_v34 }
 0xb07   :  { %3527 = vst [vmem:[%s5579_s4 + $0x70] sm:$0xff] %v3507_v32   ;;  %v2873_v40 = vunpack.c.l.b16 %v2855_v24 }
 0xb09   :  { %v2874_v47 = vpack.c.b16 %v2873_v40, %v2872_v33 }
 0xb0b   :  { %2884 = vmatmul.bf16.vlgmr.msra.gmra.mxu0 %v2874_v47  ;;  %2898 = vmatmul.bf16.vlgmr.msra.gmra.mxu1 %v2874_v47 }
 0xb0c   :  { %2912 = vmatmul.bf16.vlgmr.msra.gmra.mxu2 %v2874_v47  ;;  %2926 = vmatmul.bf16.vlgmr.msra.gmra.mxu3 %v2874_v47 }
 0xb88   :  { %v2885_v10 = vpop.f32.mrf.mxu0  ;;  %v2899_v11 = vpop.f32.mrf.mxu1 }
 0xb89   :  { %v2932_v59 = vadd.f32 %v2885_v10, %v440_v21  ;;  %v2933_v29 = vadd.f32 %v2899_v11, %v529_v42 }
 0xb8b   :  { %v2940_v25 = vmul.f32 0.5, %v2932_v59  ;;  %v2948_v49 = vmul.f32 0.5, %v2933_v29 }
 0xb8d   :  { %3830 = vtanh.f32 %v2940_v25 }
 0xb8e   :  { %3832 = vtanh.f32 %v2948_v49 }
 0xb8f   :  { %v2913_v9 = vpop.f32.mrf.mxu2  ;;  %v2927_v8 = vpop.f32.mrf.mxu3 }
 0xb90   :  { %v2934_v18 = vadd.f32 %v2913_v9, %v618_v39  ;;  %v2935_v60 = vadd.f32 %v2927_v8, %v707_v0  ;;  %v2887_v19 = vpop.f32.mrf.mxu0  ;;  %v2901_v4 = vpop.f32.mrf.mxu1 }
 0xb91   :  { %v2936_v13 = vadd.f32 %v2887_v19, %v442_v37  ;;  %v2937_v57 = vadd.f32 %v2901_v4, %v531_v22 }
 0xb92   :  { %3834 = vtanh.f32 %v2934_v18  ;;  %v2958_v51 = vmul.f32 0.5, %v2935_v60 }
 0xb93   :  { %v3831_v27 = vpop.eup %3830  ;;  %v2941_v5 = vmul.f32 0.5, %v2936_v13  ;;  %v2949_v38 = vmul.f32 0.5, %v2937_v57 }
 0xb94   :  { %v3833_v36 = vpop.eup %3832  ;;  %v2944_v43 = vmul.f32 0.5, %v3831_v27  ;;  %3836 = vtanh.f32 %v2958_v51 }
 0xb95   :  { %v2952_v61 = vmul.f32 0.5, %v3833_v36  ;;  %3838 = vtanh.f32 %v2941_v5 }
 0xb96   :  { %v2946_v56 = vadd.f32 0.5, %v2944_v43  ;;  %3840 = vtanh.f32 %v2949_v38 }
 0xb97   :  { %v2954_v62 = vadd.f32 0.5, %v2952_v61  ;;  %v2915_v2 = vpop.f32.mrf.mxu2  ;;  %v2929_v3 = vpop.f32.mrf.mxu3 }
 0xb98   :  { %v3835_v6 = vpop.eup %3834  ;;  %v2938_v12 = vadd.f32 %v2915_v2, %v620_v44  ;;  %v2939_v1 = vadd.f32 %v2929_v3, %v709_v53 }
 0xb99   :  { %v2966_v15 = vmul.f32 %v2954_v62, %v5544_v52  ;;  %v2968_v16 = vmul.f32 %v3835_v6, %v2946_v56 }
 0xb9a   :  { %v3837_v17 = vpop.eup %3836  ;;  %3842 = vtanh.f32 %v2938_v12  ;;  %v2959_v26 = vmul.f32 0.5, %v2939_v1 }
 0xb9b   :  { %v3839_v30 = vpop.eup %3838  ;;  %v2970_v31 = vadd.f32 %v2968_v16, %v2966_v15  ;;  %v2962_v46 = vmul.f32 0.5, %v3837_v17 }
 0xb9c   :  { %v3841_v50 = vpop.eup %3840  ;;  %v2945_v34 = vmul.f32 0.5, %v3839_v30  ;;  %3844 = vtanh.f32 %v2959_v26 }
 0xb9d   :  { %3846 = vtanh.f32 %v2970_v31  ;;  %v2953_v35 = vmul.f32 0.5, %v3841_v50  ;;  %v2964_v52 = vadd.f32 0.5, %v2962_v46 }
 0xb9e   :  { %v2947_v54 = vadd.f32 0.5, %v2945_v34 }
 0xb9f   :  { %v2955_v55 = vadd.f32 0.5, %v2953_v35 }
 0xba0   :  { %v3843_v63 = vpop.eup %3842 }
 0xba1   :  { %v2967_v24 = vmul.f32 %v2955_v55, %v5548_v20  ;;  %v2969_v32 = vmul.f32 %v3843_v63, %v2947_v54 }
 0xba2   :  { %v3845_v33 = vpop.eup %3844 }
 0xba3   :  { %v3847_v40 = vpop.eup %3846  ;;  %v2971_v47 = vadd.f32 %v2969_v32, %v2967_v24  ;;  %v2963_v21 = vmul.f32 0.5, %v3845_v33 }
 0xba4   :  { %v2974_v14 = vmul.f32 %v3847_v40, %v2964_v52 }
 0xba5   :  { %3848 = vtanh.f32 %v2971_v47  ;;  %v2965_v23 = vadd.f32 0.5, %v2963_v21 }
 0xbab   :  { %v3849_v42 = vpop.eup %3848 }
 0xbac   :  { %v2975_v10 = vmul.f32 %v3849_v42, %v2965_v23 }
 0xbae   :  { %v3512_v11 = vpack.c.bf16 %v2975_v10, %v2974_v14 }
 0xbb0   :  { %3528 = vst [vmem:[%s5579_s4 + $0x78] sm:$0xff] %v3512_v11  }

</bundles_post_ra>
